<compile_context>
chip_gen: v5e
topology: v5e:2x2
jax: 0.10.0
libtpu: 0.0.40
codegen_flags: <defaults>
</compile_context>

<pallas_src>
import jax
import jax.numpy as jnp
from jax import lax
from jax.experimental import pallas as pl
from jax.experimental.pallas import tpu as pltpu
import numpy as np


def _round_up(x, m):
    return (x + m - 1) // m * m


# -----------------------------------------------------------------------------
# Fused multi-layer LSTM kernel (all layers, all timesteps) — padded shapes.
# -----------------------------------------------------------------------------
def _fused_lstm(x2, w_list, *, S, B_p, H_p, E_p, L):
    """x2: (S*B_p, E_p) time-major flattened input.
       w_list: per layer [w_ih (Din_p,4H_p), w_hh (H_p,4H_p), b (1,4H_p)] * L.
       Returns hidden, cell each of shape (L, B_p, H_p)."""

    # Full unroll only for short sequences; bounded unroll otherwise so live
    # ranges (gx slices, gate vregs) stay inside the 64-vreg file.
    unroll = True if S <= 16 else 8

    def kernel(x_ref, *args):
        w_refs = args[:3 * L]
        h_out = args[3 * L]
        c_out = args[3 * L + 1]
        y_sc, gx_sc = args[3 * L + 2:]

        for l in range(L):                       # static layer loop (fused stack)
            w_ih_ref = w_refs[3 * l]
            w_hh_ref = w_refs[3 * l + 1]
            b_ref = w_refs[3 * l + 2]
            src_ref = x_ref if l == 0 else y_sc  # previous layer output in VMEM

            # Hoisted input projection: one big MXU matmul + bias, once per
            # layer (no sequential dependence), stored in VMEM scratch.
            gx_sc[...] = (
                jnp.dot(src_ref[...], w_ih_ref[...],
                        preferred_element_type=jnp.float32)
                + b_ref[...])

            # Recurrent weights read ONCE per layer: loop-invariant value so the
            # MXU RHS push is hoisted out of the unrolled time loop.
            w_hh = w_hh_ref[...]

            h0 = jnp.zeros((B_p, H_p), jnp.float32)
            c0 = jnp.zeros((B_p, H_p), jnp.float32)

            def step(t, carry, l=l):
                h, c = carry                     # vreg-resident loop carry
                row = pl.multiple_of(t * B_p, B_p)
                # Only the recurrent matmul remains on the serial critical path.
                gates = gx_sc[pl.ds(row, B_p), :] + jnp.dot(
                    h, w_hh, preferred_element_type=jnp.float32)   # (B_p, 4H_p)
                # PyTorch gate order: i, f, g, o — lane-aligned slices (H_p=128k)
                i_g = jax.nn.sigmoid(gates[:, 0 * H_p:1 * H_p])
                f_g = jax.nn.sigmoid(gates[:, 1 * H_p:2 * H_p])
                g_g = jnp.tanh(gates[:, 2 * H_p:3 * H_p])
                o_g = jax.nn.sigmoid(gates[:, 3 * H_p:4 * H_p])
                c_new = f_g * c + i_g * g_g
                h_new = o_g * jnp.tanh(c_new)
                if l < L - 1:                    # next layer's input (VMEM only)
                    y_sc[pl.ds(row, B_p), :] = h_new
                return (h_new, c_new)

            h_f, c_f = lax.fori_loop(0, S, step, (h0, c0), unroll=unroll)

            # Final states written directly to the outputs (once per layer).
            h_out[l] = h_f
            c_out[l] = c_f

    in_specs = [pl.BlockSpec((S * B_p, E_p), lambda i: (0, 0))]
    for l in range(L):
        din_p = E_p if l == 0 else H_p
        in_specs.append(pl.BlockSpec((din_p, 4 * H_p), lambda i: (0, 0)))
        in_specs.append(pl.BlockSpec((H_p, 4 * H_p), lambda i: (0, 0)))
        in_specs.append(pl.BlockSpec((1, 4 * H_p), lambda i: (0, 0)))

    out_specs = [
        pl.BlockSpec((L, B_p, H_p), lambda i: (0, 0, 0)),
        pl.BlockSpec((L, B_p, H_p), lambda i: (0, 0, 0)),
    ]

    # Explicit VMEM budget (default scoped limit is 32/16 MiB — smaller than
    # physical); stays well under v7x's 64 MiB physical at these shapes.
    f32 = 4
    weight_bytes = sum(int(np.prod(w.shape)) for w in w_list) * f32
    io_bytes = (S * B_p * E_p + 2 * L * B_p * H_p) * f32
    scratch_bytes = (S * B_p * H_p + S * B_p * 4 * H_p) * f32
    est = 2 * (weight_bytes + io_bytes) + scratch_bytes
    vmem_limit = int(min(max(2 * est, 32 * 1024 * 1024), 100 * 1024 * 1024))

    grid_spec = pltpu.PrefetchScalarGridSpec(
        num_scalar_prefetch=0,
        grid=(1,),
        in_specs=in_specs,
        out_specs=out_specs,
        scratch_shapes=[
            pltpu.VMEM((S * B_p, H_p), jnp.float32),       # inter-layer y
            pltpu.VMEM((S * B_p, 4 * H_p), jnp.float32),   # hoisted x @ W_ih + b
        ],
    )

    hidden, cell = pl.pallas_call(
        kernel,
        out_shape=(
            jax.ShapeDtypeStruct((L, B_p, H_p), jnp.float32),
            jax.ShapeDtypeStruct((L, B_p, H_p), jnp.float32),
        ),
        grid_spec=grid_spec,
        compiler_params=pltpu.CompilerParams(
            dimension_semantics=("arbitrary",),
            vmem_limit_bytes=vmem_limit),
    )(x2, *w_list)
    return hidden, cell


# -----------------------------------------------------------------------------
# Parameter initialization (deterministic, PyTorch-like shapes/gate order).
# -----------------------------------------------------------------------------
def init_params(key, vocab_size, embedding_size, hidden_size, layers):
    keys = jax.random.split(key, 1 + 4 * layers)
    params = {}
    params["embedding"] = jax.random.normal(
        keys[0], (vocab_size, embedding_size), jnp.float32)

    bound = 1.0 / np.sqrt(hidden_size)
    lstm = []
    for l in range(layers):
        din = embedding_size if l == 0 else hidden_size
        k_ih, k_hh, k_bih, k_bhh = keys[1 + 4 * l: 1 + 4 * (l + 1)]
        # stored already transposed: (Din, 4H) / (H, 4H); gate order i,f,g,o
        w_ih = jax.random.uniform(k_ih, (din, 4 * hidden_size),
                                  jnp.float32, -bound, bound)
        w_hh = jax.random.uniform(k_hh, (hidden_size, 4 * hidden_size),
                                  jnp.float32, -bound, bound)
        b_ih = jax.random.uniform(k_bih, (4 * hidden_size,),
                                  jnp.float32, -bound, bound)
        b_hh = jax.random.uniform(k_bhh, (4 * hidden_size,),
                                  jnp.float32, -bound, bound)
        lstm.append({"w_ih": w_ih, "w_hh": w_hh, "b": b_ih + b_hh})
    params["lstm"] = lstm
    return params


# -----------------------------------------------------------------------------
# Padding helpers: pad each of the 4 gate blocks independently so that gate
# slicing by H_p stays correct, and padded units compute exact zeros.
# TODO(synk): for tiny H (4*H <= 128) gates could be kept un-padded in a single
#   128-lane tile (realigned with pltpu.roll); skipped — production H >= 128.
# -----------------------------------------------------------------------------
def _pad_gate_matrix(w, din_p, H, H_p):
    din = w.shape[0]
    w4 = w.reshape(din, 4, H)
    w4 = jnp.pad(w4, ((0, din_p - din), (0, 0), (0, H_p - H)))
    return w4.reshape(din_p, 4 * H_p)


def _pad_gate_bias(b, H, H_p):
    b4 = b.reshape(4, H)
    b4 = jnp.pad(b4, ((0, 0), (0, H_p - H)))
    return b4.reshape(1, 4 * H_p)


# -----------------------------------------------------------------------------
# Encoder forward: embedding gather (JAX glue) + fused stacked-LSTM kernel.
# -----------------------------------------------------------------------------
def encoder_forward(tokens, params):
    """tokens: (batch, seq) int32 -> (hidden, cell) each (layers, batch, H)."""
    B, S = tokens.shape
    E = params["embedding"].shape[1]
    H = params["lstm"][0]["w_hh"].shape[0]
    L = len(params["lstm"])

    B_p = _round_up(B, 8)
    H_p = _round_up(H, 128)
    E_p = _round_up(E, 128)

    # Gather directly in time-major order: (S, B, E) — no separate transpose.
    emb = params["embedding"][tokens.T]
    x = jnp.pad(emb, ((0, 0), (0, B_p - B), (0, E_p - E))).astype(jnp.float32)
    x2 = x.reshape(S * B_p, E_p)                       # flattened for big matmul

    w_list = []
    for l, layer in enumerate(params["lstm"]):
        din_p = E_p if l == 0 else H_p
        w_list.append(_pad_gate_matrix(layer["w_ih"], din_p, H, H_p))
        w_list.append(_pad_gate_matrix(layer["w_hh"], H_p, H, H_p))
        w_list.append(_pad_gate_bias(layer["b"], H, H_p))

    hidden_p, cell_p = _fused_lstm(x2, w_list, S=S, B_p=B_p, H_p=H_p,
                                   E_p=E_p, L=L)
    return hidden_p[:, :B, :H], cell_p[:, :B, :H]


# -----------------------------------------------------------------------------
# Pure-JAX reference (unpadded, same math) for the correctness check.
# -----------------------------------------------------------------------------
def encoder_forward_ref(tokens, params):
    emb = params["embedding"][tokens]
    x = jnp.transpose(emb, (1, 0, 2))                  # (S, B, E)
    hs, cs = [], []
    for layer in params["lstm"]:
        H = layer["w_hh"].shape[0]
        B = x.shape[1]
        h0 = jnp.zeros((B, H), jnp.float32)
        c0 = jnp.zeros((B, H), jnp.float32)

        def step(carry, x_t, layer=layer, H=H):
            h, c = carry
            gates = x_t @ layer["w_ih"] + h @ layer["w_hh"] + layer["b"]
            i_g = jax.nn.sigmoid(gates[:, 0 * H:1 * H])
            f_g = jax.nn.sigmoid(gates[:, 1 * H:2 * H])
            g_g = jnp.tanh(gates[:, 2 * H:3 * H])
            o_g = jax.nn.sigmoid(gates[:, 3 * H:4 * H])
            c_new = f_g * c + i_g * g_g
            h_new = o_g * jnp.tanh(c_new)
            return (h_new, c_new), h_new

        (h_f, c_f), y = lax.scan(step, (h0, c0), x)
        x = y
        hs.append(h_f)
        cs.append(c_f)
    return jnp.stack(hs, 0), jnp.stack(cs, 0)


if __name__ == "__main__":
    vocab_size, embedding_size, hidden_size, layers = 50, 32, 32, 2
    batch, seq = 2, 8

    key = jax.random.PRNGKey(0)
    k_par, k_tok = jax.random.split(key)
    params = init_params(k_par, vocab_size, embedding_size, hidden_size, layers)
    tokens = jax.random.randint(k_tok, (batch, seq), 0, vocab_size, jnp.int32)

    hidden, cell = encoder_forward(tokens, params)
    hidden, cell = jax.block_until_ready((hidden, cell))

    hidden_ref, cell_ref = encoder_forward_ref(tokens, params)
    assert hidden.shape == (layers, batch, hidden_size)
    assert cell.shape == (layers, batch, hidden_size)
    np.testing.assert_allclose(np.asarray(hidden), np.asarray(hidden_ref),
                               rtol=1e-5, atol=1e-5)
    np.testing.assert_allclose(np.asarray(cell), np.asarray(cell_ref),
                               rtol=1e-5, atol=1e-5)

    print("KERNEL_OK")
</pallas_src>

<mosaic_0001>
module attributes {stable_mosaic.version = 11 : i64} {
  func.func @kernel(%arg0: i32, %arg1: memref<64x128xf32, #tpu.memory_space<vmem>>, %arg2: memref<128x512xf32, #tpu.memory_space<vmem>>, %arg3: memref<128x512xf32, #tpu.memory_space<vmem>>, %arg4: memref<1x512xf32, #tpu.memory_space<vmem>>, %arg5: memref<128x512xf32, #tpu.memory_space<vmem>>, %arg6: memref<128x512xf32, #tpu.memory_space<vmem>>, %arg7: memref<1x512xf32, #tpu.memory_space<vmem>>, %arg8: memref<2x8x128xf32, #tpu.memory_space<vmem>>, %arg9: memref<2x8x128xf32, #tpu.memory_space<vmem>>, %arg10: memref<64x128xf32, #tpu.memory_space<vmem>>, %arg11: memref<64x512xf32, #tpu.memory_space<vmem>>) attributes {dimension_semantics = [#tpu.dimension_semantics<arbitrary>], iteration_bounds = array<i64: 1>, scalar_prefetch = 0 : i64, scratch_operands = 2 : i64, tpu.core_type = #tpu.core_type<tc>, window_params = [{pipeline_mode = #tpu.pipeline_mode<synchronous>, transform_indices = @transform_0, window_bounds = array<i64: 64, 128>}, {pipeline_mode = #tpu.pipeline_mode<synchronous>, transform_indices = @transform_1, window_bounds = array<i64: 128, 512>}, {pipeline_mode = #tpu.pipeline_mode<synchronous>, transform_indices = @transform_2, window_bounds = array<i64: 128, 512>}, {pipeline_mode = #tpu.pipeline_mode<synchronous>, transform_indices = @transform_3, window_bounds = array<i64: 1, 512>}, {pipeline_mode = #tpu.pipeline_mode<synchronous>, transform_indices = @transform_4, window_bounds = array<i64: 128, 512>}, {pipeline_mode = #tpu.pipeline_mode<synchronous>, transform_indices = @transform_5, window_bounds = array<i64: 128, 512>}, {pipeline_mode = #tpu.pipeline_mode<synchronous>, transform_indices = @transform_6, window_bounds = array<i64: 1, 512>}, {pipeline_mode = #tpu.pipeline_mode<synchronous>, transform_indices = @transform_7, window_bounds = array<i64: 2, 8, 128>}, {pipeline_mode = #tpu.pipeline_mode<synchronous>, transform_indices = @transform_8, window_bounds = array<i64: 2, 8, 128>}]} {
    %c0 = arith.constant 0 : index
    %c0_0 = arith.constant 0 : index
    %0 = vector.load %arg1[%c0, %c0_0] : memref<64x128xf32, #tpu.memory_space<vmem>>, vector<64x128xf32>
    %c0_1 = arith.constant 0 : index
    %c0_2 = arith.constant 0 : index
    %1 = vector.load %arg2[%c0_1, %c0_2] : memref<128x512xf32, #tpu.memory_space<vmem>>, vector<128x512xf32>
    %cst = arith.constant dense<0.000000e+00> : vector<64x512xf32>
    %2 = tpu.matmul %0, %1, %cst {dimension_numbers = #tpu.dot_dimension_numbers<[1], [0], [0], [1], [0, 0, 1, 1], [], []>} : vector<64x128xf32>, vector<128x512xf32>, vector<64x512xf32> -> vector<64x512xf32>
    %c0_3 = arith.constant 0 : index
    %c0_4 = arith.constant 0 : index
    %3 = vector.load %arg4[%c0_3, %c0_4] : memref<1x512xf32, #tpu.memory_space<vmem>>, vector<1x512xf32>
    %4 = vector.broadcast %3 : vector<1x512xf32> to vector<64x512xf32>
    %5 = arith.addf %2, %4 : vector<64x512xf32>
    %c0_5 = arith.constant 0 : index
    %c0_6 = arith.constant 0 : index
    %6 = vector.load %arg11[%c0_5, %c0_6] : memref<64x512xf32, #tpu.memory_space<vmem>>, vector<64x512xf32>
    tpu.vector_store %arg11[%c0_5, %c0_6], %5 {strides = array<i32>} : memref<64x512xf32, #tpu.memory_space<vmem>>, vector<64x512xf32>,
    %c0_7 = arith.constant 0 : index
    %c0_8 = arith.constant 0 : index
    %7 = vector.load %arg3[%c0_7, %c0_8] : memref<128x512xf32, #tpu.memory_space<vmem>>, vector<128x512xf32>
    %cst_9 = arith.constant 0.000000e+00 : f32
    %8 = vector.broadcast %cst_9 : f32 to vector<8x128xf32>
    %cst_10 = arith.constant 0.000000e+00 : f32
    %9 = vector.broadcast %cst_10 : f32 to vector<8x128xf32>
    %c0_i32 = arith.constant 0 : i32
    %c8_i32 = arith.constant 8 : i32
    %10 = arith.muli %c0_i32, %c8_i32 : i32
    %11 = tpu.assume_multiple %10, 8 : i32
    %12 = arith.index_cast %11 : i32 to index
    %c0_11 = arith.constant 0 : index
    %13 = vector.load %arg11[%12, %c0_11] : memref<64x512xf32, #tpu.memory_space<vmem>>, vector<8x512xf32>
    %cst_12 = arith.constant dense<0.000000e+00> : vector<8x512xf32>
    %14 = tpu.matmul %8, %7, %cst_12 {dimension_numbers = #tpu.dot_dimension_numbers<[1], [0], [0], [1], [0, 0, 1, 1], [], []>} : vector<8x128xf32>, vector<128x512xf32>, vector<8x512xf32> -> vector<8x512xf32>
    %15 = arith.addf %13, %14 : vector<8x512xf32>
    %16 = vector.extract_strided_slice %15 {offsets = [0, 0], sizes = [8, 128], strides = [1, 1]} : vector<8x512xf32> to vector<8x128xf32>
    %17 = arith.negf %16 : vector<8x128xf32>
    %18 = math.exp %17 : vector<8x128xf32>
    %cst_13 = arith.constant 1.000000e+00 : f32
    %19 = vector.broadcast %cst_13 : f32 to vector<8x128xf32>
    %20 = arith.addf %19, %18 : vector<8x128xf32>
    %21 = arith.divf %19, %20 : vector<8x128xf32>
    %22 = vector.extract_strided_slice %15 {offsets = [0, 128], sizes = [8, 128], strides = [1, 1]} : vector<8x512xf32> to vector<8x128xf32>
    %23 = arith.negf %22 : vector<8x128xf32>
    %24 = math.exp %23 : vector<8x128xf32>
    %cst_14 = arith.constant 1.000000e+00 : f32
    %25 = vector.broadcast %cst_14 : f32 to vector<8x128xf32>
    %26 = arith.addf %25, %24 : vector<8x128xf32>
    %27 = arith.divf %25, %26 : vector<8x128xf32>
    %28 = vector.extract_strided_slice %15 {offsets = [0, 256], sizes = [8, 128], strides = [1, 1]} : vector<8x512xf32> to vector<8x128xf32>
    %29 = math.tanh %28 : vector<8x128xf32>
    %30 = vector.extract_strided_slice %15 {offsets = [0, 384], sizes = [8, 128], strides = [1, 1]} : vector<8x512xf32> to vector<8x128xf32>
    %31 = arith.negf %30 : vector<8x128xf32>
    %32 = math.exp %31 : vector<8x128xf32>
    %cst_15 = arith.constant 1.000000e+00 : f32
    %33 = vector.broadcast %cst_15 : f32 to vector<8x128xf32>
    %34 = arith.addf %33, %32 : vector<8x128xf32>
    %35 = arith.divf %33, %34 : vector<8x128xf32>
    %36 = arith.mulf %27, %9 : vector<8x128xf32>
    %37 = arith.mulf %21, %29 : vector<8x128xf32>
    %38 = arith.addf %36, %37 : vector<8x128xf32>
    %39 = math.tanh %38 : vector<8x128xf32>
    %40 = arith.mulf %35, %39 : vector<8x128xf32>
    %41 = arith.index_cast %11 : i32 to index
    %c0_16 = arith.constant 0 : index
    %42 = vector.load %arg10[%41, %c0_16] : memref<64x128xf32, #tpu.memory_space<vmem>>, vector<8x128xf32>
    tpu.vector_store %arg10[%41, %c0_16], %40 {strides = array<i32>} : memref<64x128xf32, #tpu.memory_space<vmem>>, vector<8x128xf32>,
    %c1_i32 = arith.constant 1 : i32
    %c8_i32_17 = arith.constant 8 : i32
    %43 = arith.muli %c1_i32, %c8_i32_17 : i32
    %44 = tpu.assume_multiple %43, 8 : i32
    %45 = arith.index_cast %44 : i32 to index
    %c0_18 = arith.constant 0 : index
    %46 = vector.load %arg11[%45, %c0_18] : memref<64x512xf32, #tpu.memory_space<vmem>>, vector<8x512xf32>
    %cst_19 = arith.constant dense<0.000000e+00> : vector<8x512xf32>
    %47 = tpu.matmul %40, %7, %cst_19 {dimension_numbers = #tpu.dot_dimension_numbers<[1], [0], [0], [1], [0, 0, 1, 1], [], []>} : vector<8x128xf32>, vector<128x512xf32>, vector<8x512xf32> -> vector<8x512xf32>
    %48 = arith.addf %46, %47 : vector<8x512xf32>
    %49 = vector.extract_strided_slice %48 {offsets = [0, 0], sizes = [8, 128], strides = [1, 1]} : vector<8x512xf32> to vector<8x128xf32>
    %50 = arith.negf %49 : vector<8x128xf32>
    %51 = math.exp %50 : vector<8x128xf32>
    %cst_20 = arith.constant 1.000000e+00 : f32
    %52 = vector.broadcast %cst_20 : f32 to vector<8x128xf32>
    %53 = arith.addf %52, %51 : vector<8x128xf32>
    %54 = arith.divf %52, %53 : vector<8x128xf32>
    %55 = vector.extract_strided_slice %48 {offsets = [0, 128], sizes = [8, 128], strides = [1, 1]} : vector<8x512xf32> to vector<8x128xf32>
    %56 = arith.negf %55 : vector<8x128xf32>
    %57 = math.exp %56 : vector<8x128xf32>
    %cst_21 = arith.constant 1.000000e+00 : f32
    %58 = vector.broadcast %cst_21 : f32 to vector<8x128xf32>
    %59 = arith.addf %58, %57 : vector<8x128xf32>
    %60 = arith.divf %58, %59 : vector<8x128xf32>
    %61 = vector.extract_strided_slice %48 {offsets = [0, 256], sizes = [8, 128], strides = [1, 1]} : vector<8x512xf32> to vector<8x128xf32>
    %62 = math.tanh %61 : vector<8x128xf32>
    %63 = vector.extract_strided_slice %48 {offsets = [0, 384], sizes = [8, 128], strides = [1, 1]} : vector<8x512xf32> to vector<8x128xf32>
    %64 = arith.negf %63 : vector<8x128xf32>
    %65 = math.exp %64 : vector<8x128xf32>
    %cst_22 = arith.constant 1.000000e+00 : f32
    %66 = vector.broadcast %cst_22 : f32 to vector<8x128xf32>
    %67 = arith.addf %66, %65 : vector<8x128xf32>
    %68 = arith.divf %66, %67 : vector<8x128xf32>
    %69 = arith.mulf %60, %38 : vector<8x128xf32>
    %70 = arith.mulf %54, %62 : vector<8x128xf32>
    %71 = arith.addf %69, %70 : vector<8x128xf32>
    %72 = math.tanh %71 : vector<8x128xf32>
    %73 = arith.mulf %68, %72 : vector<8x128xf32>
    %74 = arith.index_cast %44 : i32 to index
    %c0_23 = arith.constant 0 : index
    %75 = vector.load %arg10[%74, %c0_23] : memref<64x128xf32, #tpu.memory_space<vmem>>, vector<8x128xf32>
    tpu.vector_store %arg10[%74, %c0_23], %73 {strides = array<i32>} : memref<64x128xf32, #tpu.memory_space<vmem>>, vector<8x128xf32>,
    %c2_i32 = arith.constant 2 : i32
    %c8_i32_24 = arith.constant 8 : i32
    %76 = arith.muli %c2_i32, %c8_i32_24 : i32
    %77 = tpu.assume_multiple %76, 8 : i32
    %78 = arith.index_cast %77 : i32 to index
    %c0_25 = arith.constant 0 : index
    %79 = vector.load %arg11[%78, %c0_25] : memref<64x512xf32, #tpu.memory_space<vmem>>, vector<8x512xf32>
    %cst_26 = arith.constant dense<0.000000e+00> : vector<8x512xf32>
    %80 = tpu.matmul %73, %7, %cst_26 {dimension_numbers = #tpu.dot_dimension_numbers<[1], [0], [0], [1], [0, 0, 1, 1], [], []>} : vector<8x128xf32>, vector<128x512xf32>, vector<8x512xf32> -> vector<8x512xf32>
    %81 = arith.addf %79, %80 : vector<8x512xf32>
    %82 = vector.extract_strided_slice %81 {offsets = [0, 0], sizes = [8, 128], strides = [1, 1]} : vector<8x512xf32> to vector<8x128xf32>
    %83 = arith.negf %82 : vector<8x128xf32>
    %84 = math.exp %83 : vector<8x128xf32>
    %cst_27 = arith.constant 1.000000e+00 : f32
    %85 = vector.broadcast %cst_27 : f32 to vector<8x128xf32>
    %86 = arith.addf %85, %84 : vector<8x128xf32>
    %87 = arith.divf %85, %86 : vector<8x128xf32>
    %88 = vector.extract_strided_slice %81 {offsets = [0, 128], sizes = [8, 128], strides = [1, 1]} : vector<8x512xf32> to vector<8x128xf32>
    %89 = arith.negf %88 : vector<8x128xf32>
    %90 = math.exp %89 : vector<8x128xf32>
    %cst_28 = arith.constant 1.000000e+00 : f32
    %91 = vector.broadcast %cst_28 : f32 to vector<8x128xf32>
    %92 = arith.addf %91, %90 : vector<8x128xf32>
    %93 = arith.divf %91, %92 : vector<8x128xf32>
    %94 = vector.extract_strided_slice %81 {offsets = [0, 256], sizes = [8, 128], strides = [1, 1]} : vector<8x512xf32> to vector<8x128xf32>
    %95 = math.tanh %94 : vector<8x128xf32>
    %96 = vector.extract_strided_slice %81 {offsets = [0, 384], sizes = [8, 128], strides = [1, 1]} : vector<8x512xf32> to vector<8x128xf32>
    %97 = arith.negf %96 : vector<8x128xf32>
    %98 = math.exp %97 : vector<8x128xf32>
    %cst_29 = arith.constant 1.000000e+00 : f32
    %99 = vector.broadcast %cst_29 : f32 to vector<8x128xf32>
    %100 = arith.addf %99, %98 : vector<8x128xf32>
    %101 = arith.divf %99, %100 : vector<8x128xf32>
    %102 = arith.mulf %93, %71 : vector<8x128xf32>
    %103 = arith.mulf %87, %95 : vector<8x128xf32>
    %104 = arith.addf %102, %103 : vector<8x128xf32>
    %105 = math.tanh %104 : vector<8x128xf32>
    %106 = arith.mulf %101, %105 : vector<8x128xf32>
    %107 = arith.index_cast %77 : i32 to index
    %c0_30 = arith.constant 0 : index
    %108 = vector.load %arg10[%107, %c0_30] : memref<64x128xf32, #tpu.memory_space<vmem>>, vector<8x128xf32>
    tpu.vector_store %arg10[%107, %c0_30], %106 {strides = array<i32>} : memref<64x128xf32, #tpu.memory_space<vmem>>, vector<8x128xf32>,
    %c3_i32 = arith.constant 3 : i32
    %c8_i32_31 = arith.constant 8 : i32
    %109 = arith.muli %c3_i32, %c8_i32_31 : i32
    %110 = tpu.assume_multiple %109, 8 : i32
    %111 = arith.index_cast %110 : i32 to index
    %c0_32 = arith.constant 0 : index
    %112 = vector.load %arg11[%111, %c0_32] : memref<64x512xf32, #tpu.memory_space<vmem>>, vector<8x512xf32>
    %cst_33 = arith.constant dense<0.000000e+00> : vector<8x512xf32>
    %113 = tpu.matmul %106, %7, %cst_33 {dimension_numbers = #tpu.dot_dimension_numbers<[1], [0], [0], [1], [0, 0, 1, 1], [], []>} : vector<8x128xf32>, vector<128x512xf32>, vector<8x512xf32> -> vector<8x512xf32>
    %114 = arith.addf %112, %113 : vector<8x512xf32>
    %115 = vector.extract_strided_slice %114 {offsets = [0, 0], sizes = [8, 128], strides = [1, 1]} : vector<8x512xf32> to vector<8x128xf32>
    %116 = arith.negf %115 : vector<8x128xf32>
    %117 = math.exp %116 : vector<8x128xf32>
    %cst_34 = arith.constant 1.000000e+00 : f32
    %118 = vector.broadcast %cst_34 : f32 to vector<8x128xf32>
    %119 = arith.addf %118, %117 : vector<8x128xf32>
    %120 = arith.divf %118, %119 : vector<8x128xf32>
    %121 = vector.extract_strided_slice %114 {offsets = [0, 128], sizes = [8, 128], strides = [1, 1]} : vector<8x512xf32> to vector<8x128xf32>
    %122 = arith.negf %121 : vector<8x128xf32>
    %123 = math.exp %122 : vector<8x128xf32>
    %cst_35 = arith.constant 1.000000e+00 : f32
    %124 = vector.broadcast %cst_35 : f32 to vector<8x128xf32>
    %125 = arith.addf %124, %123 : vector<8x128xf32>
    %126 = arith.divf %124, %125 : vector<8x128xf32>
    %127 = vector.extract_strided_slice %114 {offsets = [0, 256], sizes = [8, 128], strides = [1, 1]} : vector<8x512xf32> to vector<8x128xf32>
    %128 = math.tanh %127 : vector<8x128xf32>
    %129 = vector.extract_strided_slice %114 {offsets = [0, 384], sizes = [8, 128], strides = [1, 1]} : vector<8x512xf32> to vector<8x128xf32>
    %130 = arith.negf %129 : vector<8x128xf32>
    %131 = math.exp %130 : vector<8x128xf32>
    %cst_36 = arith.constant 1.000000e+00 : f32
    %132 = vector.broadcast %cst_36 : f32 to vector<8x128xf32>
    %133 = arith.addf %132, %131 : vector<8x128xf32>
    %134 = arith.divf %132, %133 : vector<8x128xf32>
    %135 = arith.mulf %126, %104 : vector<8x128xf32>
    %136 = arith.mulf %120, %128 : vector<8x128xf32>
    %137 = arith.addf %135, %136 : vector<8x128xf32>
    %138 = math.tanh %137 : vector<8x128xf32>
    %139 = arith.mulf %134, %138 : vector<8x128xf32>
    %140 = arith.index_cast %110 : i32 to index
    %c0_37 = arith.constant 0 : index
    %141 = vector.load %arg10[%140, %c0_37] : memref<64x128xf32, #tpu.memory_space<vmem>>, vector<8x128xf32>
    tpu.vector_store %arg10[%140, %c0_37], %139 {strides = array<i32>} : memref<64x128xf32, #tpu.memory_space<vmem>>, vector<8x128xf32>,
    %c4_i32 = arith.constant 4 : i32
    %c8_i32_38 = arith.constant 8 : i32
    %142 = arith.muli %c4_i32, %c8_i32_38 : i32
    %143 = tpu.assume_multiple %142, 8 : i32
    %144 = arith.index_cast %143 : i32 to index
    %c0_39 = arith.constant 0 : index
    %145 = vector.load %arg11[%144, %c0_39] : memref<64x512xf32, #tpu.memory_space<vmem>>, vector<8x512xf32>
    %cst_40 = arith.constant dense<0.000000e+00> : vector<8x512xf32>
    %146 = tpu.matmul %139, %7, %cst_40 {dimension_numbers = #tpu.dot_dimension_numbers<[1], [0], [0], [1], [0, 0, 1, 1], [], []>} : vector<8x128xf32>, vector<128x512xf32>, vector<8x512xf32> -> vector<8x512xf32>
    %147 = arith.addf %145, %146 : vector<8x512xf32>
    %148 = vector.extract_strided_slice %147 {offsets = [0, 0], sizes = [8, 128], strides = [1, 1]} : vector<8x512xf32> to vector<8x128xf32>
    %149 = arith.negf %148 : vector<8x128xf32>
    %150 = math.exp %149 : vector<8x128xf32>
    %cst_41 = arith.constant 1.000000e+00 : f32
    %151 = vector.broadcast %cst_41 : f32 to vector<8x128xf32>
    %152 = arith.addf %151, %150 : vector<8x128xf32>
    %153 = arith.divf %151, %152 : vector<8x128xf32>
    %154 = vector.extract_strided_slice %147 {offsets = [0, 128], sizes = [8, 128], strides = [1, 1]} : vector<8x512xf32> to vector<8x128xf32>
    %155 = arith.negf %154 : vector<8x128xf32>
    %156 = math.exp %155 : vector<8x128xf32>
    %cst_42 = arith.constant 1.000000e+00 : f32
    %157 = vector.broadcast %cst_42 : f32 to vector<8x128xf32>
    %158 = arith.addf %157, %156 : vector<8x128xf32>
    %159 = arith.divf %157, %158 : vector<8x128xf32>
    %160 = vector.extract_strided_slice %147 {offsets = [0, 256], sizes = [8, 128], strides = [1, 1]} : vector<8x512xf32> to vector<8x128xf32>
    %161 = math.tanh %160 : vector<8x128xf32>
    %162 = vector.extract_strided_slice %147 {offsets = [0, 384], sizes = [8, 128], strides = [1, 1]} : vector<8x512xf32> to vector<8x128xf32>
    %163 = arith.negf %162 : vector<8x128xf32>
    %164 = math.exp %163 : vector<8x128xf32>
    %cst_43 = arith.constant 1.000000e+00 : f32
    %165 = vector.broadcast %cst_43 : f32 to vector<8x128xf32>
    %166 = arith.addf %165, %164 : vector<8x128xf32>
    %167 = arith.divf %165, %166 : vector<8x128xf32>
    %168 = arith.mulf %159, %137 : vector<8x128xf32>
    %169 = arith.mulf %153, %161 : vector<8x128xf32>
    %170 = arith.addf %168, %169 : vector<8x128xf32>
    %171 = math.tanh %170 : vector<8x128xf32>
    %172 = arith.mulf %167, %171 : vector<8x128xf32>
    %173 = arith.index_cast %143 : i32 to index
    %c0_44 = arith.constant 0 : index
    %174 = vector.load %arg10[%173, %c0_44] : memref<64x128xf32, #tpu.memory_space<vmem>>, vector<8x128xf32>
    tpu.vector_store %arg10[%173, %c0_44], %172 {strides = array<i32>} : memref<64x128xf32, #tpu.memory_space<vmem>>, vector<8x128xf32>,
    %c5_i32 = arith.constant 5 : i32
    %c8_i32_45 = arith.constant 8 : i32
    %175 = arith.muli %c5_i32, %c8_i32_45 : i32
    %176 = tpu.assume_multiple %175, 8 : i32
    %177 = arith.index_cast %176 : i32 to index
    %c0_46 = arith.constant 0 : index
    %178 = vector.load %arg11[%177, %c0_46] : memref<64x512xf32, #tpu.memory_space<vmem>>, vector<8x512xf32>
    %cst_47 = arith.constant dense<0.000000e+00> : vector<8x512xf32>
    %179 = tpu.matmul %172, %7, %cst_47 {dimension_numbers = #tpu.dot_dimension_numbers<[1], [0], [0], [1], [0, 0, 1, 1], [], []>} : vector<8x128xf32>, vector<128x512xf32>, vector<8x512xf32> -> vector<8x512xf32>
    %180 = arith.addf %178, %179 : vector<8x512xf32>
    %181 = vector.extract_strided_slice %180 {offsets = [0, 0], sizes = [8, 128], strides = [1, 1]} : vector<8x512xf32> to vector<8x128xf32>
    %182 = arith.negf %181 : vector<8x128xf32>
    %183 = math.exp %182 : vector<8x128xf32>
    %cst_48 = arith.constant 1.000000e+00 : f32
    %184 = vector.broadcast %cst_48 : f32 to vector<8x128xf32>
    %185 = arith.addf %184, %183 : vector<8x128xf32>
    %186 = arith.divf %184, %185 : vector<8x128xf32>
    %187 = vector.extract_strided_slice %180 {offsets = [0, 128], sizes = [8, 128], strides = [1, 1]} : vector<8x512xf32> to vector<8x128xf32>
    %188 = arith.negf %187 : vector<8x128xf32>
    %189 = math.exp %188 : vector<8x128xf32>
    %cst_49 = arith.constant 1.000000e+00 : f32
    %190 = vector.broadcast %cst_49 : f32 to vector<8x128xf32>
    %191 = arith.addf %190, %189 : vector<8x128xf32>
    %192 = arith.divf %190, %191 : vector<8x128xf32>
    %193 = vector.extract_strided_slice %180 {offsets = [0, 256], sizes = [8, 128], strides = [1, 1]} : vector<8x512xf32> to vector<8x128xf32>
    %194 = math.tanh %193 : vector<8x128xf32>
    %195 = vector.extract_strided_slice %180 {offsets = [0, 384], sizes = [8, 128], strides = [1, 1]} : vector<8x512xf32> to vector<8x128xf32>
    %196 = arith.negf %195 : vector<8x128xf32>
    %197 = math.exp %196 : vector<8x128xf32>
    %cst_50 = arith.constant 1.000000e+00 : f32
    %198 = vector.broadcast %cst_50 : f32 to vector<8x128xf32>
    %199 = arith.addf %198, %197 : vector<8x128xf32>
    %200 = arith.divf %198, %199 : vector<8x128xf32>
    %201 = arith.mulf %192, %170 : vector<8x128xf32>
    %202 = arith.mulf %186, %194 : vector<8x128xf32>
    %203 = arith.addf %201, %202 : vector<8x128xf32>
    %204 = math.tanh %203 : vector<8x128xf32>
    %205 = arith.mulf %200, %204 : vector<8x128xf32>
    %206 = arith.index_cast %176 : i32 to index
    %c0_51 = arith.constant 0 : index
    %207 = vector.load %arg10[%206, %c0_51] : memref<64x128xf32, #tpu.memory_space<vmem>>, vector<8x128xf32>
    tpu.vector_store %arg10[%206, %c0_51], %205 {strides = array<i32>} : memref<64x128xf32, #tpu.memory_space<vmem>>, vector<8x128xf32>,
    %c6_i32 = arith.constant 6 : i32
    %c8_i32_52 = arith.constant 8 : i32
    %208 = arith.muli %c6_i32, %c8_i32_52 : i32
    %209 = tpu.assume_multiple %208, 8 : i32
    %210 = arith.index_cast %209 : i32 to index
    %c0_53 = arith.constant 0 : index
    %211 = vector.load %arg11[%210, %c0_53] : memref<64x512xf32, #tpu.memory_space<vmem>>, vector<8x512xf32>
    %cst_54 = arith.constant dense<0.000000e+00> : vector<8x512xf32>
    %212 = tpu.matmul %205, %7, %cst_54 {dimension_numbers = #tpu.dot_dimension_numbers<[1], [0], [0], [1], [0, 0, 1, 1], [], []>} : vector<8x128xf32>, vector<128x512xf32>, vector<8x512xf32> -> vector<8x512xf32>
    %213 = arith.addf %211, %212 : vector<8x512xf32>
    %214 = vector.extract_strided_slice %213 {offsets = [0, 0], sizes = [8, 128], strides = [1, 1]} : vector<8x512xf32> to vector<8x128xf32>
    %215 = arith.negf %214 : vector<8x128xf32>
    %216 = math.exp %215 : vector<8x128xf32>
    %cst_55 = arith.constant 1.000000e+00 : f32
    %217 = vector.broadcast %cst_55 : f32 to vector<8x128xf32>
    %218 = arith.addf %217, %216 : vector<8x128xf32>
    %219 = arith.divf %217, %218 : vector<8x128xf32>
    %220 = vector.extract_strided_slice %213 {offsets = [0, 128], sizes = [8, 128], strides = [1, 1]} : vector<8x512xf32> to vector<8x128xf32>
    %221 = arith.negf %220 : vector<8x128xf32>
    %222 = math.exp %221 : vector<8x128xf32>
    %cst_56 = arith.constant 1.000000e+00 : f32
    %223 = vector.broadcast %cst_56 : f32 to vector<8x128xf32>
    %224 = arith.addf %223, %222 : vector<8x128xf32>
    %225 = arith.divf %223, %224 : vector<8x128xf32>
    %226 = vector.extract_strided_slice %213 {offsets = [0, 256], sizes = [8, 128], strides = [1, 1]} : vector<8x512xf32> to vector<8x128xf32>
    %227 = math.tanh %226 : vector<8x128xf32>
    %228 = vector.extract_strided_slice %213 {offsets = [0, 384], sizes = [8, 128], strides = [1, 1]} : vector<8x512xf32> to vector<8x128xf32>
    %229 = arith.negf %228 : vector<8x128xf32>
    %230 = math.exp %229 : vector<8x128xf32>
    %cst_57 = arith.constant 1.000000e+00 : f32
    %231 = vector.broadcast %cst_57 : f32 to vector<8x128xf32>
    %232 = arith.addf %231, %230 : vector<8x128xf32>
    %233 = arith.divf %231, %232 : vector<8x128xf32>
    %234 = arith.mulf %225, %203 : vector<8x128xf32>
    %235 = arith.mulf %219, %227 : vector<8x128xf32>
    %236 = arith.addf %234, %235 : vector<8x128xf32>
    %237 = math.tanh %236 : vector<8x128xf32>
    %238 = arith.mulf %233, %237 : vector<8x128xf32>
    %239 = arith.index_cast %209 : i32 to index
    %c0_58 = arith.constant 0 : index
    %240 = vector.load %arg10[%239, %c0_58] : memref<64x128xf32, #tpu.memory_space<vmem>>, vector<8x128xf32>
    tpu.vector_store %arg10[%239, %c0_58], %238 {strides = array<i32>} : memref<64x128xf32, #tpu.memory_space<vmem>>, vector<8x128xf32>,
    %c7_i32 = arith.constant 7 : i32
    %c8_i32_59 = arith.constant 8 : i32
    %241 = arith.muli %c7_i32, %c8_i32_59 : i32
    %242 = tpu.assume_multiple %241, 8 : i32
    %243 = arith.index_cast %242 : i32 to index
    %c0_60 = arith.constant 0 : index
    %244 = vector.load %arg11[%243, %c0_60] : memref<64x512xf32, #tpu.memory_space<vmem>>, vector<8x512xf32>
    %cst_61 = arith.constant dense<0.000000e+00> : vector<8x512xf32>
    %245 = tpu.matmul %238, %7, %cst_61 {dimension_numbers = #tpu.dot_dimension_numbers<[1], [0], [0], [1], [0, 0, 1, 1], [], []>} : vector<8x128xf32>, vector<128x512xf32>, vector<8x512xf32> -> vector<8x512xf32>
    %246 = arith.addf %244, %245 : vector<8x512xf32>
    %247 = vector.extract_strided_slice %246 {offsets = [0, 0], sizes = [8, 128], strides = [1, 1]} : vector<8x512xf32> to vector<8x128xf32>
    %248 = arith.negf %247 : vector<8x128xf32>
    %249 = math.exp %248 : vector<8x128xf32>
    %cst_62 = arith.constant 1.000000e+00 : f32
    %250 = vector.broadcast %cst_62 : f32 to vector<8x128xf32>
    %251 = arith.addf %250, %249 : vector<8x128xf32>
    %252 = arith.divf %250, %251 : vector<8x128xf32>
    %253 = vector.extract_strided_slice %246 {offsets = [0, 128], sizes = [8, 128], strides = [1, 1]} : vector<8x512xf32> to vector<8x128xf32>
    %254 = arith.negf %253 : vector<8x128xf32>
    %255 = math.exp %254 : vector<8x128xf32>
    %cst_63 = arith.constant 1.000000e+00 : f32
    %256 = vector.broadcast %cst_63 : f32 to vector<8x128xf32>
    %257 = arith.addf %256, %255 : vector<8x128xf32>
    %258 = arith.divf %256, %257 : vector<8x128xf32>
    %259 = vector.extract_strided_slice %246 {offsets = [0, 256], sizes = [8, 128], strides = [1, 1]} : vector<8x512xf32> to vector<8x128xf32>
    %260 = math.tanh %259 : vector<8x128xf32>
    %261 = vector.extract_strided_slice %246 {offsets = [0, 384], sizes = [8, 128], strides = [1, 1]} : vector<8x512xf32> to vector<8x128xf32>
    %262 = arith.negf %261 : vector<8x128xf32>
    %263 = math.exp %262 : vector<8x128xf32>
    %cst_64 = arith.constant 1.000000e+00 : f32
    %264 = vector.broadcast %cst_64 : f32 to vector<8x128xf32>
    %265 = arith.addf %264, %263 : vector<8x128xf32>
    %266 = arith.divf %264, %265 : vector<8x128xf32>
    %267 = arith.mulf %258, %236 : vector<8x128xf32>
    %268 = arith.mulf %252, %260 : vector<8x128xf32>
    %269 = arith.addf %267, %268 : vector<8x128xf32>
    %270 = math.tanh %269 : vector<8x128xf32>
    %271 = arith.mulf %266, %270 : vector<8x128xf32>
    %272 = arith.index_cast %242 : i32 to index
    %c0_65 = arith.constant 0 : index
    %273 = vector.load %arg10[%272, %c0_65] : memref<64x128xf32, #tpu.memory_space<vmem>>, vector<8x128xf32>
    tpu.vector_store %arg10[%272, %c0_65], %271 {strides = array<i32>} : memref<64x128xf32, #tpu.memory_space<vmem>>, vector<8x128xf32>,
    %c8_i32_66 = arith.constant 8 : i32
    %c0_67 = arith.constant 0 : index
    %c0_68 = arith.constant 0 : index
    %c0_69 = arith.constant 0 : index
    %274 = vector.load %arg8[%c0_67, %c0_68, %c0_69] : memref<2x8x128xf32, #tpu.memory_space<vmem>>, vector<1x8x128xf32>
    %275 = vector.shape_cast %274 : vector<1x8x128xf32> to vector<8x128xf32>
    %276 = vector.shape_cast %271 : vector<8x128xf32> to vector<1x8x128xf32>
    tpu.vector_store %arg8[%c0_67, %c0_68, %c0_69], %276 {strides = array<i32>} : memref<2x8x128xf32, #tpu.memory_space<vmem>>, vector<1x8x128xf32>,
    %c0_70 = arith.constant 0 : index
    %c0_71 = arith.constant 0 : index
    %c0_72 = arith.constant 0 : index
    %277 = vector.load %arg9[%c0_70, %c0_71, %c0_72] : memref<2x8x128xf32, #tpu.memory_space<vmem>>, vector<1x8x128xf32>
    %278 = vector.shape_cast %277 : vector<1x8x128xf32> to vector<8x128xf32>
    %279 = vector.shape_cast %269 : vector<8x128xf32> to vector<1x8x128xf32>
    tpu.vector_store %arg9[%c0_70, %c0_71, %c0_72], %279 {strides = array<i32>} : memref<2x8x128xf32, #tpu.memory_space<vmem>>, vector<1x8x128xf32>,
    %c0_73 = arith.constant 0 : index
    %c0_74 = arith.constant 0 : index
    %280 = vector.load %arg10[%c0_73, %c0_74] : memref<64x128xf32, #tpu.memory_space<vmem>>, vector<64x128xf32>
    %c0_75 = arith.constant 0 : index
    %c0_76 = arith.constant 0 : index
    %281 = vector.load %arg5[%c0_75, %c0_76] : memref<128x512xf32, #tpu.memory_space<vmem>>, vector<128x512xf32>
    %cst_77 = arith.constant dense<0.000000e+00> : vector<64x512xf32>
    %282 = tpu.matmul %280, %281, %cst_77 {dimension_numbers = #tpu.dot_dimension_numbers<[1], [0], [0], [1], [0, 0, 1, 1], [], []>} : vector<64x128xf32>, vector<128x512xf32>, vector<64x512xf32> -> vector<64x512xf32>
    %c0_78 = arith.constant 0 : index
    %c0_79 = arith.constant 0 : index
    %283 = vector.load %arg7[%c0_78, %c0_79] : memref<1x512xf32, #tpu.memory_space<vmem>>, vector<1x512xf32>
    %284 = vector.broadcast %283 : vector<1x512xf32> to vector<64x512xf32>
    %285 = arith.addf %282, %284 : vector<64x512xf32>
    %c0_80 = arith.constant 0 : index
    %c0_81 = arith.constant 0 : index
    %286 = vector.load %arg11[%c0_80, %c0_81] : memref<64x512xf32, #tpu.memory_space<vmem>>, vector<64x512xf32>
    tpu.vector_store %arg11[%c0_80, %c0_81], %285 {strides = array<i32>} : memref<64x512xf32, #tpu.memory_space<vmem>>, vector<64x512xf32>,
    %c0_82 = arith.constant 0 : index
    %c0_83 = arith.constant 0 : index
    %287 = vector.load %arg6[%c0_82, %c0_83] : memref<128x512xf32, #tpu.memory_space<vmem>>, vector<128x512xf32>
    %cst_84 = arith.constant 0.000000e+00 : f32
    %288 = vector.broadcast %cst_84 : f32 to vector<8x128xf32>
    %cst_85 = arith.constant 0.000000e+00 : f32
    %289 = vector.broadcast %cst_85 : f32 to vector<8x128xf32>
    %c0_i32_86 = arith.constant 0 : i32
    %c8_i32_87 = arith.constant 8 : i32
    %290 = arith.muli %c0_i32_86, %c8_i32_87 : i32
    %291 = tpu.assume_multiple %290, 8 : i32
    %292 = arith.index_cast %291 : i32 to index
    %c0_88 = arith.constant 0 : index
    %293 = vector.load %arg11[%292, %c0_88] : memref<64x512xf32, #tpu.memory_space<vmem>>, vector<8x512xf32>
    %cst_89 = arith.constant dense<0.000000e+00> : vector<8x512xf32>
    %294 = tpu.matmul %288, %287, %cst_89 {dimension_numbers = #tpu.dot_dimension_numbers<[1], [0], [0], [1], [0, 0, 1, 1], [], []>} : vector<8x128xf32>, vector<128x512xf32>, vector<8x512xf32> -> vector<8x512xf32>
    %295 = arith.addf %293, %294 : vector<8x512xf32>
    %296 = vector.extract_strided_slice %295 {offsets = [0, 0], sizes = [8, 128], strides = [1, 1]} : vector<8x512xf32> to vector<8x128xf32>
    %297 = arith.negf %296 : vector<8x128xf32>
    %298 = math.exp %297 : vector<8x128xf32>
    %cst_90 = arith.constant 1.000000e+00 : f32
    %299 = vector.broadcast %cst_90 : f32 to vector<8x128xf32>
    %300 = arith.addf %299, %298 : vector<8x128xf32>
    %301 = arith.divf %299, %300 : vector<8x128xf32>
    %302 = vector.extract_strided_slice %295 {offsets = [0, 128], sizes = [8, 128], strides = [1, 1]} : vector<8x512xf32> to vector<8x128xf32>
    %303 = arith.negf %302 : vector<8x128xf32>
    %304 = math.exp %303 : vector<8x128xf32>
    %cst_91 = arith.constant 1.000000e+00 : f32
    %305 = vector.broadcast %cst_91 : f32 to vector<8x128xf32>
    %306 = arith.addf %305, %304 : vector<8x128xf32>
    %307 = arith.divf %305, %306 : vector<8x128xf32>
    %308 = vector.extract_strided_slice %295 {offsets = [0, 256], sizes = [8, 128], strides = [1, 1]} : vector<8x512xf32> to vector<8x128xf32>
    %309 = math.tanh %308 : vector<8x128xf32>
    %310 = vector.extract_strided_slice %295 {offsets = [0, 384], sizes = [8, 128], strides = [1, 1]} : vector<8x512xf32> to vector<8x128xf32>
    %311 = arith.negf %310 : vector<8x128xf32>
    %312 = math.exp %311 : vector<8x128xf32>
    %cst_92 = arith.constant 1.000000e+00 : f32
    %313 = vector.broadcast %cst_92 : f32 to vector<8x128xf32>
    %314 = arith.addf %313, %312 : vector<8x128xf32>
    %315 = arith.divf %313, %314 : vector<8x128xf32>
    %316 = arith.mulf %307, %289 : vector<8x128xf32>
    %317 = arith.mulf %301, %309 : vector<8x128xf32>
    %318 = arith.addf %316, %317 : vector<8x128xf32>
    %319 = math.tanh %318 : vector<8x128xf32>
    %320 = arith.mulf %315, %319 : vector<8x128xf32>
    %c1_i32_93 = arith.constant 1 : i32
    %c8_i32_94 = arith.constant 8 : i32
    %321 = arith.muli %c1_i32_93, %c8_i32_94 : i32
    %322 = tpu.assume_multiple %321, 8 : i32
    %323 = arith.index_cast %322 : i32 to index
    %c0_95 = arith.constant 0 : index
    %324 = vector.load %arg11[%323, %c0_95] : memref<64x512xf32, #tpu.memory_space<vmem>>, vector<8x512xf32>
    %cst_96 = arith.constant dense<0.000000e+00> : vector<8x512xf32>
    %325 = tpu.matmul %320, %287, %cst_96 {dimension_numbers = #tpu.dot_dimension_numbers<[1], [0], [0], [1], [0, 0, 1, 1], [], []>} : vector<8x128xf32>, vector<128x512xf32>, vector<8x512xf32> -> vector<8x512xf32>
    %326 = arith.addf %324, %325 : vector<8x512xf32>
    %327 = vector.extract_strided_slice %326 {offsets = [0, 0], sizes = [8, 128], strides = [1, 1]} : vector<8x512xf32> to vector<8x128xf32>
    %328 = arith.negf %327 : vector<8x128xf32>
    %329 = math.exp %328 : vector<8x128xf32>
    %cst_97 = arith.constant 1.000000e+00 : f32
    %330 = vector.broadcast %cst_97 : f32 to vector<8x128xf32>
    %331 = arith.addf %330, %329 : vector<8x128xf32>
    %332 = arith.divf %330, %331 : vector<8x128xf32>
    %333 = vector.extract_strided_slice %326 {offsets = [0, 128], sizes = [8, 128], strides = [1, 1]} : vector<8x512xf32> to vector<8x128xf32>
    %334 = arith.negf %333 : vector<8x128xf32>
    %335 = math.exp %334 : vector<8x128xf32>
    %cst_98 = arith.constant 1.000000e+00 : f32
    %336 = vector.broadcast %cst_98 : f32 to vector<8x128xf32>
    %337 = arith.addf %336, %335 : vector<8x128xf32>
    %338 = arith.divf %336, %337 : vector<8x128xf32>
    %339 = vector.extract_strided_slice %326 {offsets = [0, 256], sizes = [8, 128], strides = [1, 1]} : vector<8x512xf32> to vector<8x128xf32>
    %340 = math.tanh %339 : vector<8x128xf32>
    %341 = vector.extract_strided_slice %326 {offsets = [0, 384], sizes = [8, 128], strides = [1, 1]} : vector<8x512xf32> to vector<8x128xf32>
    %342 = arith.negf %341 : vector<8x128xf32>
    %343 = math.exp %342 : vector<8x128xf32>
    %cst_99 = arith.constant 1.000000e+00 : f32
    %344 = vector.broadcast %cst_99 : f32 to vector<8x128xf32>
    %345 = arith.addf %344, %343 : vector<8x128xf32>
    %346 = arith.divf %344, %345 : vector<8x128xf32>
    %347 = arith.mulf %338, %318 : vector<8x128xf32>
    %348 = arith.mulf %332, %340 : vector<8x128xf32>
    %349 = arith.addf %347, %348 : vector<8x128xf32>
    %350 = math.tanh %349 : vector<8x128xf32>
    %351 = arith.mulf %346, %350 : vector<8x128xf32>
    %c2_i32_100 = arith.constant 2 : i32
    %c8_i32_101 = arith.constant 8 : i32
    %352 = arith.muli %c2_i32_100, %c8_i32_101 : i32
    %353 = tpu.assume_multiple %352, 8 : i32
    %354 = arith.index_cast %353 : i32 to index
    %c0_102 = arith.constant 0 : index
    %355 = vector.load %arg11[%354, %c0_102] : memref<64x512xf32, #tpu.memory_space<vmem>>, vector<8x512xf32>
    %cst_103 = arith.constant dense<0.000000e+00> : vector<8x512xf32>
    %356 = tpu.matmul %351, %287, %cst_103 {dimension_numbers = #tpu.dot_dimension_numbers<[1], [0], [0], [1], [0, 0, 1, 1], [], []>} : vector<8x128xf32>, vector<128x512xf32>, vector<8x512xf32> -> vector<8x512xf32>
    %357 = arith.addf %355, %356 : vector<8x512xf32>
    %358 = vector.extract_strided_slice %357 {offsets = [0, 0], sizes = [8, 128], strides = [1, 1]} : vector<8x512xf32> to vector<8x128xf32>
    %359 = arith.negf %358 : vector<8x128xf32>
    %360 = math.exp %359 : vector<8x128xf32>
    %cst_104 = arith.constant 1.000000e+00 : f32
    %361 = vector.broadcast %cst_104 : f32 to vector<8x128xf32>
    %362 = arith.addf %361, %360 : vector<8x128xf32>
    %363 = arith.divf %361, %362 : vector<8x128xf32>
    %364 = vector.extract_strided_slice %357 {offsets = [0, 128], sizes = [8, 128], strides = [1, 1]} : vector<8x512xf32> to vector<8x128xf32>
    %365 = arith.negf %364 : vector<8x128xf32>
    %366 = math.exp %365 : vector<8x128xf32>
    %cst_105 = arith.constant 1.000000e+00 : f32
    %367 = vector.broadcast %cst_105 : f32 to vector<8x128xf32>
    %368 = arith.addf %367, %366 : vector<8x128xf32>
    %369 = arith.divf %367, %368 : vector<8x128xf32>
    %370 = vector.extract_strided_slice %357 {offsets = [0, 256], sizes = [8, 128], strides = [1, 1]} : vector<8x512xf32> to vector<8x128xf32>
    %371 = math.tanh %370 : vector<8x128xf32>
    %372 = vector.extract_strided_slice %357 {offsets = [0, 384], sizes = [8, 128], strides = [1, 1]} : vector<8x512xf32> to vector<8x128xf32>
    %373 = arith.negf %372 : vector<8x128xf32>
    %374 = math.exp %373 : vector<8x128xf32>
    %cst_106 = arith.constant 1.000000e+00 : f32
    %375 = vector.broadcast %cst_106 : f32 to vector<8x128xf32>
    %376 = arith.addf %375, %374 : vector<8x128xf32>
    %377 = arith.divf %375, %376 : vector<8x128xf32>
    %378 = arith.mulf %369, %349 : vector<8x128xf32>
    %379 = arith.mulf %363, %371 : vector<8x128xf32>
    %380 = arith.addf %378, %379 : vector<8x128xf32>
    %381 = math.tanh %380 : vector<8x128xf32>
    %382 = arith.mulf %377, %381 : vector<8x128xf32>
    %c3_i32_107 = arith.constant 3 : i32
    %c8_i32_108 = arith.constant 8 : i32
    %383 = arith.muli %c3_i32_107, %c8_i32_108 : i32
    %384 = tpu.assume_multiple %383, 8 : i32
    %385 = arith.index_cast %384 : i32 to index
    %c0_109 = arith.constant 0 : index
    %386 = vector.load %arg11[%385, %c0_109] : memref<64x512xf32, #tpu.memory_space<vmem>>, vector<8x512xf32>
    %cst_110 = arith.constant dense<0.000000e+00> : vector<8x512xf32>
    %387 = tpu.matmul %382, %287, %cst_110 {dimension_numbers = #tpu.dot_dimension_numbers<[1], [0], [0], [1], [0, 0, 1, 1], [], []>} : vector<8x128xf32>, vector<128x512xf32>, vector<8x512xf32> -> vector<8x512xf32>
    %388 = arith.addf %386, %387 : vector<8x512xf32>
    %389 = vector.extract_strided_slice %388 {offsets = [0, 0], sizes = [8, 128], strides = [1, 1]} : vector<8x512xf32> to vector<8x128xf32>
    %390 = arith.negf %389 : vector<8x128xf32>
    %391 = math.exp %390 : vector<8x128xf32>
    %cst_111 = arith.constant 1.000000e+00 : f32
    %392 = vector.broadcast %cst_111 : f32 to vector<8x128xf32>
    %393 = arith.addf %392, %391 : vector<8x128xf32>
    %394 = arith.divf %392, %393 : vector<8x128xf32>
    %395 = vector.extract_strided_slice %388 {offsets = [0, 128], sizes = [8, 128], strides = [1, 1]} : vector<8x512xf32> to vector<8x128xf32>
    %396 = arith.negf %395 : vector<8x128xf32>
    %397 = math.exp %396 : vector<8x128xf32>
    %cst_112 = arith.constant 1.000000e+00 : f32
    %398 = vector.broadcast %cst_112 : f32 to vector<8x128xf32>
    %399 = arith.addf %398, %397 : vector<8x128xf32>
    %400 = arith.divf %398, %399 : vector<8x128xf32>
    %401 = vector.extract_strided_slice %388 {offsets = [0, 256], sizes = [8, 128], strides = [1, 1]} : vector<8x512xf32> to vector<8x128xf32>
    %402 = math.tanh %401 : vector<8x128xf32>
    %403 = vector.extract_strided_slice %388 {offsets = [0, 384], sizes = [8, 128], strides = [1, 1]} : vector<8x512xf32> to vector<8x128xf32>
    %404 = arith.negf %403 : vector<8x128xf32>
    %405 = math.exp %404 : vector<8x128xf32>
    %cst_113 = arith.constant 1.000000e+00 : f32
    %406 = vector.broadcast %cst_113 : f32 to vector<8x128xf32>
    %407 = arith.addf %406, %405 : vector<8x128xf32>
    %408 = arith.divf %406, %407 : vector<8x128xf32>
    %409 = arith.mulf %400, %380 : vector<8x128xf32>
    %410 = arith.mulf %394, %402 : vector<8x128xf32>
    %411 = arith.addf %409, %410 : vector<8x128xf32>
    %412 = math.tanh %411 : vector<8x128xf32>
    %413 = arith.mulf %408, %412 : vector<8x128xf32>
    %c4_i32_114 = arith.constant 4 : i32
    %c8_i32_115 = arith.constant 8 : i32
    %414 = arith.muli %c4_i32_114, %c8_i32_115 : i32
    %415 = tpu.assume_multiple %414, 8 : i32
    %416 = arith.index_cast %415 : i32 to index
    %c0_116 = arith.constant 0 : index
    %417 = vector.load %arg11[%416, %c0_116] : memref<64x512xf32, #tpu.memory_space<vmem>>, vector<8x512xf32>
    %cst_117 = arith.constant dense<0.000000e+00> : vector<8x512xf32>
    %418 = tpu.matmul %413, %287, %cst_117 {dimension_numbers = #tpu.dot_dimension_numbers<[1], [0], [0], [1], [0, 0, 1, 1], [], []>} : vector<8x128xf32>, vector<128x512xf32>, vector<8x512xf32> -> vector<8x512xf32>
    %419 = arith.addf %417, %418 : vector<8x512xf32>
    %420 = vector.extract_strided_slice %419 {offsets = [0, 0], sizes = [8, 128], strides = [1, 1]} : vector<8x512xf32> to vector<8x128xf32>
    %421 = arith.negf %420 : vector<8x128xf32>
    %422 = math.exp %421 : vector<8x128xf32>
    %cst_118 = arith.constant 1.000000e+00 : f32
    %423 = vector.broadcast %cst_118 : f32 to vector<8x128xf32>
    %424 = arith.addf %423, %422 : vector<8x128xf32>
    %425 = arith.divf %423, %424 : vector<8x128xf32>
    %426 = vector.extract_strided_slice %419 {offsets = [0, 128], sizes = [8, 128], strides = [1, 1]} : vector<8x512xf32> to vector<8x128xf32>
    %427 = arith.negf %426 : vector<8x128xf32>
    %428 = math.exp %427 : vector<8x128xf32>
    %cst_119 = arith.constant 1.000000e+00 : f32
    %429 = vector.broadcast %cst_119 : f32 to vector<8x128xf32>
    %430 = arith.addf %429, %428 : vector<8x128xf32>
    %431 = arith.divf %429, %430 : vector<8x128xf32>
    %432 = vector.extract_strided_slice %419 {offsets = [0, 256], sizes = [8, 128], strides = [1, 1]} : vector<8x512xf32> to vector<8x128xf32>
    %433 = math.tanh %432 : vector<8x128xf32>
    %434 = vector.extract_strided_slice %419 {offsets = [0, 384], sizes = [8, 128], strides = [1, 1]} : vector<8x512xf32> to vector<8x128xf32>
    %435 = arith.negf %434 : vector<8x128xf32>
    %436 = math.exp %435 : vector<8x128xf32>
    %cst_120 = arith.constant 1.000000e+00 : f32
    %437 = vector.broadcast %cst_120 : f32 to vector<8x128xf32>
    %438 = arith.addf %437, %436 : vector<8x128xf32>
    %439 = arith.divf %437, %438 : vector<8x128xf32>
    %440 = arith.mulf %431, %411 : vector<8x128xf32>
    %441 = arith.mulf %425, %433 : vector<8x128xf32>
    %442 = arith.addf %440, %441 : vector<8x128xf32>
    %443 = math.tanh %442 : vector<8x128xf32>
    %444 = arith.mulf %439, %443 : vector<8x128xf32>
    %c5_i32_121 = arith.constant 5 : i32
    %c8_i32_122 = arith.constant 8 : i32
    %445 = arith.muli %c5_i32_121, %c8_i32_122 : i32
    %446 = tpu.assume_multiple %445, 8 : i32
    %447 = arith.index_cast %446 : i32 to index
    %c0_123 = arith.constant 0 : index
    %448 = vector.load %arg11[%447, %c0_123] : memref<64x512xf32, #tpu.memory_space<vmem>>, vector<8x512xf32>
    %cst_124 = arith.constant dense<0.000000e+00> : vector<8x512xf32>
    %449 = tpu.matmul %444, %287, %cst_124 {dimension_numbers = #tpu.dot_dimension_numbers<[1], [0], [0], [1], [0, 0, 1, 1], [], []>} : vector<8x128xf32>, vector<128x512xf32>, vector<8x512xf32> -> vector<8x512xf32>
    %450 = arith.addf %448, %449 : vector<8x512xf32>
    %451 = vector.extract_strided_slice %450 {offsets = [0, 0], sizes = [8, 128], strides = [1, 1]} : vector<8x512xf32> to vector<8x128xf32>
    %452 = arith.negf %451 : vector<8x128xf32>
    %453 = math.exp %452 : vector<8x128xf32>
    %cst_125 = arith.constant 1.000000e+00 : f32
    %454 = vector.broadcast %cst_125 : f32 to vector<8x128xf32>
    %455 = arith.addf %454, %453 : vector<8x128xf32>
    %456 = arith.divf %454, %455 : vector<8x128xf32>
    %457 = vector.extract_strided_slice %450 {offsets = [0, 128], sizes = [8, 128], strides = [1, 1]} : vector<8x512xf32> to vector<8x128xf32>
    %458 = arith.negf %457 : vector<8x128xf32>
    %459 = math.exp %458 : vector<8x128xf32>
    %cst_126 = arith.constant 1.000000e+00 : f32
    %460 = vector.broadcast %cst_126 : f32 to vector<8x128xf32>
    %461 = arith.addf %460, %459 : vector<8x128xf32>
    %462 = arith.divf %460, %461 : vector<8x128xf32>
    %463 = vector.extract_strided_slice %450 {offsets = [0, 256], sizes = [8, 128], strides = [1, 1]} : vector<8x512xf32> to vector<8x128xf32>
    %464 = math.tanh %463 : vector<8x128xf32>
    %465 = vector.extract_strided_slice %450 {offsets = [0, 384], sizes = [8, 128], strides = [1, 1]} : vector<8x512xf32> to vector<8x128xf32>
    %466 = arith.negf %465 : vector<8x128xf32>
    %467 = math.exp %466 : vector<8x128xf32>
    %cst_127 = arith.constant 1.000000e+00 : f32
    %468 = vector.broadcast %cst_127 : f32 to vector<8x128xf32>
    %469 = arith.addf %468, %467 : vector<8x128xf32>
    %470 = arith.divf %468, %469 : vector<8x128xf32>
    %471 = arith.mulf %462, %442 : vector<8x128xf32>
    %472 = arith.mulf %456, %464 : vector<8x128xf32>
    %473 = arith.addf %471, %472 : vector<8x128xf32>
    %474 = math.tanh %473 : vector<8x128xf32>
    %475 = arith.mulf %470, %474 : vector<8x128xf32>
    %c6_i32_128 = arith.constant 6 : i32
    %c8_i32_129 = arith.constant 8 : i32
    %476 = arith.muli %c6_i32_128, %c8_i32_129 : i32
    %477 = tpu.assume_multiple %476, 8 : i32
    %478 = arith.index_cast %477 : i32 to index
    %c0_130 = arith.constant 0 : index
    %479 = vector.load %arg11[%478, %c0_130] : memref<64x512xf32, #tpu.memory_space<vmem>>, vector<8x512xf32>
    %cst_131 = arith.constant dense<0.000000e+00> : vector<8x512xf32>
    %480 = tpu.matmul %475, %287, %cst_131 {dimension_numbers = #tpu.dot_dimension_numbers<[1], [0], [0], [1], [0, 0, 1, 1], [], []>} : vector<8x128xf32>, vector<128x512xf32>, vector<8x512xf32> -> vector<8x512xf32>
    %481 = arith.addf %479, %480 : vector<8x512xf32>
    %482 = vector.extract_strided_slice %481 {offsets = [0, 0], sizes = [8, 128], strides = [1, 1]} : vector<8x512xf32> to vector<8x128xf32>
    %483 = arith.negf %482 : vector<8x128xf32>
    %484 = math.exp %483 : vector<8x128xf32>
    %cst_132 = arith.constant 1.000000e+00 : f32
    %485 = vector.broadcast %cst_132 : f32 to vector<8x128xf32>
    %486 = arith.addf %485, %484 : vector<8x128xf32>
    %487 = arith.divf %485, %486 : vector<8x128xf32>
    %488 = vector.extract_strided_slice %481 {offsets = [0, 128], sizes = [8, 128], strides = [1, 1]} : vector<8x512xf32> to vector<8x128xf32>
    %489 = arith.negf %488 : vector<8x128xf32>
    %490 = math.exp %489 : vector<8x128xf32>
    %cst_133 = arith.constant 1.000000e+00 : f32
    %491 = vector.broadcast %cst_133 : f32 to vector<8x128xf32>
    %492 = arith.addf %491, %490 : vector<8x128xf32>
    %493 = arith.divf %491, %492 : vector<8x128xf32>
    %494 = vector.extract_strided_slice %481 {offsets = [0, 256], sizes = [8, 128], strides = [1, 1]} : vector<8x512xf32> to vector<8x128xf32>
    %495 = math.tanh %494 : vector<8x128xf32>
    %496 = vector.extract_strided_slice %481 {offsets = [0, 384], sizes = [8, 128], strides = [1, 1]} : vector<8x512xf32> to vector<8x128xf32>
    %497 = arith.negf %496 : vector<8x128xf32>
    %498 = math.exp %497 : vector<8x128xf32>
    %cst_134 = arith.constant 1.000000e+00 : f32
    %499 = vector.broadcast %cst_134 : f32 to vector<8x128xf32>
    %500 = arith.addf %499, %498 : vector<8x128xf32>
    %501 = arith.divf %499, %500 : vector<8x128xf32>
    %502 = arith.mulf %493, %473 : vector<8x128xf32>
    %503 = arith.mulf %487, %495 : vector<8x128xf32>
    %504 = arith.addf %502, %503 : vector<8x128xf32>
    %505 = math.tanh %504 : vector<8x128xf32>
    %506 = arith.mulf %501, %505 : vector<8x128xf32>
    %c7_i32_135 = arith.constant 7 : i32
    %c8_i32_136 = arith.constant 8 : i32
    %507 = arith.muli %c7_i32_135, %c8_i32_136 : i32
    %508 = tpu.assume_multiple %507, 8 : i32
    %509 = arith.index_cast %508 : i32 to index
    %c0_137 = arith.constant 0 : index
    %510 = vector.load %arg11[%509, %c0_137] : memref<64x512xf32, #tpu.memory_space<vmem>>, vector<8x512xf32>
    %cst_138 = arith.constant dense<0.000000e+00> : vector<8x512xf32>
    %511 = tpu.matmul %506, %287, %cst_138 {dimension_numbers = #tpu.dot_dimension_numbers<[1], [0], [0], [1], [0, 0, 1, 1], [], []>} : vector<8x128xf32>, vector<128x512xf32>, vector<8x512xf32> -> vector<8x512xf32>
    %512 = arith.addf %510, %511 : vector<8x512xf32>
    %513 = vector.extract_strided_slice %512 {offsets = [0, 0], sizes = [8, 128], strides = [1, 1]} : vector<8x512xf32> to vector<8x128xf32>
    %514 = arith.negf %513 : vector<8x128xf32>
    %515 = math.exp %514 : vector<8x128xf32>
    %cst_139 = arith.constant 1.000000e+00 : f32
    %516 = vector.broadcast %cst_139 : f32 to vector<8x128xf32>
    %517 = arith.addf %516, %515 : vector<8x128xf32>
    %518 = arith.divf %516, %517 : vector<8x128xf32>
    %519 = vector.extract_strided_slice %512 {offsets = [0, 128], sizes = [8, 128], strides = [1, 1]} : vector<8x512xf32> to vector<8x128xf32>
    %520 = arith.negf %519 : vector<8x128xf32>
    %521 = math.exp %520 : vector<8x128xf32>
    %cst_140 = arith.constant 1.000000e+00 : f32
    %522 = vector.broadcast %cst_140 : f32 to vector<8x128xf32>
    %523 = arith.addf %522, %521 : vector<8x128xf32>
    %524 = arith.divf %522, %523 : vector<8x128xf32>
    %525 = vector.extract_strided_slice %512 {offsets = [0, 256], sizes = [8, 128], strides = [1, 1]} : vector<8x512xf32> to vector<8x128xf32>
    %526 = math.tanh %525 : vector<8x128xf32>
    %527 = vector.extract_strided_slice %512 {offsets = [0, 384], sizes = [8, 128], strides = [1, 1]} : vector<8x512xf32> to vector<8x128xf32>
    %528 = arith.negf %527 : vector<8x128xf32>
    %529 = math.exp %528 : vector<8x128xf32>
    %cst_141 = arith.constant 1.000000e+00 : f32
    %530 = vector.broadcast %cst_141 : f32 to vector<8x128xf32>
    %531 = arith.addf %530, %529 : vector<8x128xf32>
    %532 = arith.divf %530, %531 : vector<8x128xf32>
    %533 = arith.mulf %524, %504 : vector<8x128xf32>
    %534 = arith.mulf %518, %526 : vector<8x128xf32>
    %535 = arith.addf %533, %534 : vector<8x128xf32>
    %536 = math.tanh %535 : vector<8x128xf32>
    %537 = arith.mulf %532, %536 : vector<8x128xf32>
    %c8_i32_142 = arith.constant 8 : i32
    %c1 = arith.constant 1 : index
    %c0_143 = arith.constant 0 : index
    %c0_144 = arith.constant 0 : index
    %538 = vector.load %arg8[%c1, %c0_143, %c0_144] : memref<2x8x128xf32, #tpu.memory_space<vmem>>, vector<1x8x128xf32>
    %539 = vector.shape_cast %538 : vector<1x8x128xf32> to vector<8x128xf32>
    %540 = vector.shape_cast %537 : vector<8x128xf32> to vector<1x8x128xf32>
    tpu.vector_store %arg8[%c1, %c0_143, %c0_144], %540 {strides = array<i32>} : memref<2x8x128xf32, #tpu.memory_space<vmem>>, vector<1x8x128xf32>,
    %c1_145 = arith.constant 1 : index
    %c0_146 = arith.constant 0 : index
    %c0_147 = arith.constant 0 : index
    %541 = vector.load %arg9[%c1_145, %c0_146, %c0_147] : memref<2x8x128xf32, #tpu.memory_space<vmem>>, vector<1x8x128xf32>
    %542 = vector.shape_cast %541 : vector<1x8x128xf32> to vector<8x128xf32>
    %543 = vector.shape_cast %535 : vector<8x128xf32> to vector<1x8x128xf32>
    tpu.vector_store %arg9[%c1_145, %c0_146, %c0_147], %543 {strides = array<i32>} : memref<2x8x128xf32, #tpu.memory_space<vmem>>, vector<1x8x128xf32>,
    return
  }
  func.func @transform_0(%arg0: i32) -> (i32, i32) {
    %c0_i32 = arith.constant 0 : i32
    %c0_i32_0 = arith.constant 0 : i32
    %c0_i32_1 = arith.constant 0 : i32
    return %c0_i32, %c0_i32_0 : i32, i32
  }
  func.func @transform_1(%arg0: i32) -> (i32, i32) {
    %c0_i32 = arith.constant 0 : i32
    %c0_i32_0 = arith.constant 0 : i32
    %c0_i32_1 = arith.constant 0 : i32
    return %c0_i32, %c0_i32_0 : i32, i32
  }
  func.func @transform_2(%arg0: i32) -> (i32, i32) {
    %c0_i32 = arith.constant 0 : i32
    %c0_i32_0 = arith.constant 0 : i32
    %c0_i32_1 = arith.constant 0 : i32
    return %c0_i32, %c0_i32_0 : i32, i32
  }
  func.func @transform_3(%arg0: i32) -> (i32, i32) {
    %c0_i32 = arith.constant 0 : i32
    %c0_i32_0 = arith.constant 0 : i32
    %c0_i32_1 = arith.constant 0 : i32
    return %c0_i32, %c0_i32_0 : i32, i32
  }
  func.func @transform_4(%arg0: i32) -> (i32, i32) {
    %c0_i32 = arith.constant 0 : i32
    %c0_i32_0 = arith.constant 0 : i32
    %c0_i32_1 = arith.constant 0 : i32
    return %c0_i32, %c0_i32_0 : i32, i32
  }
  func.func @transform_5(%arg0: i32) -> (i32, i32) {
    %c0_i32 = arith.constant 0 : i32
    %c0_i32_0 = arith.constant 0 : i32
    %c0_i32_1 = arith.constant 0 : i32
    return %c0_i32, %c0_i32_0 : i32, i32
  }
  func.func @transform_6(%arg0: i32) -> (i32, i32) {
    %c0_i32 = arith.constant 0 : i32
    %c0_i32_0 = arith.constant 0 : i32
    %c0_i32_1 = arith.constant 0 : i32
    return %c0_i32, %c0_i32_0 : i32, i32
  }
  func.func @transform_7(%arg0: i32) -> (i32, i32, i32) {
    %c0_i32 = arith.constant 0 : i32
    %c0_i32_0 = arith.constant 0 : i32
    %c0_i32_1 = arith.constant 0 : i32
    %c0_i32_2 = arith.constant 0 : i32
    return %c0_i32, %c0_i32_0, %c0_i32_1 : i32, i32, i32
  }
  func.func @transform_8(%arg0: i32) -> (i32, i32, i32) {
    %c0_i32 = arith.constant 0 : i32
    %c0_i32_0 = arith.constant 0 : i32
    %c0_i32_1 = arith.constant 0 : i32
    %c0_i32_2 = arith.constant 0 : i32
    return %c0_i32, %c0_i32_0, %c0_i32_1 : i32, i32, i32
  }
}

</mosaic_0001>

<bundles_post_ra>
// kernel: tpu_custom_call.1
= control target key start
LH: loop header
LB: loop body
LE: loop exit
PB: predicated region body
PF: predicated region fallthrough
CT: control target
= control target key end

     0   :  { %14 = vsyncpa [#allocation5], 0  ;;  %s6021_s0 = inlined_call_operand.hbm [shape: f32[64,128], index: 0, kind: input, shape index: {}]   ;;  %s6022_s1 = inlined_call_operand.hbm [shape: f32[128,512], index: 1, kind: input, shape index: {}]   ;;  %s6023_s2 = inlined_call_operand.hbm [shape: f32[128,512], index: 2, kind: input, shape index: {}]   ;;  %s6024_s3 = inlined_call_operand.hbm [shape: f32[1,512], index: 3, kind: input, shape index: {}]   ;;  %s6025_s4 = inlined_call_operand.hbm [shape: f32[128,512], index: 4, kind: input, shape index: {}]   ;;  %s6026_s5 = inlined_call_operand.hbm [shape: f32[128,512], index: 5, kind: input, shape index: {}]   ;;  %s6027_s6 = inlined_call_operand.vmem [shape: f32[1,512], index: 6, kind: input, shape index: {}]   ;;  %s6028_s7 = inlined_call_operand.hbm [shape: f32[2,8,128], index: 7, kind: output, shape index: {0}]   ;;  %s6029_s8 = inlined_call_operand.hbm [shape: f32[2,8,128], index: 8, kind: output, shape index: {1}]  }
   0x1   :  { %15 = vsyncpa [#allocation8], 0 }
   0x2   :  { %16 = vsyncpa [#allocation11], 0 }
   0x3   :  { %17 = vsyncpa [#allocation14], 0 }
   0x4   :  { %18 = vsyncpa [#allocation6], 0  ;;  %s37_s29 = sshll.u32 %s6022_s1, 4  ;;  %s38_s29 = int_to_ptr.hbm [resolvable:$true] %s37_s29 }
   0x5   :  { %19 = vsyncpa [#allocation17], 0  ;;  %s3963_s30 = smov [#allocation7]   ;;  %s64_s12 = sshll.u32 %s6024_s3, 4  ;;  %s65_s12 = int_to_ptr.hbm [resolvable:$true] %s64_s12 }
   0x6   :  { %s39_s9 = sshll.u32 %s3963_s30, 4  ;;  %s3964_s13 = smov 512   ;;  %s40_s9 = int_to_ptr.vmem [resolvable:$true] %s39_s9 }
   0x7   :  { %s3965_s14 = smov 32   ;;  %s3966_s15 = smov [#allocation10]  }
   0x8   :  { %45 = dma.hbm_to_vmem [thread:$0]  %s38_s29, 8192, %s40_s9, [#allocation8], %s3964_s13, %s3964_s13, %s3965_s14  }
   0x9   :  { %s66_s16 = sshll.u32 %s3966_s15, 4  ;;  %s24_s18 = sshll.u32 %s6021_s0, 4  ;;  %s67_s16 = int_to_ptr.vmem [resolvable:$true] %s66_s16  ;;  %s25_s18 = int_to_ptr.hbm [resolvable:$true] %s24_s18 }
   0xa   :  { %69 = dma.hbm_to_vmem [thread:$0]  %s65_s12, 64, %s67_s16, [#allocation11]  }
   0xb   :  { %s3967_s19 = smov [#allocation4]   ;;  %s50_s22 = sshll.u32 %s6023_s2, 4  ;;  %s51_s22 = int_to_ptr.hbm [resolvable:$true] %s50_s22 }
   0xc   :  { %s26_s20 = sshll.u32 %s3967_s19, 4  ;;  %s3968_s23 = smov 128   ;;  %s27_s20 = int_to_ptr.vmem [resolvable:$true] %s26_s20 }
   0xd   :  { %s3969_s24 = smov 8   ;;  %s3970_s25 = smov [#allocation9]  }
   0xe   :  { %32 = dma.hbm_to_vmem [thread:$0]  %s25_s18, 1024, %s27_s20, [#allocation5], %s3968_s23, %s3968_s23, %s3969_s24  }
   0xf   :  { %s52_s26 = sshll.u32 %s3970_s25, 4  ;;  %s74_s28 = sshll.u32 %s6025_s4, 4  ;;  %s53_s26 = int_to_ptr.vmem [resolvable:$true] %s52_s26  ;;  %s75_s28 = int_to_ptr.hbm [resolvable:$true] %s74_s28 }
  0x10   :  { %58 = dma.hbm_to_vmem [thread:$0]  %s51_s22, 8192, %s53_s26, [#allocation8], %s3964_s13, %s3964_s13, %s3965_s14  }
  0x11   :  { %s87_s30 = sshll.u32 %s6026_s5, 4  ;;  %s3971_s9 = smov [#allocation12]   ;;  %s88_s30 = int_to_ptr.hbm [resolvable:$true] %s87_s30 }
  0x12   :  { %s76_s10 = sshll.u32 %s3971_s9, 4  ;;  %s3972_s11 = smov [#allocation13]   ;;  %s77_s10 = int_to_ptr.vmem [resolvable:$true] %s76_s10 }
  0x13   :  { %82 = dma.hbm_to_vmem [thread:$0]  %s75_s28, 8192, %s77_s10, [#allocation11], %s3964_s13, %s3964_s13, %s3965_s14  }
  0x14   :  { %s89_s4 = sshll.u32 %s3972_s11, 4  ;;  %s90_s4 = int_to_ptr.vmem [resolvable:$true] %s89_s4 }
  0x15   :  { %95 = dma.hbm_to_vmem [thread:$0]  %s88_s30, 8192, %s90_s4, [#allocation14], %s3964_s13, %s3964_s13, %s3965_s14  }
  0x16   :  { %3951 = dma.done.wait [#allocation5], 1024  }
  0x17   :  { %3952 = vsyncadd [#allocation5], 4294966272 }
  0x18   :  { %3953 = dma.done.wait [#allocation8], 16384  }
  0x19   :  { %3954 = vsyncadd [#allocation8], 4294950912 }
  0x1a   :  { %3955 = dma.done.wait [#allocation11], 8256  }
  0x1b   :  { %3956 = vsyncadd [#allocation11], 4294959040 }
  0x1c   :  { %3957 = dma.done.wait [#allocation14], 8192  }
  0x1d   :  { %3958 = vsyncadd [#allocation14], 4294959104  ;;  %v190_v0 = vld [vmem:[#allocation7 + $0x1e0] sm:$0xff]  ;;  %v191_v1 = vld [vmem:[#allocation7 + $0x1e8] sm:$0xff]  ;;  %s3286_s16 = sshll.u32 %s6029_s8, 4  ;;  %s3975_s8 = smov [#allocation15]   ;;  %s3287_s16 = int_to_ptr.hbm [resolvable:$true] %s3286_s16 }
  0x1e   :  { %v192_v2 = vld [vmem:[#allocation7 + $0x1f0] sm:$0xff]  ;;  %204 = vmatpush.msra.mxu0 %v190_v0  ;;  %245 = vmatpush.msra.mxu1 %v191_v1  ;;  %v193_v3 = vld [vmem:[#allocation7 + $0x1f8] sm:$0xff]  ;;  %v186_v4 = vld [vmem:[#allocation7 + $0x1c0] sm:$0xff]  ;;  %s3271_s17 = sshll.u32 %s3975_s8, 4  ;;  %s3273_s19 = sshll.u32 %s6028_s7, 4  ;;  %s3272_s17 = int_to_ptr.vmem [resolvable:$true] %s3271_s17  ;;  %s3274_s19 = int_to_ptr.hbm [resolvable:$true] %s3273_s19 }
  0x1f   :  { %v187_v5 = vld [vmem:[#allocation7 + $0x1c8] sm:$0xff]  ;;  %286 = vmatpush.msra.mxu2 %v192_v2  ;;  %327 = vmatpush.msra.mxu3 %v193_v3  ;;  %v188_v6 = vld [vmem:[#allocation7 + $0x1d0] sm:$0xff]  ;;  %v189_v7 = vld [vmem:[#allocation7 + $0x1d8] sm:$0xff] }
  0x20   :  { %v182_v8 = vld [vmem:[#allocation7 + $0x1a0] sm:$0xff]  ;;  %205 = vmatpush.msra.mxu0 %v186_v4  ;;  %246 = vmatpush.msra.mxu1 %v187_v5  ;;  %v183_v9 = vld [vmem:[#allocation7 + $0x1a8] sm:$0xff]  ;;  %v184_v10 = vld [vmem:[#allocation7 + $0x1b0] sm:$0xff] }
  0x21   :  { %v185_v11 = vld [vmem:[#allocation7 + $0x1b8] sm:$0xff]  ;;  %287 = vmatpush.msra.mxu2 %v188_v6  ;;  %328 = vmatpush.msra.mxu3 %v189_v7  ;;  %v178_v12 = vld [vmem:[#allocation7 + $0x180] sm:$0xff]  ;;  %v179_v13 = vld [vmem:[#allocation7 + $0x188] sm:$0xff] }
  0x22   :  { %206 = vmatpush.msra.mxu0 %v182_v8  ;;  %247 = vmatpush.msra.mxu1 %v183_v9  ;;  %v180_v14 = vld [vmem:[#allocation7 + $0x190] sm:$0xff]  ;;  %v181_v15 = vld [vmem:[#allocation7 + $0x198] sm:$0xff]  ;;  %v174_v16 = vld [vmem:[#allocation7 + $0x160] sm:$0xff] }
  0x23   :  { %288 = vmatpush.msra.mxu2 %v184_v10  ;;  %329 = vmatpush.msra.mxu3 %v185_v11  ;;  %v175_v17 = vld [vmem:[#allocation7 + $0x168] sm:$0xff]  ;;  %v176_v18 = vld [vmem:[#allocation7 + $0x170] sm:$0xff]  ;;  %v177_v19 = vld [vmem:[#allocation7 + $0x178] sm:$0xff] }
  0x24   :  { %207 = vmatpush.msra.mxu0 %v178_v12  ;;  %248 = vmatpush.msra.mxu1 %v179_v13  ;;  %v170_v20 = vld [vmem:[#allocation7 + $0x140] sm:$0xff]  ;;  %v171_v21 = vld [vmem:[#allocation7 + $0x148] sm:$0xff]  ;;  %v172_v22 = vld [vmem:[#allocation7 + $0x150] sm:$0xff] }
  0x25   :  { %289 = vmatpush.msra.mxu2 %v180_v14  ;;  %330 = vmatpush.msra.mxu3 %v181_v15  ;;  %v173_v23 = vld [vmem:[#allocation7 + $0x158] sm:$0xff]  ;;  %v166_v24 = vld [vmem:[#allocation7 + $0x120] sm:$0xff]  ;;  %v167_v25 = vld [vmem:[#allocation7 + $0x128] sm:$0xff] }
  0x26   :  { %208 = vmatpush.msra.mxu0 %v174_v16  ;;  %249 = vmatpush.msra.mxu1 %v175_v17  ;;  %v168_v26 = vld [vmem:[#allocation7 + $0x130] sm:$0xff]  ;;  %v169_v27 = vld [vmem:[#allocation7 + $0x138] sm:$0xff]  ;;  %v162_v28 = vld [vmem:[#allocation7 + $0x100] sm:$0xff] }
  0x27   :  { %290 = vmatpush.msra.mxu2 %v176_v18  ;;  %331 = vmatpush.msra.mxu3 %v177_v19  ;;  %v163_v29 = vld [vmem:[#allocation7 + $0x108] sm:$0xff]  ;;  %v164_v30 = vld [vmem:[#allocation7 + $0x110] sm:$0xff]  ;;  %v165_v31 = vld [vmem:[#allocation7 + $0x118] sm:$0xff] }
  0x28   :  { %209 = vmatpush.msra.mxu0 %v170_v20  ;;  %250 = vmatpush.msra.mxu1 %v171_v21  ;;  %v158_v32 = vld [vmem:[#allocation7 + $0xe0] sm:$0xff]  ;;  %v159_v33 = vld [vmem:[#allocation7 + $0xe8] sm:$0xff]  ;;  %v160_v34 = vld [vmem:[#allocation7 + $0xf0] sm:$0xff] }
  0x29   :  { %291 = vmatpush.msra.mxu2 %v172_v22  ;;  %332 = vmatpush.msra.mxu3 %v173_v23  ;;  %v161_v35 = vld [vmem:[#allocation7 + $0xf8] sm:$0xff]  ;;  %v154_v36 = vld [vmem:[#allocation7 + $0xc0] sm:$0xff]  ;;  %v155_v37 = vld [vmem:[#allocation7 + $0xc8] sm:$0xff] }
  0x2a   :  { %210 = vmatpush.msra.mxu0 %v166_v24  ;;  %251 = vmatpush.msra.mxu1 %v167_v25  ;;  %v156_v38 = vld [vmem:[#allocation7 + $0xd0] sm:$0xff]  ;;  %v157_v39 = vld [vmem:[#allocation7 + $0xd8] sm:$0xff]  ;;  %v150_v40 = vld [vmem:[#allocation7 + $0xa0] sm:$0xff] }
  0x2b   :  { %292 = vmatpush.msra.mxu2 %v168_v26  ;;  %333 = vmatpush.msra.mxu3 %v169_v27  ;;  %v151_v41 = vld [vmem:[#allocation7 + $0xa8] sm:$0xff]  ;;  %v152_v42 = vld [vmem:[#allocation7 + $0xb0] sm:$0xff]  ;;  %v153_v43 = vld [vmem:[#allocation7 + $0xb8] sm:$0xff] }
  0x2c   :  { %211 = vmatpush.msra.mxu0 %v162_v28  ;;  %252 = vmatpush.msra.mxu1 %v163_v29  ;;  %v146_v44 = vld [vmem:[#allocation7 + $0x80] sm:$0xff]  ;;  %v147_v45 = vld [vmem:[#allocation7 + $0x88] sm:$0xff]  ;;  %v148_v46 = vld [vmem:[#allocation7 + $0x90] sm:$0xff] }
  0x2d   :  { %293 = vmatpush.msra.mxu2 %v164_v30  ;;  %334 = vmatpush.msra.mxu3 %v165_v31  ;;  %v149_v47 = vld [vmem:[#allocation7 + $0x98] sm:$0xff]  ;;  %v142_v48 = vld [vmem:[#allocation7 + $0x60] sm:$0xff]  ;;  %v143_v49 = vld [vmem:[#allocation7 + $0x68] sm:$0xff] }
  0x2e   :  { %212 = vmatpush.msra.mxu0 %v158_v32  ;;  %253 = vmatpush.msra.mxu1 %v159_v33  ;;  %v144_v50 = vld [vmem:[#allocation7 + $0x70] sm:$0xff]  ;;  %v145_v51 = vld [vmem:[#allocation7 + $0x78] sm:$0xff]  ;;  %v138_v52 = vld [vmem:[#allocation7 + $0x40] sm:$0xff] }
  0x2f   :  { %294 = vmatpush.msra.mxu2 %v160_v34  ;;  %335 = vmatpush.msra.mxu3 %v161_v35  ;;  %v139_v53 = vld [vmem:[#allocation7 + $0x48] sm:$0xff]  ;;  %v140_v54 = vld [vmem:[#allocation7 + $0x50] sm:$0xff]  ;;  %v141_v55 = vld [vmem:[#allocation7 + $0x58] sm:$0xff] }
  0x30   :  { %213 = vmatpush.msra.mxu0 %v154_v36  ;;  %254 = vmatpush.msra.mxu1 %v155_v37  ;;  %v134_v56 = vld [vmem:[#allocation7 + $0x20] sm:$0xff]  ;;  %v135_v57 = vld [vmem:[#allocation7 + $0x28] sm:$0xff]  ;;  %v136_v58 = vld [vmem:[#allocation7 + $0x30] sm:$0xff] }
  0x31   :  { %295 = vmatpush.msra.mxu2 %v156_v38  ;;  %336 = vmatpush.msra.mxu3 %v157_v39  ;;  %v137_v59 = vld [vmem:[#allocation7 + $0x38] sm:$0xff]  ;;  %v130_v60 = vld [vmem:[#allocation7] sm:$0xff]  ;;  %v131_v61 = vld [vmem:[#allocation7 + $0x8] sm:$0xff] }
  0x32   :  { %214 = vmatpush.msra.mxu0 %v150_v40  ;;  %255 = vmatpush.msra.mxu1 %v151_v41  ;;  %v132_v62 = vld [vmem:[#allocation7 + $0x10] sm:$0xff]  ;;  %v133_v63 = vld [vmem:[#allocation7 + $0x18] sm:$0xff]  ;;  %v122_v0 = vld [vmem:[#allocation4] sm:$0xff] }
  0x33   :  { %296 = vmatpush.msra.mxu2 %v152_v42  ;;  %337 = vmatpush.msra.mxu3 %v153_v43  ;;  %v4054_v1 = vld [vmem:[#allocation9 + $0x1e0] sm:$0xff]  ;;  %v4056_v2 = vld [vmem:[#allocation9 + $0x1e8] sm:$0xff]  ;;  %v4058_v3 = vld [vmem:[#allocation9 + $0x1f8] sm:$0xff] }
  0x34   :  { %215 = vmatpush.msra.mxu0 %v146_v44  ;;  %256 = vmatpush.msra.mxu1 %v147_v45  ;;  %v4060_v4 = vld [vmem:[#allocation9 + $0x1f0] sm:$0xff]  ;;  %v4062_v5 = vld [vmem:[#allocation9 + $0x1c0] sm:$0xff]  ;;  %v4064_v6 = vld [vmem:[#allocation9 + $0x1c8] sm:$0xff] }
  0x35   :  { %297 = vmatpush.msra.mxu2 %v148_v46  ;;  %338 = vmatpush.msra.mxu3 %v149_v47  ;;  %v4068_v7 = vld [vmem:[#allocation9 + $0x1d8] sm:$0xff]  ;;  %v4070_v8 = vld [vmem:[#allocation9 + $0x1d0] sm:$0xff]  ;;  %v4073_v9 = vld [vmem:[#allocation9 + $0x1a0] sm:$0xff] }
  0x36   :  { %216 = vmatpush.msra.mxu0 %v142_v48  ;;  %257 = vmatpush.msra.mxu1 %v143_v49  ;;  %v4075_v10 = vld [vmem:[#allocation9 + $0x1a8] sm:$0xff]  ;;  %v4080_v11 = vld [vmem:[#allocation9 + $0x1b8] sm:$0xff]  ;;  %v4082_v12 = vld [vmem:[#allocation9 + $0x1b0] sm:$0xff] }
  0x37   :  { %298 = vmatpush.msra.mxu2 %v144_v50  ;;  %339 = vmatpush.msra.mxu3 %v145_v51  ;;  %v123_v13 = vld [vmem:[#allocation4 + $0x8] sm:$0xff]  ;;  %v4088_v14 = vld [vmem:[#allocation9 + $0x180] sm:$0xff]  ;;  %v4094_v16 = vld [vmem:[#allocation9 + $0x198] sm:$0xff] }
  0x38   :  { %217 = vmatpush.msra.mxu0 %v138_v52  ;;  %258 = vmatpush.msra.mxu1 %v139_v53  ;;  %v4090_v15 = vld [vmem:[#allocation9 + $0x188] sm:$0xff]  ;;  %v4096_v17 = vld [vmem:[#allocation9 + $0x190] sm:$0xff]  ;;  %v4098_v18 = vld [vmem:[#allocation9 + $0x160] sm:$0xff] }
  0x39   :  { %299 = vmatpush.msra.mxu2 %v140_v54  ;;  %340 = vmatpush.msra.mxu3 %v141_v55  ;;  %v4100_v19 = vld [vmem:[#allocation9 + $0x168] sm:$0xff]  ;;  %v4104_v20 = vld [vmem:[#allocation9 + $0x178] sm:$0xff]  ;;  %v4106_v21 = vld [vmem:[#allocation9 + $0x170] sm:$0xff] }
  0x3a   :  { %218 = vmatpush.msra.mxu0 %v134_v56  ;;  %259 = vmatpush.msra.mxu1 %v135_v57  ;;  %v4109_v22 = vld [vmem:[#allocation9 + $0x140] sm:$0xff]  ;;  %v4111_v23 = vld [vmem:[#allocation9 + $0x148] sm:$0xff]  ;;  %v4116_v24 = vld [vmem:[#allocation9 + $0x158] sm:$0xff] }
  0x3b   :  { %300 = vmatpush.msra.mxu2 %v136_v58  ;;  %341 = vmatpush.msra.mxu3 %v137_v59  ;;  %v4118_v25 = vld [vmem:[#allocation9 + $0x150] sm:$0xff]  ;;  %v4124_v27 = vld [vmem:[#allocation9 + $0x120] sm:$0xff]  ;;  %v4126_v28 = vld [vmem:[#allocation9 + $0x128] sm:$0xff] }
  0x3c   :  { %219 = vmatpush.msra.mxu0 %v130_v60  ;;  %260 = vmatpush.msra.mxu1 %v131_v61  ;;  %v124_v26 = vld [vmem:[#allocation4 + $0x10] sm:$0xff]  ;;  %v4130_v29 = vld [vmem:[#allocation9 + $0x138] sm:$0xff]  ;;  %v4134_v31 = vld [vmem:[#allocation9 + $0x100] sm:$0xff] }
  0x3d   :  { %301 = vmatpush.msra.mxu2 %v132_v62  ;;  %342 = vmatpush.msra.mxu3 %v133_v63  ;;  %v4132_v30 = vld [vmem:[#allocation9 + $0x130] sm:$0xff]  ;;  %v4136_v32 = vld [vmem:[#allocation9 + $0x108] sm:$0xff]  ;;  %v4140_v33 = vld [vmem:[#allocation9 + $0x118] sm:$0xff] }
  0x3e   :  { %220 = vmatmul.f32.vlgmr.msra.gmra.mxu0 %v122_v0  ;;  %261 = vmatmul.f32.vlgmr.msra.gmra.mxu1 %v122_v0  ;;  %v4142_v34 = vld [vmem:[#allocation9 + $0x110] sm:$0xff]  ;;  %v4145_v35 = vld [vmem:[#allocation9 + $0xe0] sm:$0xff]  ;;  %v4147_v36 = vld [vmem:[#allocation9 + $0xe8] sm:$0xff] }
  0x3f   :  { %302 = vmatmul.f32.vlgmr.msra.gmra.mxu2 %v122_v0  ;;  %343 = vmatmul.f32.vlgmr.msra.gmra.mxu3 %v122_v0  ;;  %v4152_v37 = vld [vmem:[#allocation9 + $0xf8] sm:$0xff]  ;;  %v4154_v38 = vld [vmem:[#allocation9 + $0xf0] sm:$0xff]  ;;  %v4160_v40 = vld [vmem:[#allocation9 + $0xc0] sm:$0xff] }
  0x40   :  { %471 = vmatpush.msrb.mxu0 %v4054_v1  ;;  %491 = vmatpush.msrb.mxu1 %v4056_v2  ;;  %v125_v39 = vld [vmem:[#allocation4 + $0x18] sm:$0xff]  ;;  %v4162_v41 = vld [vmem:[#allocation9 + $0xc8] sm:$0xff]  ;;  %v4168_v43 = vld [vmem:[#allocation9 + $0xd0] sm:$0xff] }
  0x41   :  { %531 = vmatpush.msrb.mxu3 %v4058_v3  ;;  %511 = vmatpush.msrb.mxu2 %v4060_v4  ;;  %v4166_v42 = vld [vmem:[#allocation9 + $0xd8] sm:$0xff]  ;;  %6299 = vst [vmem:[#allocation25_spill] sm:$0xff] %v4168_v43  ;;  %v4170_v44 = vld [vmem:[#allocation9 + $0xa0] sm:$0xff]  ;;  %v4172_v45 = vld [vmem:[#allocation9 + $0xa8] sm:$0xff] }
  0x42   :  { %472 = vmatpush.msrb.mxu0 %v4062_v5  ;;  %492 = vmatpush.msrb.mxu1 %v4064_v6  ;;  %6298 = vst [vmem:[#allocation24_spill] sm:$0xff] %v4166_v42  ;;  %v4176_v46 = vld [vmem:[#allocation9 + $0xb8] sm:$0xff]  ;;  %v4178_v47 = vld [vmem:[#allocation9 + $0xb0] sm:$0xff]  ;;  %v4181_v48 = vld [vmem:[#allocation9 + $0x80] sm:$0xff] }
  0x43   :  { %532 = vmatpush.msrb.mxu3 %v4068_v7  ;;  %512 = vmatpush.msrb.mxu2 %v4070_v8  ;;  %6300 = vst [vmem:[#allocation26_spill] sm:$0xff] %v4170_v44  ;;  %v4183_v49 = vld [vmem:[#allocation9 + $0x88] sm:$0xff]  ;;  %v4188_v50 = vld [vmem:[#allocation9 + $0x98] sm:$0xff]  ;;  %v4190_v51 = vld [vmem:[#allocation9 + $0x90] sm:$0xff] }
  0x44   :  { %473 = vmatpush.msrb.mxu0 %v4073_v9  ;;  %493 = vmatpush.msrb.mxu1 %v4075_v10  ;;  %6301 = vst [vmem:[#allocation27_spill] sm:$0xff] %v4172_v45  ;;  %v126_v52 = vld [vmem:[#allocation4 + $0x20] sm:$0xff]  ;;  %v4198_v54 = vld [vmem:[#allocation9 + $0x68] sm:$0xff]  ;;  %v4202_v55 = vld [vmem:[#allocation9 + $0x78] sm:$0xff] }
  0x45   :  { %533 = vmatpush.msrb.mxu3 %v4080_v11  ;;  %513 = vmatpush.msrb.mxu2 %v4082_v12  ;;  %6302 = vst [vmem:[#allocation28_spill] sm:$0xff] %v4176_v46  ;;  %v4196_v53 = vld [vmem:[#allocation9 + $0x60] sm:$0xff]  ;;  %v4204_v56 = vld [vmem:[#allocation9 + $0x70] sm:$0xff]  ;;  %v4208_v58 = vld [vmem:[#allocation9 + $0x48] sm:$0xff] }
  0x46   :  { %223 = vmatmul.f32.gmra.mxu0 %v123_v13  ;;  %264 = vmatmul.f32.gmra.mxu1 %v123_v13  ;;  %6303 = vst [vmem:[#allocation29_spill] sm:$0xff] %v4178_v47  ;;  %v4206_v57 = vld [vmem:[#allocation9 + $0x40] sm:$0xff]  ;;  %v4212_v59 = vld [vmem:[#allocation9 + $0x58] sm:$0xff]  ;;  %v4214_v60 = vld [vmem:[#allocation9 + $0x50] sm:$0xff] }
  0x47   :  { %305 = vmatmul.f32.gmra.mxu2 %v123_v13  ;;  %346 = vmatmul.f32.gmra.mxu3 %v123_v13  ;;  %6304 = vst [vmem:[#allocation30_spill] sm:$0xff] %v4181_v48  ;;  %v4217_v61 = vld [vmem:[#allocation9 + $0x20] sm:$0xff]  ;;  %v4219_v62 = vld [vmem:[#allocation9 + $0x28] sm:$0xff]  ;;  %v4224_v63 = vld [vmem:[#allocation9 + $0x30] sm:$0xff] }
  0x48   :  { %474 = vmatpush.msrb.mxu0 %v4088_v14  ;;  %494 = vmatpush.msrb.mxu1 %v4090_v15  ;;  %6305 = vst [vmem:[#allocation31_spill] sm:$0xff] %v4183_v49  ;;  %v4226_v0 = vld [vmem:[#allocation9 + $0x38] sm:$0xff]  ;;  %v127_v13 = vld [vmem:[#allocation4 + $0x28] sm:$0xff] }
  0x49   :  { %534 = vmatpush.msrb.mxu3 %v4094_v16  ;;  %514 = vmatpush.msrb.mxu2 %v4096_v17  ;;  %6306 = vst [vmem:[#allocation32_spill] sm:$0xff] %v4188_v50 }
  0x4a   :  { %475 = vmatpush.msrb.mxu0 %v4098_v18  ;;  %495 = vmatpush.msrb.mxu1 %v4100_v19  ;;  %6307 = vst [vmem:[#allocation33_spill] sm:$0xff] %v4190_v51 }
  0x4b   :  { %535 = vmatpush.msrb.mxu3 %v4104_v20  ;;  %515 = vmatpush.msrb.mxu2 %v4106_v21  ;;  %6308 = vst [vmem:[#allocation34_spill] sm:$0xff] %v4196_v53 }
  0x4c   :  { %476 = vmatpush.msrb.mxu0 %v4109_v22  ;;  %496 = vmatpush.msrb.mxu1 %v4111_v23  ;;  %6309 = vst [vmem:[#allocation35_spill] sm:$0xff] %v4198_v54 }
  0x4d   :  { %536 = vmatpush.msrb.mxu3 %v4116_v24  ;;  %516 = vmatpush.msrb.mxu2 %v4118_v25  ;;  %6310 = vst [vmem:[#allocation36_spill] sm:$0xff] %v4202_v55 }
  0x4e   :  { %226 = vmatmul.f32.gmra.mxu0 %v124_v26  ;;  %267 = vmatmul.f32.gmra.mxu1 %v124_v26  ;;  %6311 = vst [vmem:[#allocation37_spill] sm:$0xff] %v4204_v56 }
  0x4f   :  { %308 = vmatmul.f32.gmra.mxu2 %v124_v26  ;;  %349 = vmatmul.f32.gmra.mxu3 %v124_v26  ;;  %6312 = vst [vmem:[#allocation38_spill] sm:$0xff] %v4206_v57  ;;  %v4232_v26 = vld [vmem:[#allocation9] sm:$0xff] }
  0x50   :  { %477 = vmatpush.msrb.mxu0 %v4124_v27  ;;  %497 = vmatpush.msrb.mxu1 %v4126_v28  ;;  %6313 = vst [vmem:[#allocation39_spill] sm:$0xff] %v4208_v58 }
  0x51   :  { %537 = vmatpush.msrb.mxu3 %v4130_v29  ;;  %517 = vmatpush.msrb.mxu2 %v4132_v30  ;;  %6314 = vst [vmem:[#allocation40_spill] sm:$0xff] %v4212_v59 }
  0x52   :  { %478 = vmatpush.msrb.mxu0 %v4134_v31  ;;  %498 = vmatpush.msrb.mxu1 %v4136_v32  ;;  %6315 = vst [vmem:[#allocation41_spill] sm:$0xff] %v4214_v60 }
  0x53   :  { %538 = vmatpush.msrb.mxu3 %v4140_v33  ;;  %518 = vmatpush.msrb.mxu2 %v4142_v34  ;;  %6316 = vst [vmem:[#allocation42_spill] sm:$0xff] %v4217_v61 }
  0x54   :  { %479 = vmatpush.msrb.mxu0 %v4145_v35  ;;  %499 = vmatpush.msrb.mxu1 %v4147_v36  ;;  %6317 = vst [vmem:[#allocation43_spill] sm:$0xff] %v4219_v62 }
  0x55   :  { %539 = vmatpush.msrb.mxu3 %v4152_v37  ;;  %519 = vmatpush.msrb.mxu2 %v4154_v38  ;;  %6318 = vst [vmem:[#allocation44_spill] sm:$0xff] %v4224_v63 }
  0x56   :  { %229 = vmatmul.f32.gmra.mxu0 %v125_v39  ;;  %270 = vmatmul.f32.gmra.mxu1 %v125_v39  ;;  %6319 = vst [vmem:[#allocation45_spill] sm:$0xff] %v4226_v0 }
  0x57   :  { %311 = vmatmul.f32.gmra.mxu2 %v125_v39  ;;  %352 = vmatmul.f32.gmra.mxu3 %v125_v39  ;;  %6320 = vst [vmem:[#allocation46_spill] sm:$0xff] %v4232_v26  ;;  %v4234_v39 = vld [vmem:[#allocation9 + $0x8] sm:$0xff] }
  0x58   :  { %480 = vmatpush.msrb.mxu0 %v4160_v40  ;;  %500 = vmatpush.msrb.mxu1 %v4162_v41  ;;  %6321 = vst [vmem:[#allocation47_spill] sm:$0xff] %v4234_v39 }
  0x59   :  { %540 = vmatpush.msrb.mxu3 %v4166_v42  ;;  %520 = vmatpush.msrb.mxu2 %v4168_v43 }
  0x5a   :  { %481 = vmatpush.msrb.mxu0 %v4170_v44  ;;  %501 = vmatpush.msrb.mxu1 %v4172_v45 }
  0x5b   :  { %541 = vmatpush.msrb.mxu3 %v4176_v46  ;;  %521 = vmatpush.msrb.mxu2 %v4178_v47 }
  0x5c   :  { %482 = vmatpush.msrb.mxu0 %v4181_v48  ;;  %502 = vmatpush.msrb.mxu1 %v4183_v49 }
  0x5d   :  { %542 = vmatpush.msrb.mxu3 %v4188_v50  ;;  %522 = vmatpush.msrb.mxu2 %v4190_v51 }
  0x5e   :  { %232 = vmatmul.f32.gmra.mxu0 %v126_v52  ;;  %273 = vmatmul.f32.gmra.mxu1 %v126_v52 }
  0x5f   :  { %314 = vmatmul.f32.gmra.mxu2 %v126_v52  ;;  %355 = vmatmul.f32.gmra.mxu3 %v126_v52  ;;  %v4238_v52 = vld [vmem:[#allocation9 + $0x10] sm:$0xff] }
  0x60   :  { %483 = vmatpush.msrb.mxu0 %v4196_v53  ;;  %503 = vmatpush.msrb.mxu1 %v4198_v54  ;;  %6322 = vst [vmem:[#allocation48_spill] sm:$0xff] %v4238_v52 }
  0x61   :  { %543 = vmatpush.msrb.mxu3 %v4202_v55  ;;  %523 = vmatpush.msrb.mxu2 %v4204_v56 }
  0x62   :  { %484 = vmatpush.msrb.mxu0 %v4206_v57  ;;  %504 = vmatpush.msrb.mxu1 %v4208_v58  ;;  %v4240_v58 = vld [vmem:[#allocation9 + $0x18] sm:$0xff] }
  0x63   :  { %544 = vmatpush.msrb.mxu3 %v4212_v59  ;;  %524 = vmatpush.msrb.mxu2 %v4214_v60  ;;  %6323 = vst [vmem:[#allocation49_spill] sm:$0xff] %v4240_v58 }
  0x64   :  { %485 = vmatpush.msrb.mxu0 %v4217_v61  ;;  %505 = vmatpush.msrb.mxu1 %v4219_v62 }
  0x65   :  { %525 = vmatpush.msrb.mxu2 %v4224_v63  ;;  %545 = vmatpush.msrb.mxu3 %v4226_v0  ;;  %v128_v0 = vld [vmem:[#allocation4 + $0x30] sm:$0xff] }
  0x66   :  { %235 = vmatmul.f32.gmra.mxu0 %v127_v13  ;;  %276 = vmatmul.f32.gmra.mxu1 %v127_v13 }
  0x67   :  { %317 = vmatmul.f32.gmra.mxu2 %v127_v13  ;;  %358 = vmatmul.f32.gmra.mxu3 %v127_v13  ;;  %v129_v13 = vld [vmem:[#allocation4 + $0x38] sm:$0xff] }
  0x68   :  { %486 = vmatpush.msrb.mxu0 %v4232_v26  ;;  %506 = vmatpush.msrb.mxu1 %v4234_v39 }
  0x69   :  { %526 = vmatpush.msrb.mxu2 %v4238_v52  ;;  %546 = vmatpush.msrb.mxu3 %v4240_v58 }
  0x6a   :  { %626 = vmatpush.msra.mxu0 %v4054_v1  ;;  %646 = vmatpush.msra.mxu1 %v4056_v2 }
  0x6b   :  { %666 = vmatpush.msra.mxu2 %v4060_v4  ;;  %686 = vmatpush.msra.mxu3 %v4058_v3 }
  0x6c   :  { %627 = vmatpush.msra.mxu0 %v4062_v5  ;;  %647 = vmatpush.msra.mxu1 %v4064_v6 }
  0x6d   :  { %667 = vmatpush.msra.mxu2 %v4070_v8  ;;  %687 = vmatpush.msra.mxu3 %v4068_v7 }
  0x6e   :  { %238 = vmatmul.f32.gmra.mxu0 %v128_v0  ;;  %279 = vmatmul.f32.gmra.mxu1 %v128_v0 }
  0x6f   :  { %320 = vmatmul.f32.gmra.mxu2 %v128_v0  ;;  %361 = vmatmul.f32.gmra.mxu3 %v128_v0  ;;  %v6034_v0 = vmov 0.0  }
  0x70   :  { %628 = vmatpush.msra.mxu0 %v4073_v9  ;;  %648 = vmatpush.msra.mxu1 %v4075_v10 }
  0x71   :  { %668 = vmatpush.msra.mxu2 %v4082_v12  ;;  %688 = vmatpush.msra.mxu3 %v4080_v11 }
  0x72   :  { %629 = vmatpush.msra.mxu0 %v4088_v14  ;;  %649 = vmatpush.msra.mxu1 %v4090_v15 }
  0x73   :  { %669 = vmatpush.msra.mxu2 %v4096_v17  ;;  %689 = vmatpush.msra.mxu3 %v4094_v16 }
  0x74   :  { %630 = vmatpush.msra.mxu0 %v4098_v18  ;;  %650 = vmatpush.msra.mxu1 %v4100_v19 }
  0x75   :  { %670 = vmatpush.msra.mxu2 %v4106_v21  ;;  %690 = vmatpush.msra.mxu3 %v4104_v20 }
  0x76   :  { %241 = vmatmul.f32.gmra.mxu0 %v129_v13  ;;  %282 = vmatmul.f32.gmra.mxu1 %v129_v13 }
  0x77   :  { %323 = vmatmul.f32.gmra.mxu2 %v129_v13  ;;  %364 = vmatmul.f32.gmra.mxu3 %v129_v13  ;;  %v6324_v13 = vld [vmem:[#allocation39_spill] sm:$0xff] }
  0x78   :  { %631 = vmatpush.msra.mxu0 %v4109_v22  ;;  %651 = vmatpush.msra.mxu1 %v4111_v23 }
  0x79   :  { %671 = vmatpush.msra.mxu2 %v4118_v25  ;;  %691 = vmatpush.msra.mxu3 %v4116_v24 }
  0x7a   :  { %632 = vmatpush.msra.mxu0 %v4124_v27  ;;  %652 = vmatpush.msra.mxu1 %v4126_v28 }
  0x7b   :  { %672 = vmatpush.msra.mxu2 %v4132_v30  ;;  %692 = vmatpush.msra.mxu3 %v4130_v29 }
  0x7c   :  { %633 = vmatpush.msra.mxu0 %v4134_v31  ;;  %653 = vmatpush.msra.mxu1 %v4136_v32 }
  0x7d   :  { %673 = vmatpush.msra.mxu2 %v4142_v34  ;;  %693 = vmatpush.msra.mxu3 %v4140_v33 }
  0x7e   :  { %487 = vmatmul.f32.vlgmr.msrb.gmra.mxu0 %v6034_v0  ;;  %507 = vmatmul.f32.vlgmr.msrb.gmra.mxu1 %v6034_v0 }
  0x7f   :  { %527 = vmatmul.f32.vlgmr.msrb.gmra.mxu2 %v6034_v0  ;;  %547 = vmatmul.f32.vlgmr.msrb.gmra.mxu3 %v6034_v0  ;;  %v6325_v0 = vld [vmem:[#allocation45_spill] sm:$0xff] }
  0x80   :  { %634 = vmatpush.msra.mxu0 %v4145_v35  ;;  %654 = vmatpush.msra.mxu1 %v4147_v36 }
  0x81   :  { %674 = vmatpush.msra.mxu2 %v4154_v38  ;;  %694 = vmatpush.msra.mxu3 %v4152_v37 }
  0x82   :  { %635 = vmatpush.msra.mxu0 %v4160_v40  ;;  %655 = vmatpush.msra.mxu1 %v4162_v41 }
  0x83   :  { %675 = vmatpush.msra.mxu2 %v4168_v43  ;;  %695 = vmatpush.msra.mxu3 %v4166_v42 }
  0x84   :  { %636 = vmatpush.msra.mxu0 %v4170_v44  ;;  %656 = vmatpush.msra.mxu1 %v4172_v45 }
  0x85   :  { %676 = vmatpush.msra.mxu2 %v4178_v47  ;;  %696 = vmatpush.msra.mxu3 %v4176_v46 }
  0x86   :  { %637 = vmatpush.msra.mxu0 %v4181_v48  ;;  %657 = vmatpush.msra.mxu1 %v4183_v49 }
  0x87   :  { %677 = vmatpush.msra.mxu2 %v4190_v51  ;;  %697 = vmatpush.msra.mxu3 %v4188_v50 }
  0x88   :  { %638 = vmatpush.msra.mxu0 %v4196_v53  ;;  %658 = vmatpush.msra.mxu1 %v4198_v54 }
  0x89   :  { %678 = vmatpush.msra.mxu2 %v4204_v56  ;;  %698 = vmatpush.msra.mxu3 %v4202_v55 }
  0x8a   :  { %639 = vmatpush.msra.mxu0 %v4206_v57  ;;  %659 = vmatpush.msra.mxu1 %v6324_v13 }
  0x8b   :  { %679 = vmatpush.msra.mxu2 %v4214_v60  ;;  %699 = vmatpush.msra.mxu3 %v4212_v59 }
  0x8c   :  { %640 = vmatpush.msra.mxu0 %v4217_v61  ;;  %660 = vmatpush.msra.mxu1 %v4219_v62 }
  0x8d   :  { %680 = vmatpush.msra.mxu2 %v4224_v63  ;;  %700 = vmatpush.msra.mxu3 %v6325_v0 }
  0x8e   :  { %641 = vmatpush.msra.mxu0 %v4232_v26  ;;  %661 = vmatpush.msra.mxu1 %v4234_v39 }
  0x8f   :  { %681 = vmatpush.msra.mxu2 %v4238_v52  ;;  %701 = vmatpush.msra.mxu3 %v4240_v58 }
  0x90   :  { %782 = vmatpush.msrb.mxu0 %v4054_v1  ;;  %802 = vmatpush.msrb.mxu1 %v4056_v2 }
  0x91   :  { %822 = vmatpush.msrb.mxu2 %v4060_v4  ;;  %842 = vmatpush.msrb.mxu3 %v4058_v3 }
  0x92   :  { %783 = vmatpush.msrb.mxu0 %v4062_v5  ;;  %803 = vmatpush.msrb.mxu1 %v4064_v6 }
  0x93   :  { %823 = vmatpush.msrb.mxu2 %v4070_v8  ;;  %843 = vmatpush.msrb.mxu3 %v4068_v7 }
  0x94   :  { %784 = vmatpush.msrb.mxu0 %v4073_v9  ;;  %804 = vmatpush.msrb.mxu1 %v4075_v10 }
  0x95   :  { %824 = vmatpush.msrb.mxu2 %v4082_v12  ;;  %844 = vmatpush.msrb.mxu3 %v4080_v11 }
  0x96   :  { %785 = vmatpush.msrb.mxu0 %v4088_v14  ;;  %805 = vmatpush.msrb.mxu1 %v4090_v15 }
  0x97   :  { %825 = vmatpush.msrb.mxu2 %v4096_v17  ;;  %845 = vmatpush.msrb.mxu3 %v4094_v16 }
  0x98   :  { %786 = vmatpush.msrb.mxu0 %v4098_v18  ;;  %806 = vmatpush.msrb.mxu1 %v4100_v19 }
  0x99   :  { %826 = vmatpush.msrb.mxu2 %v4106_v21  ;;  %846 = vmatpush.msrb.mxu3 %v4104_v20 }
  0x9a   :  { %787 = vmatpush.msrb.mxu0 %v4109_v22  ;;  %807 = vmatpush.msrb.mxu1 %v4111_v23 }
  0x9b   :  { %827 = vmatpush.msrb.mxu2 %v4118_v25  ;;  %847 = vmatpush.msrb.mxu3 %v4116_v24 }
  0x9c   :  { %788 = vmatpush.msrb.mxu0 %v4124_v27  ;;  %808 = vmatpush.msrb.mxu1 %v4126_v28 }
  0x9d   :  { %828 = vmatpush.msrb.mxu2 %v4132_v30  ;;  %848 = vmatpush.msrb.mxu3 %v4130_v29 }
  0x9e   :  { %789 = vmatpush.msrb.mxu0 %v4134_v31  ;;  %809 = vmatpush.msrb.mxu1 %v4136_v32 }
  0x9f   :  { %829 = vmatpush.msrb.mxu2 %v4142_v34  ;;  %849 = vmatpush.msrb.mxu3 %v4140_v33 }
  0xa0   :  { %790 = vmatpush.msrb.mxu0 %v4145_v35  ;;  %810 = vmatpush.msrb.mxu1 %v4147_v36 }
  0xa1   :  { %830 = vmatpush.msrb.mxu2 %v4154_v38  ;;  %850 = vmatpush.msrb.mxu3 %v4152_v37 }
  0xa2   :  { %791 = vmatpush.msrb.mxu0 %v4160_v40  ;;  %811 = vmatpush.msrb.mxu1 %v4162_v41 }
  0xa3   :  { %831 = vmatpush.msrb.mxu2 %v4168_v43  ;;  %851 = vmatpush.msrb.mxu3 %v4166_v42 }
  0xa4   :  { %792 = vmatpush.msrb.mxu0 %v4170_v44  ;;  %812 = vmatpush.msrb.mxu1 %v4172_v45 }
  0xa5   :  { %832 = vmatpush.msrb.mxu2 %v4178_v47  ;;  %852 = vmatpush.msrb.mxu3 %v4176_v46 }
  0xa6   :  { %793 = vmatpush.msrb.mxu0 %v4181_v48  ;;  %813 = vmatpush.msrb.mxu1 %v4183_v49 }
  0xa7   :  { %833 = vmatpush.msrb.mxu2 %v4190_v51  ;;  %853 = vmatpush.msrb.mxu3 %v4188_v50 }
  0xa8   :  { %794 = vmatpush.msrb.mxu0 %v4196_v53  ;;  %814 = vmatpush.msrb.mxu1 %v4198_v54 }
  0xa9   :  { %834 = vmatpush.msrb.mxu2 %v4204_v56  ;;  %854 = vmatpush.msrb.mxu3 %v4202_v55 }
  0xaa   :  { %795 = vmatpush.msrb.mxu0 %v4206_v57  ;;  %815 = vmatpush.msrb.mxu1 %v6324_v13 }
  0xab   :  { %835 = vmatpush.msrb.mxu2 %v4214_v60  ;;  %855 = vmatpush.msrb.mxu3 %v4212_v59 }
  0xac   :  { %796 = vmatpush.msrb.mxu0 %v4217_v61  ;;  %816 = vmatpush.msrb.mxu1 %v4219_v62 }
  0xad   :  { %836 = vmatpush.msrb.mxu2 %v4224_v63  ;;  %856 = vmatpush.msrb.mxu3 %v6325_v0 }
  0xae   :  { %797 = vmatpush.msrb.mxu0 %v4232_v26  ;;  %817 = vmatpush.msrb.mxu1 %v4234_v39 }
  0xaf   :  { %837 = vmatpush.msrb.mxu2 %v4238_v52  ;;  %857 = vmatpush.msrb.mxu3 %v4240_v58 }
  0xbb   :  { %v221_v13 = vpop.f32.mrf.mxu0  ;;  %v262_v60 = vpop.f32.mrf.mxu1 }
  0xc2   :  { %v303_v57 = vpop.f32.mrf.mxu2  ;;  %v344_v59 = vpop.f32.mrf.mxu3 }
  0xc3   :  { %v4378_v55 = vpop.f32.mrf.mxu0  ;;  %v4380_v61 = vpop.f32.mrf.mxu1 }
  0xc4   :  { %6326 = vst [vmem:[#allocation50_spill] sm:$0xff] %v4378_v55 }
  0xc5   :  { %6327 = vst [vmem:[#allocation51_spill] sm:$0xff] %v4380_v61 }
  0xca   :  { %v4382_v62 = vpop.f32.mrf.mxu2  ;;  %v4384_v63 = vpop.f32.mrf.mxu3 }
  0xcb   :  { %6328 = vst [vmem:[#allocation52_spill] sm:$0xff] %v4382_v62  ;;  %v4386_v0 = vpop.f32.mrf.mxu0  ;;  %v4388_v26 = vpop.f32.mrf.mxu1 }
  0xcc   :  { %6329 = vst [vmem:[#allocation53_spill] sm:$0xff] %v4384_v63 }
  0xcd   :  { %6330 = vst [vmem:[#allocation54_spill] sm:$0xff] %v4386_v0 }
  0xce   :  { %6331 = vst [vmem:[#allocation55_spill] sm:$0xff] %v4388_v26 }
  0xd2   :  { %v4390_v39 = vpop.f32.mrf.mxu2  ;;  %v4392_v52 = vpop.f32.mrf.mxu3 }
  0xd3   :  { %6332 = vst [vmem:[#allocation56_spill] sm:$0xff] %v4390_v39  ;;  %v4394_v58 = vpop.f32.mrf.mxu0  ;;  %v4396_v56 = vpop.f32.mrf.mxu1 }
  0xd4   :  { %6333 = vst [vmem:[#allocation57_spill] sm:$0xff] %v4392_v52 }
  0xd5   :  { %6334 = vst [vmem:[#allocation58_spill] sm:$0xff] %v4394_v58 }
  0xd6   :  { %6335 = vst [vmem:[#allocation59_spill] sm:$0xff] %v4396_v56 }
  0xda   :  { %v4398_v54 = vpop.f32.mrf.mxu2  ;;  %v4400_v55 = vpop.f32.mrf.mxu3 }
  0xdb   :  { %6336 = vst [vmem:[#allocation60_spill] sm:$0xff] %v4398_v54  ;;  %v4402_v61 = vpop.f32.mrf.mxu0  ;;  %v4404_v62 = vpop.f32.mrf.mxu1 }
  0xdc   :  { %6337 = vst [vmem:[#allocation61_spill] sm:$0xff] %v4400_v55 }
  0xdd   :  { %6338 = vst [vmem:[#allocation62_spill] sm:$0xff] %v4402_v61  ;;  %v194_v61 = vld [vmem:[#allocation10] sm:$0xf] }
  0xde   :  { %6339 = vst [vmem:[#allocation63_spill] sm:$0xff] %v4404_v62  ;;  %v4438_v51 = vperm.slane %v194_v61, 3 }
  0xe0   :  { %6355 = vst [vmem:[#allocation79_spill] sm:$0xff] %v4438_v51  ;;  %v345_v49 = vadd.f32 %v344_v59, %v4438_v51 }
  0xe2   :  { %v4406_v63 = vpop.f32.mrf.mxu3  ;;  %v4412_v39 = vpop.f32.mrf.mxu2 }
  0xe3   :  { %6340 = vst [vmem:[#allocation64_spill] sm:$0xff] %v4406_v63  ;;  %v4408_v0 = vpop.f32.mrf.mxu0  ;;  %v4410_v26 = vpop.f32.mrf.mxu1 }
  0xe4   :  { %6341 = vst [vmem:[#allocation65_spill] sm:$0xff] %v4408_v0  ;;  %v4428_v0 = vperm.slane %v194_v61, 0 }
  0xe5   :  { %6342 = vst [vmem:[#allocation66_spill] sm:$0xff] %v4410_v26  ;;  %v4430_v26 = vperm.slane %v194_v61, 1 }
  0xe6   :  { %6343 = vst [vmem:[#allocation67_spill] sm:$0xff] %v4412_v39 }
  0xe7   :  { %6351 = vst [vmem:[#allocation75_spill] sm:$0xff] %v4428_v0 }
  0xe8   :  { %6352 = vst [vmem:[#allocation76_spill] sm:$0xff] %v4430_v26 }
  0xea   :  { %v4414_v52 = vpop.f32.mrf.mxu3  ;;  %v4420_v54 = vpop.f32.mrf.mxu2 }
  0xeb   :  { %6344 = vst [vmem:[#allocation68_spill] sm:$0xff] %v4414_v52  ;;  %v4416_v58 = vpop.f32.mrf.mxu0  ;;  %v4418_v56 = vpop.f32.mrf.mxu1  ;;  %v222_v52 = vadd.f32 %v221_v13, %v4428_v0 }
  0xec   :  { %6345 = vst [vmem:[#allocation69_spill] sm:$0xff] %v4416_v58  ;;  %v263_v58 = vadd.f32 %v262_v60, %v4430_v26 }
  0xed   :  { %6346 = vst [vmem:[#allocation70_spill] sm:$0xff] %v4418_v56 }
  0xee   :  { %6347 = vst [vmem:[#allocation71_spill] sm:$0xff] %v4420_v54 }
  0xf2   :  { %v4422_v55 = vpop.f32.mrf.mxu3  ;;  %v4432_v39 = vpop.f32.mrf.mxu2 }
  0xf3   :  { %6348 = vst [vmem:[#allocation72_spill] sm:$0xff] %v4422_v55  ;;  %v4424_v62 = vpop.f32.mrf.mxu0  ;;  %v4426_v63 = vpop.f32.mrf.mxu1 }
  0xf4   :  { %6349 = vst [vmem:[#allocation73_spill] sm:$0xff] %v4424_v62 }
  0xf5   :  { %6350 = vst [vmem:[#allocation74_spill] sm:$0xff] %v4426_v63 }
  0xf6   :  { %6353 = vst [vmem:[#allocation77_spill] sm:$0xff] %v4432_v39 }
  0xfa   :  { %v4436_v56 = vpop.f32.mrf.mxu3  ;;  %v4441_v48 = vpop.f32.mrf.mxu2 }
  0xfb   :  { %6354 = vst [vmem:[#allocation78_spill] sm:$0xff] %v4436_v56  ;;  %v488_v54 = vpop.f32.mrf.mxu0  ;;  %v508_v53 = vpop.f32.mrf.mxu1 }
  0xfc   :  { %v551_v55 = vadd.f32 %v488_v54, %v222_v52  ;;  %v552_v50 = vadd.f32 %v508_v53, %v263_v58  ;;  %6356 = vst [vmem:[#allocation80_spill] sm:$0xff] %v4441_v48  ;;  %v4443_v54 = vperm.slane %v194_v61, 2 }
  0xfe   :  { %v3314_v62 = vmul.f32 -1.442695, %v551_v55  ;;  %v3315_v63 = vmul.f32 -1.442695, %v552_v50  ;;  %6357 = vst [vmem:[#allocation81_spill] sm:$0xff] %v4443_v54  ;;  %v304_v55 = vadd.f32 %v303_v57, %v4443_v54 }
 0x100   :  { %3375 = vpow2.f32 %v3314_v62 }
 0x101   :  { %3377 = vpow2.f32 %v3315_v63 }
 0x102   :  { %v548_v39 = vpop.f32.mrf.mxu3  ;;  %v528_v53 = vpop.f32.mrf.mxu2 }
 0x103   :  { %v554_v13 = vadd.f32 %v548_v39, %v345_v49  ;;  %v553_v62 = vadd.f32 %v528_v53, %v304_v55 }
 0x105   :  { %v3316_v0 = vmul.f32 -1.442695, %v554_v13 }
 0x106   :  { %v3376_v60 = vpop.eup %3375 }
 0x107   :  { %v3378_v26 = vpop.eup %3377  ;;  %v558_v56 = vadd.f32 1.0, %v3376_v60  ;;  %3379 = vpow2.f32 %v3316_v0 }
 0x108   :  { %v577_v46 = vadd.f32 1.0, %v3378_v26 }
 0x109   :  { %3381 = vrcp.f32 %v558_v56  ;;  %v570_v60 = vand.u32 2147483648, %v558_v56  ;;  %v568_v0 = vand.u32 2147483647, %v558_v56  ;;  %vm564_vm2 = vweird.f32 %v558_v56 }
 0x10a   :  { %3383 = vrcp.f32 %v577_v46  ;;  %v589_v26 = vand.u32 2147483648, %v577_v46  ;;  %v587_v51 = vand.u32 2147483647, %v577_v46  ;;  %vm583_vm3 = vweird.f32 %v577_v46 }
 0x10b   :  { %v571_v53 = vor.u32 1.1754944e-38, %v570_v60  ;;  %vm569_vm5 = vcmp.eq.f32.partialorder %v568_v0, 8.507059e+37 }
 0x10c   :  { %v590_v54 = vor.u32 1.1754944e-38, %v589_v26  ;;  %vm588_vm7 = vcmp.eq.f32.partialorder %v587_v51, 8.507059e+37 }
 0x10d   :  { %v3380_v50 = vpop.eup %3379 }
 0x10e   :  { %v597_v58 = vadd.f32 1.0, %v3380_v50 }
 0x10f   :  { %v3382_v59 = vpop.eup %3381 }
 0x110   :  { %v3384_v63 = vpop.eup %3383  ;;  %v560_v52 = vmul.f32 %v3382_v59, %v558_v56  ;;  %3385 = vrcp.f32 %v597_v58  ;;  %vm565_vm0 = vweird.f32 %v3382_v59  ;;  %vm603_vm9 = vweird.f32 %v597_v58 }
 0x111   :  { %v579_v49 = vmul.f32 %v3384_v63, %v577_v46  ;;  %3387 = vtanh.f32 %v553_v62  ;;  %vm584_vm1 = vweird.f32 %v3384_v63  ;;  %vm566_vm4 = vmor %vm564_vm2, %vm565_vm0  ;;  %v607_v56 = vand.u32 2147483647, %v597_v58 }
 0x112   :  { %v561_v39 = vsub.f32 1.0, %v560_v52  ;;  %vm585_vm6 = vmor %vm583_vm3, %vm584_vm1 }
 0x113   :  { %v580_v13 = vsub.f32 1.0, %v579_v49  ;;  %vm608_vm11 = vcmp.eq.f32.partialorder %v607_v56, 8.507059e+37 }
 0x114   :  { %v562_v61 = vmul.f32 %v3382_v59, %v561_v39 }
 0x115   :  { %v581_v48 = vmul.f32 %v3384_v63, %v580_v13 }
 0x116   :  { %v3386_v47 = vpop.eup %3385  ;;  %v563_v57 = vadd.f32 %v3382_v59, %v562_v61 }
 0x117   :  { %v582_v50 = vadd.f32 %v3384_v63, %v581_v48  ;;  %v599_v55 = vmul.f32 %v3386_v47, %v597_v58  ;;  %v3388_v62 = vpop.eup %3387  ;;  %vm604_vm8 = vweird.f32 %v3386_v47  ;;  %v609_v48 = vand.u32 2147483648, %v597_v58 }
 0x118   :  { %v567_v52 = vsel %vm566_vm4, %v3382_v59, %v563_v57  ;;  %vm605_vm10 = vmor %vm603_vm9, %vm604_vm8 }
 0x119   :  { %v572_v49 = vsel %vm569_vm5, %v571_v53, %v567_v52  ;;  %v586_v39 = vsel %vm585_vm6, %v3384_v63, %v582_v50  ;;  %v600_v45 = vsub.f32 1.0, %v599_v55  ;;  %v610_v60 = vor.u32 1.1754944e-38, %v609_v48  ;;  %v6391_v52 = vld [vmem:[#allocation81_spill] sm:$0xff] }
 0x11a   :  { %v591_v13 = vsel %vm588_vm7, %v590_v54, %v586_v39  ;;  %v614_v44 = vmul.f32 %v3388_v62, %v572_v49  ;;  %v6392_v62 = vld [vmem:[#allocation52_spill] sm:$0xff] }
 0x11b   :  { %v613_v42 = vmul.f32 0.0, %v591_v13  ;;  %v601_v43 = vmul.f32 %v3386_v47, %v600_v45  ;;  %v307_v49 = vadd.f32 %v6392_v62, %v6391_v52 }
 0x11d   :  { %v4446_v61 = vadd.f32 %v614_v44, %v613_v42  ;;  %v602_v46 = vadd.f32 %v3386_v47, %v601_v43  ;;  %v6389_v42 = vld [vmem:[#allocation79_spill] sm:$0xff]  ;;  %v6390_v43 = vld [vmem:[#allocation53_spill] sm:$0xff] }
 0x11e   :  { %v348_v44 = vadd.f32 %v6390_v43, %v6389_v42 }
 0x11f   :  { %3389 = vtanh.f32 %v4446_v61  ;;  %v606_v59 = vsel %vm605_vm10, %v3386_v47, %v602_v46 }
 0x120   :  { %v611_v51 = vsel %vm608_vm11, %v610_v60, %v606_v59 }
 0x125   :  { %v3390_v63 = vpop.eup %3389 }
 0x126   :  { %v4449_v26 = vmul.f32 %v3390_v63, %v611_v51 }
 0x128   :  { %6358 = vst [vmem:[#allocation82_spill] sm:$0xff] %v4449_v26  ;;  %642 = vmatmul.f32.vlgmr.msra.gmra.mxu0 %v4449_v26  ;;  %662 = vmatmul.f32.vlgmr.msra.gmra.mxu1 %v4449_v26 }
 0x129   :  { %682 = vmatmul.f32.vlgmr.msra.gmra.mxu2 %v4449_v26  ;;  %702 = vmatmul.f32.vlgmr.msra.gmra.mxu3 %v4449_v26  ;;  %v4633_v26 = vld [vmem:[#allocation9 + $0xe0] sm:$0xff] }
 0x12a   :  { %938 = vmatpush.msra.mxu0 %v4054_v1  ;;  %958 = vmatpush.msra.mxu1 %v4056_v2  ;;  %v6359_v1 = vld [vmem:[#allocation25_spill] sm:$0xff]  ;;  %v6360_v2 = vld [vmem:[#allocation24_spill] sm:$0xff] }
 0x12b   :  { %978 = vmatpush.msra.mxu2 %v4060_v4  ;;  %998 = vmatpush.msra.mxu3 %v4058_v3  ;;  %v6361_v3 = vld [vmem:[#allocation26_spill] sm:$0xff]  ;;  %v6362_v4 = vld [vmem:[#allocation27_spill] sm:$0xff] }
 0x12c   :  { %939 = vmatpush.msra.mxu0 %v4062_v5  ;;  %959 = vmatpush.msra.mxu1 %v4064_v6  ;;  %v6363_v5 = vld [vmem:[#allocation29_spill] sm:$0xff]  ;;  %v6364_v6 = vld [vmem:[#allocation28_spill] sm:$0xff] }
 0x12d   :  { %979 = vmatpush.msra.mxu2 %v4070_v8  ;;  %999 = vmatpush.msra.mxu3 %v4068_v7  ;;  %v6365_v7 = vld [vmem:[#allocation30_spill] sm:$0xff]  ;;  %v6366_v8 = vld [vmem:[#allocation31_spill] sm:$0xff] }
 0x12e   :  { %940 = vmatpush.msra.mxu0 %v4073_v9  ;;  %960 = vmatpush.msra.mxu1 %v4075_v10  ;;  %v6367_v9 = vld [vmem:[#allocation33_spill] sm:$0xff]  ;;  %v6368_v10 = vld [vmem:[#allocation32_spill] sm:$0xff] }
 0x12f   :  { %980 = vmatpush.msra.mxu2 %v4082_v12  ;;  %1000 = vmatpush.msra.mxu3 %v4080_v11  ;;  %v6369_v11 = vld [vmem:[#allocation34_spill] sm:$0xff]  ;;  %v6370_v12 = vld [vmem:[#allocation35_spill] sm:$0xff] }
 0x130   :  { %941 = vmatpush.msra.mxu0 %v4088_v14  ;;  %961 = vmatpush.msra.mxu1 %v4090_v15  ;;  %v6371_v14 = vld [vmem:[#allocation37_spill] sm:$0xff]  ;;  %v6372_v15 = vld [vmem:[#allocation36_spill] sm:$0xff] }
 0x131   :  { %981 = vmatpush.msra.mxu2 %v4096_v17  ;;  %1001 = vmatpush.msra.mxu3 %v4094_v16  ;;  %v6373_v16 = vld [vmem:[#allocation38_spill] sm:$0xff]  ;;  %v6374_v17 = vld [vmem:[#allocation39_spill] sm:$0xff] }
 0x132   :  { %942 = vmatpush.msra.mxu0 %v4098_v18  ;;  %962 = vmatpush.msra.mxu1 %v4100_v19  ;;  %v6375_v18 = vld [vmem:[#allocation41_spill] sm:$0xff]  ;;  %v6376_v19 = vld [vmem:[#allocation40_spill] sm:$0xff] }
 0x133   :  { %982 = vmatpush.msra.mxu2 %v4106_v21  ;;  %1002 = vmatpush.msra.mxu3 %v4104_v20  ;;  %v6377_v20 = vld [vmem:[#allocation42_spill] sm:$0xff]  ;;  %v6378_v21 = vld [vmem:[#allocation43_spill] sm:$0xff] }
 0x134   :  { %943 = vmatpush.msra.mxu0 %v4109_v22  ;;  %963 = vmatpush.msra.mxu1 %v4111_v23  ;;  %v6379_v22 = vld [vmem:[#allocation44_spill] sm:$0xff]  ;;  %v6380_v23 = vld [vmem:[#allocation45_spill] sm:$0xff] }
 0x135   :  { %983 = vmatpush.msra.mxu2 %v4118_v25  ;;  %1003 = vmatpush.msra.mxu3 %v4116_v24  ;;  %v6381_v24 = vld [vmem:[#allocation46_spill] sm:$0xff]  ;;  %v6382_v25 = vld [vmem:[#allocation47_spill] sm:$0xff] }
 0x136   :  { %944 = vmatpush.msra.mxu0 %v4124_v27  ;;  %964 = vmatpush.msra.mxu1 %v4126_v28  ;;  %v6383_v27 = vld [vmem:[#allocation48_spill] sm:$0xff]  ;;  %v6384_v28 = vld [vmem:[#allocation49_spill] sm:$0xff] }
 0x137   :  { %984 = vmatpush.msra.mxu2 %v4132_v30  ;;  %1004 = vmatpush.msra.mxu3 %v4130_v29  ;;  %v6385_v29 = vld [vmem:[#allocation75_spill] sm:$0xff]  ;;  %v6386_v30 = vld [vmem:[#allocation50_spill] sm:$0xff] }
 0x138   :  { %945 = vmatpush.msra.mxu0 %v4134_v31  ;;  %965 = vmatpush.msra.mxu1 %v4136_v32  ;;  %v225_v31 = vadd.f32 %v6386_v30, %v6385_v29  ;;  %v6387_v32 = vld [vmem:[#allocation76_spill] sm:$0xff] }
 0x139   :  { %985 = vmatpush.msra.mxu2 %v4142_v34  ;;  %1005 = vmatpush.msra.mxu3 %v4140_v33  ;;  %v6388_v33 = vld [vmem:[#allocation51_spill] sm:$0xff] }
 0x13a   :  { %946 = vmatpush.msra.mxu0 %v4145_v35  ;;  %966 = vmatpush.msra.mxu1 %v4147_v36  ;;  %v266_v34 = vadd.f32 %v6388_v33, %v6387_v32 }
 0x13b   :  { %986 = vmatpush.msra.mxu2 %v4154_v38  ;;  %1006 = vmatpush.msra.mxu3 %v4152_v37 }
 0x13c   :  { %947 = vmatpush.msra.mxu0 %v4160_v40  ;;  %967 = vmatpush.msra.mxu1 %v4162_v41 }
 0x13d   :  { %987 = vmatpush.msra.mxu2 %v6359_v1  ;;  %1007 = vmatpush.msra.mxu3 %v6360_v2 }
 0x13e   :  { %948 = vmatpush.msra.mxu0 %v6361_v3  ;;  %968 = vmatpush.msra.mxu1 %v6362_v4 }
 0x13f   :  { %988 = vmatpush.msra.mxu2 %v6363_v5  ;;  %1008 = vmatpush.msra.mxu3 %v6364_v6 }
 0x140   :  { %949 = vmatpush.msra.mxu0 %v6365_v7  ;;  %969 = vmatpush.msra.mxu1 %v6366_v8 }
 0x141   :  { %989 = vmatpush.msra.mxu2 %v6367_v9  ;;  %1009 = vmatpush.msra.mxu3 %v6368_v10 }
 0x142   :  { %950 = vmatpush.msra.mxu0 %v6369_v11  ;;  %970 = vmatpush.msra.mxu1 %v6370_v12 }
 0x143   :  { %990 = vmatpush.msra.mxu2 %v6371_v14  ;;  %1010 = vmatpush.msra.mxu3 %v6372_v15 }
 0x144   :  { %951 = vmatpush.msra.mxu0 %v6373_v16  ;;  %971 = vmatpush.msra.mxu1 %v6374_v17 }
 0x145   :  { %991 = vmatpush.msra.mxu2 %v6375_v18  ;;  %1011 = vmatpush.msra.mxu3 %v6376_v19 }
 0x146   :  { %952 = vmatpush.msra.mxu0 %v6377_v20  ;;  %972 = vmatpush.msra.mxu1 %v6378_v21 }
 0x147   :  { %992 = vmatpush.msra.mxu2 %v6379_v22  ;;  %1012 = vmatpush.msra.mxu3 %v6380_v23 }
 0x148   :  { %953 = vmatpush.msra.mxu0 %v6381_v24  ;;  %973 = vmatpush.msra.mxu1 %v6382_v25 }
 0x149   :  { %993 = vmatpush.msra.mxu2 %v6383_v27  ;;  %1013 = vmatpush.msra.mxu3 %v6384_v28 }
 0x1a5   :  { %v643_v35 = vpop.f32.mrf.mxu0  ;;  %v663_v36 = vpop.f32.mrf.mxu1 }
 0x1a6   :  { %v706_v37 = vadd.f32 %v643_v35, %v225_v31  ;;  %v707_v38 = vadd.f32 %v663_v36, %v266_v34 }
 0x1a8   :  { %v3317_v40 = vmul.f32 -1.442695, %v706_v37  ;;  %v3318_v41 = vmul.f32 -1.442695, %v707_v38 }
 0x1aa   :  { %3391 = vpow2.f32 %v3317_v40 }
 0x1ab   :  { %3393 = vpow2.f32 %v3318_v41 }
 0x1ac   :  { %v703_v45 = vpop.f32.mrf.mxu3  ;;  %v683_v50 = vpop.f32.mrf.mxu2 }
 0x1ad   :  { %v709_v47 = vadd.f32 %v703_v45, %v348_v44  ;;  %v708_v46 = vadd.f32 %v683_v50, %v307_v49 }
 0x1af   :  { %v3319_v54 = vmul.f32 -1.442695, %v709_v47 }
 0x1b0   :  { %v3392_v58 = vpop.eup %3391 }
 0x1b1   :  { %v3394_v0 = vpop.eup %3393  ;;  %v713_v57 = vadd.f32 1.0, %v3392_v58  ;;  %3395 = vpow2.f32 %v3319_v54 }
 0x1b2   :  { %v732_v53 = vadd.f32 1.0, %v3394_v0 }
 0x1b3   :  { %3397 = vrcp.f32 %v713_v57  ;;  %v725_v51 = vand.u32 2147483648, %v713_v57  ;;  %v723_v33 = vand.u32 2147483647, %v713_v57  ;;  %vm719_vm14 = vweird.f32 %v713_v57 }
 0x1b4   :  { %3399 = vrcp.f32 %v732_v53  ;;  %v744_v30 = vand.u32 2147483648, %v732_v53  ;;  %v742_v35 = vand.u32 2147483647, %v732_v53  ;;  %vm738_vm15 = vweird.f32 %v732_v53 }
 0x1b5   :  { %v726_v38 = vor.u32 1.1754944e-38, %v725_v51  ;;  %vm724_vm2 = vcmp.eq.f32.partialorder %v723_v33, 8.507059e+37  ;;  %v4546_v51 = vld [vmem:[#allocation9 + $0x1f8] sm:$0xff]  ;;  %v4555_v33 = vld [vmem:[#allocation9 + $0x1d0] sm:$0xff] }
 0x1b6   :  { %v745_v43 = vor.u32 1.1754944e-38, %v744_v30  ;;  %vm743_vm3 = vcmp.eq.f32.partialorder %v742_v35, 8.507059e+37  ;;  %v4549_v30 = vld [vmem:[#allocation9 + $0x1c0] sm:$0xff] }
 0x1b7   :  { %v3396_v55 = vpop.eup %3395  ;;  %v4561_v35 = vld [vmem:[#allocation9 + $0x1a0] sm:$0xff] }
 0x1b8   :  { %v752_v39 = vadd.f32 1.0, %v3396_v55 }
 0x1b9   :  { %v3398_v13 = vpop.eup %3397 }
 0x1ba   :  { %v3400_v48 = vpop.eup %3399  ;;  %v715_v56 = vmul.f32 %v3398_v13, %v713_v57  ;;  %3401 = vrcp.f32 %v752_v39  ;;  %vm720_vm12 = vweird.f32 %v3398_v13  ;;  %v764_v49 = vand.u32 2147483648, %v752_v39 }
 0x1bb   :  { %v734_v59 = vmul.f32 %v3400_v48, %v732_v53  ;;  %3403 = vtanh.f32 %v708_v46  ;;  %vm739_vm13 = vweird.f32 %v3400_v48  ;;  %vm721_vm0 = vmor %vm719_vm14, %vm720_vm12  ;;  %vm758_vm5 = vweird.f32 %v752_v39 }
 0x1bc   :  { %v716_v60 = vsub.f32 1.0, %v715_v56  ;;  %vm740_vm1 = vmor %vm738_vm15, %vm739_vm13  ;;  %v765_v56 = vor.u32 1.1754944e-38, %v764_v49  ;;  %v4612_v49 = vld [vmem:[#allocation9 + $0x128] sm:$0xff] }
 0x1bd   :  { %v735_v63 = vsub.f32 1.0, %v734_v59 }
 0x1be   :  { %v717_v31 = vmul.f32 %v3398_v13, %v716_v60 }
 0x1bf   :  { %v736_v34 = vmul.f32 %v3400_v48, %v735_v63  ;;  %v4543_v63 = vld [vmem:[#allocation9 + $0x1f0] sm:$0xff] }
 0x1c0   :  { %v3402_v36 = vpop.eup %3401  ;;  %v718_v37 = vadd.f32 %v3398_v13, %v717_v31  ;;  %v4552_v31 = vld [vmem:[#allocation9 + $0x1c8] sm:$0xff] }
 0x1c1   :  { %v737_v40 = vadd.f32 %v3400_v48, %v736_v34  ;;  %v754_v41 = vmul.f32 %v3402_v36, %v752_v39  ;;  %v3404_v45 = vpop.eup %3403  ;;  %vm759_vm4 = vweird.f32 %v3402_v36  ;;  %v4558_v34 = vld [vmem:[#allocation9 + $0x1d8] sm:$0xff] }
 0x1c2   :  { %v722_v44 = vsel %vm721_vm0, %v3398_v13, %v718_v37  ;;  %v762_v13 = vand.u32 2147483647, %v752_v39  ;;  %vm760_vm6 = vmor %vm758_vm5, %vm759_vm4  ;;  %v4540_v39 = vld [vmem:[#allocation9 + $0x1e8] sm:$0xff]  ;;  %v4567_v37 = vld [vmem:[#allocation9 + $0x1b0] sm:$0xff] }
 0x1c3   :  { %v727_v47 = vsel %vm724_vm2, %v726_v38, %v722_v44  ;;  %v741_v54 = vsel %vm740_vm1, %v3400_v48, %v737_v40  ;;  %v755_v58 = vsub.f32 1.0, %v754_v41  ;;  %v4570_v38 = vld [vmem:[#allocation9 + $0x1b8] sm:$0xff]  ;;  %v4573_v40 = vld [vmem:[#allocation9 + $0x180] sm:$0xff]  ;;  %v4576_v41 = vld [vmem:[#allocation9 + $0x188] sm:$0xff] }
 0x1c4   :  { %v746_v0 = vsel %vm743_vm3, %v745_v43, %v741_v54  ;;  %v769_v50 = vmul.f32 %v3404_v45, %v727_v47  ;;  %vm763_vm7 = vcmp.eq.f32.partialorder %v762_v13, 8.507059e+37  ;;  %v4579_v43 = vld [vmem:[#allocation9 + $0x190] sm:$0xff]  ;;  %v4582_v44 = vld [vmem:[#allocation9 + $0x198] sm:$0xff]  ;;  %v4585_v45 = vld [vmem:[#allocation9 + $0x160] sm:$0xff] }
 0x1c5   :  { %v768_v55 = vmul.f32 %v746_v0, %v4446_v61  ;;  %v756_v62 = vmul.f32 %v3402_v36, %v755_v58  ;;  %v4537_v61 = vld [vmem:[#allocation9 + $0x1e0] sm:$0xff]  ;;  %v4588_v47 = vld [vmem:[#allocation9 + $0x168] sm:$0xff]  ;;  %v4591_v54 = vld [vmem:[#allocation9 + $0x170] sm:$0xff] }
 0x1c6   :  { %v4594_v58 = vld [vmem:[#allocation9 + $0x178] sm:$0xff]  ;;  %v4597_v0 = vld [vmem:[#allocation9 + $0x140] sm:$0xff]  ;;  %v4615_v13 = vld [vmem:[#allocation9 + $0x130] sm:$0xff] }
 0x1c7   :  { %v4528_v57 = vadd.f32 %v769_v50, %v768_v55  ;;  %v757_v53 = vadd.f32 %v3402_v36, %v756_v62  ;;  %v4600_v50 = vld [vmem:[#allocation9 + $0x148] sm:$0xff]  ;;  %v4603_v55 = vld [vmem:[#allocation9 + $0x150] sm:$0xff]  ;;  %v4606_v62 = vld [vmem:[#allocation9 + $0x158] sm:$0xff] }
 0x1c9   :  { %3405 = vtanh.f32 %v4528_v57  ;;  %v761_v46 = vsel %vm760_vm6, %v3402_v36, %v757_v53  ;;  %v4564_v36 = vld [vmem:[#allocation9 + $0x1a8] sm:$0xff]  ;;  %v4609_v53 = vld [vmem:[#allocation9 + $0x120] sm:$0xff] }
 0x1ca   :  { %v766_v59 = vsel %vm763_vm7, %v765_v56, %v761_v46  ;;  %v4618_v46 = vld [vmem:[#allocation9 + $0x138] sm:$0xff]  ;;  %v4621_v56 = vld [vmem:[#allocation9 + $0x100] sm:$0xff] }
 0x1cb   :  { %6394 = vst [vmem:[#allocation24_spill] sm:$0xff] %v4618_v46 }
 0x1cc   :  { %6395 = vst [vmem:[#allocation26_spill] sm:$0xff] %v4621_v56 }
 0x1cf   :  { %v3406_v48 = vpop.eup %3405 }
 0x1d0   :  { %v4531_v60 = vmul.f32 %v3406_v48, %v766_v59  ;;  %v4624_v48 = vld [vmem:[#allocation9 + $0x108] sm:$0xff]  ;;  %v4627_v59 = vld [vmem:[#allocation9 + $0x110] sm:$0xff] }
 0x1d1   :  { %6396 = vst [vmem:[#allocation27_spill] sm:$0xff] %v4624_v48 }
 0x1d2   :  { %6393 = vst [vmem:[#allocation25_spill] sm:$0xff] %v4531_v60  ;;  %798 = vmatmul.f32.vlgmr.msrb.gmra.mxu0 %v4531_v60  ;;  %818 = vmatmul.f32.vlgmr.msrb.gmra.mxu1 %v4531_v60 }
 0x1d3   :  { %838 = vmatmul.f32.vlgmr.msrb.gmra.mxu2 %v4531_v60  ;;  %858 = vmatmul.f32.vlgmr.msrb.gmra.mxu3 %v4531_v60  ;;  %6397 = vst [vmem:[#allocation29_spill] sm:$0xff] %v4627_v59  ;;  %v4630_v60 = vld [vmem:[#allocation9 + $0x118] sm:$0xff] }
 0x1d4   :  { %1094 = vmatpush.msrb.mxu0 %v4537_v61  ;;  %1114 = vmatpush.msrb.mxu1 %v4540_v39  ;;  %6398 = vst [vmem:[#allocation28_spill] sm:$0xff] %v4630_v60 }
 0x1d5   :  { %1134 = vmatpush.msrb.mxu2 %v4543_v63  ;;  %1154 = vmatpush.msrb.mxu3 %v4546_v51 }
 0x1d6   :  { %1095 = vmatpush.msrb.mxu0 %v4549_v30  ;;  %1115 = vmatpush.msrb.mxu1 %v4552_v31 }
 0x1d7   :  { %1135 = vmatpush.msrb.mxu2 %v4555_v33  ;;  %1155 = vmatpush.msrb.mxu3 %v4558_v34 }
 0x1d8   :  { %1096 = vmatpush.msrb.mxu0 %v4561_v35  ;;  %1116 = vmatpush.msrb.mxu1 %v4564_v36 }
 0x1d9   :  { %1136 = vmatpush.msrb.mxu2 %v4567_v37  ;;  %1156 = vmatpush.msrb.mxu3 %v4570_v38 }
 0x1da   :  { %1097 = vmatpush.msrb.mxu0 %v4573_v40  ;;  %1117 = vmatpush.msrb.mxu1 %v4576_v41 }
 0x1db   :  { %1137 = vmatpush.msrb.mxu2 %v4579_v43  ;;  %1157 = vmatpush.msrb.mxu3 %v4582_v44 }
 0x1dc   :  { %1098 = vmatpush.msrb.mxu0 %v4585_v45  ;;  %1118 = vmatpush.msrb.mxu1 %v4588_v47 }
 0x1dd   :  { %1138 = vmatpush.msrb.mxu2 %v4591_v54  ;;  %1158 = vmatpush.msrb.mxu3 %v4594_v58 }
 0x1de   :  { %1099 = vmatpush.msrb.mxu0 %v4597_v0  ;;  %1119 = vmatpush.msrb.mxu1 %v4600_v50 }
 0x1df   :  { %1139 = vmatpush.msrb.mxu2 %v4603_v55  ;;  %1159 = vmatpush.msrb.mxu3 %v4606_v62 }
 0x1e0   :  { %1100 = vmatpush.msrb.mxu0 %v4609_v53  ;;  %1120 = vmatpush.msrb.mxu1 %v4612_v49 }
 0x1e1   :  { %1140 = vmatpush.msrb.mxu2 %v4615_v13  ;;  %1160 = vmatpush.msrb.mxu3 %v4618_v46  ;;  %v4636_v46 = vld [vmem:[#allocation9 + $0xe8] sm:$0xff] }
 0x1e2   :  { %1101 = vmatpush.msrb.mxu0 %v4621_v56  ;;  %1121 = vmatpush.msrb.mxu1 %v4624_v48  ;;  %v4639_v56 = vld [vmem:[#allocation9 + $0xf0] sm:$0xff]  ;;  %v4642_v48 = vld [vmem:[#allocation9 + $0xf8] sm:$0xff] }
 0x1e3   :  { %1141 = vmatpush.msrb.mxu2 %v4627_v59  ;;  %1161 = vmatpush.msrb.mxu3 %v4630_v60  ;;  %v4645_v59 = vld [vmem:[#allocation9 + $0xc0] sm:$0xff]  ;;  %v4648_v60 = vld [vmem:[#allocation9 + $0xc8] sm:$0xff] }
 0x1e4   :  { %1102 = vmatpush.msrb.mxu0 %v4633_v26  ;;  %1122 = vmatpush.msrb.mxu1 %v4636_v46 }
 0x1e5   :  { %1142 = vmatpush.msrb.mxu2 %v4639_v56  ;;  %1162 = vmatpush.msrb.mxu3 %v4642_v48 }
 0x1e6   :  { %1103 = vmatpush.msrb.mxu0 %v4645_v59  ;;  %1123 = vmatpush.msrb.mxu1 %v4648_v60 }
 0x1e7   :  { %1143 = vmatpush.msrb.mxu2 %v6359_v1  ;;  %1163 = vmatpush.msrb.mxu3 %v6360_v2  ;;  %v6399_v1 = vld [vmem:[#allocation54_spill] sm:$0xff] }
 0x1e8   :  { %1104 = vmatpush.msrb.mxu0 %v6361_v3  ;;  %1124 = vmatpush.msrb.mxu1 %v6362_v4  ;;  %v228_v2 = vadd.f32 %v6399_v1, %v6385_v29  ;;  %v6400_v3 = vld [vmem:[#allocation55_spill] sm:$0xff] }
 0x1e9   :  { %1144 = vmatpush.msrb.mxu2 %v6363_v5  ;;  %1164 = vmatpush.msrb.mxu3 %v6364_v6  ;;  %v269_v4 = vadd.f32 %v6400_v3, %v6387_v32 }
 0x1ea   :  { %1105 = vmatpush.msrb.mxu0 %v6365_v7  ;;  %1125 = vmatpush.msrb.mxu1 %v6366_v8 }
 0x1eb   :  { %1145 = vmatpush.msrb.mxu2 %v6367_v9  ;;  %1165 = vmatpush.msrb.mxu3 %v6368_v10 }
 0x1ec   :  { %1106 = vmatpush.msrb.mxu0 %v6369_v11  ;;  %1126 = vmatpush.msrb.mxu1 %v6370_v12  ;;  %v6401_v11 = vld [vmem:[#allocation57_spill] sm:$0xff] }
 0x1ed   :  { %1146 = vmatpush.msrb.mxu2 %v6371_v14  ;;  %1166 = vmatpush.msrb.mxu3 %v6372_v15  ;;  %v351_v12 = vadd.f32 %v6401_v11, %v6389_v42 }
 0x1ee   :  { %1107 = vmatpush.msrb.mxu0 %v6373_v16  ;;  %1127 = vmatpush.msrb.mxu1 %v6374_v17 }
 0x1ef   :  { %1147 = vmatpush.msrb.mxu2 %v6375_v18  ;;  %1167 = vmatpush.msrb.mxu3 %v6376_v19 }
 0x1f0   :  { %1108 = vmatpush.msrb.mxu0 %v6377_v20  ;;  %1128 = vmatpush.msrb.mxu1 %v6378_v21 }
 0x1f1   :  { %1148 = vmatpush.msrb.mxu2 %v6379_v22  ;;  %1168 = vmatpush.msrb.mxu3 %v6380_v23  ;;  %v6402_v23 = vld [vmem:[#allocation56_spill] sm:$0xff] }
 0x1f2   :  { %1109 = vmatpush.msrb.mxu0 %v6381_v24  ;;  %1129 = vmatpush.msrb.mxu1 %v6382_v25  ;;  %v310_v24 = vadd.f32 %v6402_v23, %v6391_v52 }
 0x1f3   :  { %1149 = vmatpush.msrb.mxu2 %v6383_v27  ;;  %1169 = vmatpush.msrb.mxu3 %v6384_v28 }
 0x24f   :  { %v799_v5 = vpop.f32.mrf.mxu0  ;;  %v819_v6 = vpop.f32.mrf.mxu1 }
 0x250   :  { %v862_v7 = vadd.f32 %v799_v5, %v228_v2  ;;  %v863_v8 = vadd.f32 %v819_v6, %v269_v4 }
 0x252   :  { %v3320_v9 = vmul.f32 -1.442695, %v862_v7  ;;  %v3321_v10 = vmul.f32 -1.442695, %v863_v8 }
 0x254   :  { %3407 = vpow2.f32 %v3320_v9 }
 0x255   :  { %3409 = vpow2.f32 %v3321_v10 }
 0x256   :  { %v859_v14 = vpop.f32.mrf.mxu3  ;;  %v839_v21 = vpop.f32.mrf.mxu2 }
 0x257   :  { %v865_v15 = vadd.f32 %v859_v14, %v351_v12  ;;  %v864_v28 = vadd.f32 %v839_v21, %v310_v24 }
 0x259   :  { %v3322_v16 = vmul.f32 -1.442695, %v865_v15 }
 0x25a   :  { %v3408_v17 = vpop.eup %3407 }
 0x25b   :  { %v3410_v18 = vpop.eup %3409  ;;  %v869_v19 = vadd.f32 1.0, %v3408_v17  ;;  %3411 = vpow2.f32 %v3322_v16 }
 0x25c   :  { %v888_v20 = vadd.f32 1.0, %v3410_v18 }
 0x25d   :  { %3413 = vrcp.f32 %v869_v19  ;;  %v881_v6 = vand.u32 2147483648, %v869_v19  ;;  %v879_v9 = vand.u32 2147483647, %v869_v19  ;;  %vm875_vm10 = vweird.f32 %v869_v19 }
 0x25e   :  { %3415 = vrcp.f32 %v888_v20  ;;  %v900_v7 = vand.u32 2147483648, %v888_v20  ;;  %v898_v11 = vand.u32 2147483647, %v888_v20  ;;  %vm894_vm11 = vweird.f32 %v888_v20 }
 0x25f   :  { %v882_v15 = vor.u32 1.1754944e-38, %v881_v6  ;;  %vm880_vm14 = vcmp.eq.f32.partialorder %v879_v9, 8.507059e+37 }
 0x260   :  { %v901_v18 = vor.u32 1.1754944e-38, %v900_v7  ;;  %vm899_vm15 = vcmp.eq.f32.partialorder %v898_v11, 8.507059e+37  ;;  %v6406_v11 = vld [vmem:[#allocation27_spill] sm:$0xff] }
 0x261   :  { %v3412_v22 = vpop.eup %3411 }
 0x262   :  { %v908_v25 = vadd.f32 1.0, %v3412_v22 }
 0x263   :  { %v3414_v27 = vpop.eup %3413 }
 0x264   :  { %v3416_v1 = vpop.eup %3415  ;;  %v871_v2 = vmul.f32 %v3414_v27, %v869_v19  ;;  %3417 = vrcp.f32 %v908_v25  ;;  %vm876_vm8 = vweird.f32 %v3414_v27  ;;  %v920_v6 = vand.u32 2147483648, %v908_v25 }
 0x265   :  { %v890_v3 = vmul.f32 %v3416_v1, %v888_v20  ;;  %3419 = vtanh.f32 %v864_v28  ;;  %vm895_vm9 = vweird.f32 %v3416_v1  ;;  %vm877_vm12 = vmor %vm875_vm10, %vm876_vm8  ;;  %vm914_vm1 = vweird.f32 %v908_v25 }
 0x266   :  { %v872_v4 = vsub.f32 1.0, %v871_v2  ;;  %vm896_vm13 = vmor %vm894_vm11, %vm895_vm9 }
 0x267   :  { %v891_v5 = vsub.f32 1.0, %v890_v3 }
 0x268   :  { %v873_v8 = vmul.f32 %v3414_v27, %v872_v4 }
 0x269   :  { %v892_v10 = vmul.f32 %v3416_v1, %v891_v5 }
 0x26a   :  { %v3418_v12 = vpop.eup %3417  ;;  %v874_v14 = vadd.f32 %v3414_v27, %v873_v8  ;;  %v921_v8 = vor.u32 1.1754944e-38, %v920_v6  ;;  %v4775_v6 = vld [vmem:[#allocation9 + $0x40] sm:$0xff] }
 0x26b   :  { %v893_v16 = vadd.f32 %v3416_v1, %v892_v10  ;;  %v910_v17 = vmul.f32 %v3418_v12, %v908_v25  ;;  %v3420_v22 = vpop.eup %3419  ;;  %vm915_vm0 = vweird.f32 %v3418_v12  ;;  %6423 = vst [vmem:[#allocation45_spill] sm:$0xff] %v4775_v6 }
 0x26c   :  { %v878_v21 = vsel %vm877_vm12, %v3414_v27, %v874_v14  ;;  %v918_v27 = vand.u32 2147483647, %v908_v25  ;;  %vm916_vm2 = vmor %vm914_vm1, %vm915_vm0  ;;  %v6405_v25 = vld [vmem:[#allocation26_spill] sm:$0xff]  ;;  %v6408_v14 = vld [vmem:[#allocation28_spill] sm:$0xff] }
 0x26d   :  { %v883_v23 = vsel %vm880_vm14, %v882_v15, %v878_v21  ;;  %v897_v24 = vsel %vm896_vm13, %v3416_v1, %v893_v16  ;;  %v911_v28 = vsub.f32 1.0, %v910_v17  ;;  %v4733_v15 = vld [vmem:[#allocation9 + $0xd0] sm:$0xff]  ;;  %v4736_v16 = vld [vmem:[#allocation9 + $0xd8] sm:$0xff]  ;;  %v4739_v17 = vld [vmem:[#allocation9 + $0xa0] sm:$0xff] }
 0x26e   :  { %v902_v2 = vsel %vm899_vm15, %v901_v18, %v897_v24  ;;  %v925_v3 = vmul.f32 %v3420_v22, %v883_v23  ;;  %vm919_vm3 = vcmp.eq.f32.partialorder %v918_v27, 8.507059e+37  ;;  %6409 = vst [vmem:[#allocation31_spill] sm:$0xff] %v4733_v15  ;;  %v4742_v18 = vld [vmem:[#allocation9 + $0xa8] sm:$0xff]  ;;  %v4745_v21 = vld [vmem:[#allocation9 + $0xb0] sm:$0xff]  ;;  %v4748_v22 = vld [vmem:[#allocation9 + $0xb8] sm:$0xff] }
 0x26f   :  { %v924_v4 = vmul.f32 %v902_v2, %v4528_v57  ;;  %v912_v5 = vmul.f32 %v3418_v12, %v911_v28  ;;  %v6404_v57 = vld [vmem:[#allocation24_spill] sm:$0xff]  ;;  %6410 = vst [vmem:[#allocation33_spill] sm:$0xff] %v4736_v16  ;;  %v4757_v28 = vld [vmem:[#allocation9 + $0x90] sm:$0xff]  ;;  %v4760_v2 = vld [vmem:[#allocation9 + $0x98] sm:$0xff] }
 0x270   :  { %6411 = vst [vmem:[#allocation32_spill] sm:$0xff] %v4739_v17  ;;  %v4751_v23 = vld [vmem:[#allocation9 + $0x80] sm:$0xff]  ;;  %v4754_v24 = vld [vmem:[#allocation9 + $0x88] sm:$0xff] }
 0x271   :  { %v4686_v19 = vadd.f32 %v925_v3, %v924_v4  ;;  %v913_v20 = vadd.f32 %v3418_v12, %v912_v5  ;;  %6412 = vst [vmem:[#allocation34_spill] sm:$0xff] %v4742_v18  ;;  %v4763_v3 = vld [vmem:[#allocation9 + $0x60] sm:$0xff]  ;;  %v4766_v4 = vld [vmem:[#allocation9 + $0x68] sm:$0xff]  ;;  %v4769_v5 = vld [vmem:[#allocation9 + $0x70] sm:$0xff] }
 0x272   :  { %6413 = vst [vmem:[#allocation35_spill] sm:$0xff] %v4745_v21  ;;  %v4778_v27 = vld [vmem:[#allocation9 + $0x48] sm:$0xff] }
 0x273   :  { %3421 = vtanh.f32 %v4686_v19  ;;  %v917_v7 = vsel %vm916_vm2, %v3418_v12, %v913_v20  ;;  %v6407_v12 = vld [vmem:[#allocation29_spill] sm:$0xff]  ;;  %6414 = vst [vmem:[#allocation37_spill] sm:$0xff] %v4748_v22  ;;  %v4772_v20 = vld [vmem:[#allocation9 + $0x78] sm:$0xff] }
 0x274   :  { %v922_v9 = vsel %vm919_vm3, %v921_v8, %v917_v7  ;;  %6415 = vst [vmem:[#allocation36_spill] sm:$0xff] %v4751_v23  ;;  %v4781_v7 = vld [vmem:[#allocation9 + $0x50] sm:$0xff]  ;;  %v4784_v8 = vld [vmem:[#allocation9 + $0x58] sm:$0xff] }
 0x275   :  { %6416 = vst [vmem:[#allocation38_spill] sm:$0xff] %v4754_v24 }
 0x276   :  { %6417 = vst [vmem:[#allocation39_spill] sm:$0xff] %v4757_v28 }
 0x277   :  { %6418 = vst [vmem:[#allocation41_spill] sm:$0xff] %v4760_v2 }
 0x278   :  { %6419 = vst [vmem:[#allocation40_spill] sm:$0xff] %v4763_v3 }
 0x279   :  { %v3422_v1 = vpop.eup %3421  ;;  %6420 = vst [vmem:[#allocation42_spill] sm:$0xff] %v4766_v4 }
 0x27a   :  { %v4689_v10 = vmul.f32 %v3422_v1, %v922_v9  ;;  %6421 = vst [vmem:[#allocation43_spill] sm:$0xff] %v4769_v5  ;;  %v4787_v1 = vld [vmem:[#allocation9 + $0x20] sm:$0xff]  ;;  %v4790_v9 = vld [vmem:[#allocation9 + $0x28] sm:$0xff] }
 0x27b   :  { %6422 = vst [vmem:[#allocation44_spill] sm:$0xff] %v4772_v20 }
 0x27c   :  { %6403 = vst [vmem:[#allocation30_spill] sm:$0xff] %v4689_v10  ;;  %954 = vmatmul.f32.vlgmr.msra.gmra.mxu0 %v4689_v10  ;;  %974 = vmatmul.f32.vlgmr.msra.gmra.mxu1 %v4689_v10 }
 0x27d   :  { %994 = vmatmul.f32.vlgmr.msra.gmra.mxu2 %v4689_v10  ;;  %1014 = vmatmul.f32.vlgmr.msra.gmra.mxu3 %v4689_v10  ;;  %6424 = vst [vmem:[#allocation46_spill] sm:$0xff] %v4778_v27  ;;  %v4793_v10 = vld [vmem:[#allocation9 + $0x30] sm:$0xff] }
 0x27e   :  { %1250 = vmatpush.msra.mxu0 %v4537_v61  ;;  %1270 = vmatpush.msra.mxu1 %v4540_v39  ;;  %6425 = vst [vmem:[#allocation47_spill] sm:$0xff] %v4781_v7 }
 0x27f   :  { %1290 = vmatpush.msra.mxu2 %v4543_v63  ;;  %1310 = vmatpush.msra.mxu3 %v4546_v51  ;;  %6426 = vst [vmem:[#allocation48_spill] sm:$0xff] %v4784_v8 }
 0x280   :  { %1251 = vmatpush.msra.mxu0 %v4549_v30  ;;  %1271 = vmatpush.msra.mxu1 %v4552_v31  ;;  %6427 = vst [vmem:[#allocation49_spill] sm:$0xff] %v4787_v1 }
 0x281   :  { %1291 = vmatpush.msra.mxu2 %v4555_v33  ;;  %1311 = vmatpush.msra.mxu3 %v4558_v34  ;;  %6428 = vst [vmem:[#allocation50_spill] sm:$0xff] %v4790_v9 }
 0x282   :  { %1252 = vmatpush.msra.mxu0 %v4561_v35  ;;  %1272 = vmatpush.msra.mxu1 %v4564_v36  ;;  %6429 = vst [vmem:[#allocation51_spill] sm:$0xff] %v4793_v10 }
 0x283   :  { %1292 = vmatpush.msra.mxu2 %v4567_v37  ;;  %1312 = vmatpush.msra.mxu3 %v4570_v38 }
 0x284   :  { %1253 = vmatpush.msra.mxu0 %v4573_v40  ;;  %1273 = vmatpush.msra.mxu1 %v4576_v41 }
 0x285   :  { %1293 = vmatpush.msra.mxu2 %v4579_v43  ;;  %1313 = vmatpush.msra.mxu3 %v4582_v44 }
 0x286   :  { %1254 = vmatpush.msra.mxu0 %v4585_v45  ;;  %1274 = vmatpush.msra.mxu1 %v4588_v47 }
 0x287   :  { %1294 = vmatpush.msra.mxu2 %v4591_v54  ;;  %1314 = vmatpush.msra.mxu3 %v4594_v58 }
 0x288   :  { %1255 = vmatpush.msra.mxu0 %v4597_v0  ;;  %1275 = vmatpush.msra.mxu1 %v4600_v50 }
 0x289   :  { %1295 = vmatpush.msra.mxu2 %v4603_v55  ;;  %1315 = vmatpush.msra.mxu3 %v4606_v62 }
 0x28a   :  { %1256 = vmatpush.msra.mxu0 %v4609_v53  ;;  %1276 = vmatpush.msra.mxu1 %v4612_v49 }
 0x28b   :  { %1296 = vmatpush.msra.mxu2 %v4615_v13  ;;  %1316 = vmatpush.msra.mxu3 %v6404_v57 }
 0x28c   :  { %1257 = vmatpush.msra.mxu0 %v6405_v25  ;;  %1277 = vmatpush.msra.mxu1 %v6406_v11 }
 0x28d   :  { %1297 = vmatpush.msra.mxu2 %v6407_v12  ;;  %1317 = vmatpush.msra.mxu3 %v6408_v14 }
 0x28e   :  { %1258 = vmatpush.msra.mxu0 %v4633_v26  ;;  %1278 = vmatpush.msra.mxu1 %v4636_v46 }
 0x28f   :  { %1298 = vmatpush.msra.mxu2 %v4639_v56  ;;  %1318 = vmatpush.msra.mxu3 %v4642_v48 }
 0x290   :  { %1259 = vmatpush.msra.mxu0 %v4645_v59  ;;  %1279 = vmatpush.msra.mxu1 %v4648_v60 }
 0x291   :  { %1299 = vmatpush.msra.mxu2 %v4733_v15  ;;  %1319 = vmatpush.msra.mxu3 %v4736_v16 }
 0x292   :  { %1260 = vmatpush.msra.mxu0 %v4739_v17  ;;  %1280 = vmatpush.msra.mxu1 %v4742_v18 }
 0x293   :  { %1300 = vmatpush.msra.mxu2 %v4745_v21  ;;  %1320 = vmatpush.msra.mxu3 %v4748_v22 }
 0x294   :  { %1261 = vmatpush.msra.mxu0 %v4751_v23  ;;  %1281 = vmatpush.msra.mxu1 %v4754_v24 }
 0x295   :  { %1301 = vmatpush.msra.mxu2 %v4757_v28  ;;  %1321 = vmatpush.msra.mxu3 %v4760_v2  ;;  %v6437_v28 = vld [vmem:[#allocation61_spill] sm:$0xff] }
 0x296   :  { %1262 = vmatpush.msra.mxu0 %v4763_v3  ;;  %1282 = vmatpush.msra.mxu1 %v4766_v4 }
 0x297   :  { %1302 = vmatpush.msra.mxu2 %v4769_v5  ;;  %1322 = vmatpush.msra.mxu3 %v4772_v20 }
 0x298   :  { %1263 = vmatpush.msra.mxu0 %v4775_v6  ;;  %1283 = vmatpush.msra.mxu1 %v4778_v27  ;;  %v4796_v27 = vld [vmem:[#allocation9 + $0x38] sm:$0xff] }
 0x299   :  { %1303 = vmatpush.msra.mxu2 %v4781_v7  ;;  %1323 = vmatpush.msra.mxu3 %v4784_v8  ;;  %6430 = vst [vmem:[#allocation53_spill] sm:$0xff] %v4796_v27  ;;  %v4799_v7 = vld [vmem:[#allocation9] sm:$0xff]  ;;  %v4802_v8 = vld [vmem:[#allocation9 + $0x8] sm:$0xff] }
 0x29a   :  { %1264 = vmatpush.msra.mxu0 %v4787_v1  ;;  %1284 = vmatpush.msra.mxu1 %v4790_v9  ;;  %6431 = vst [vmem:[#allocation52_spill] sm:$0xff] %v4799_v7  ;;  %v4805_v1 = vld [vmem:[#allocation9 + $0x10] sm:$0xff]  ;;  %v4808_v9 = vld [vmem:[#allocation9 + $0x18] sm:$0xff] }
 0x29b   :  { %1304 = vmatpush.msra.mxu2 %v4793_v10  ;;  %1324 = vmatpush.msra.mxu3 %v4796_v27  ;;  %6432 = vst [vmem:[#allocation54_spill] sm:$0xff] %v4802_v8  ;;  %v6435_v10 = vld [vmem:[#allocation58_spill] sm:$0xff]  ;;  %v6436_v27 = vld [vmem:[#allocation59_spill] sm:$0xff] }
 0x29c   :  { %1265 = vmatpush.msra.mxu0 %v4799_v7  ;;  %1285 = vmatpush.msra.mxu1 %v4802_v8  ;;  %6433 = vst [vmem:[#allocation55_spill] sm:$0xff] %v4805_v1  ;;  %v231_v6 = vadd.f32 %v6435_v10, %v6385_v29  ;;  %v272_v20 = vadd.f32 %v6436_v27, %v6387_v32 }
 0x29d   :  { %1305 = vmatpush.msra.mxu2 %v4805_v1  ;;  %6434 = vst [vmem:[#allocation57_spill] sm:$0xff] %v4808_v9  ;;  %1325 = vmatpush.msra.mxu3 %v4808_v9  ;;  %v354_v1 = vadd.f32 %v6437_v28, %v6389_v42 }
 0x2f9   :  { %v955_v5 = vpop.f32.mrf.mxu0  ;;  %v975_v7 = vpop.f32.mrf.mxu1 }
 0x2fa   :  { %v1018_v4 = vadd.f32 %v955_v5, %v231_v6  ;;  %v1019_v3 = vadd.f32 %v975_v7, %v272_v20 }
 0x2fc   :  { %v3323_v2 = vmul.f32 -1.442695, %v1018_v4  ;;  %v3324_v8 = vmul.f32 -1.442695, %v1019_v3  ;;  %v6438_v4 = vld [vmem:[#allocation60_spill] sm:$0xff] }
 0x2fd   :  { %v313_v3 = vadd.f32 %v6438_v4, %v6391_v52 }
 0x2fe   :  { %3423 = vpow2.f32 %v3323_v2 }
 0x2ff   :  { %3425 = vpow2.f32 %v3324_v8 }
 0x300   :  { %v1015_v24 = vpop.f32.mrf.mxu3  ;;  %v995_v27 = vpop.f32.mrf.mxu2 }
 0x301   :  { %v1021_v23 = vadd.f32 %v1015_v24, %v354_v1  ;;  %v1020_v6 = vadd.f32 %v995_v27, %v313_v3 }
 0x303   :  { %v3325_v9 = vmul.f32 -1.442695, %v1021_v23 }
 0x304   :  { %v3424_v22 = vpop.eup %3423 }
 0x305   :  { %v3426_v21 = vpop.eup %3425  ;;  %v1025_v10 = vadd.f32 1.0, %v3424_v22  ;;  %3427 = vpow2.f32 %v3325_v9 }
 0x306   :  { %v1044_v29 = vadd.f32 1.0, %v3426_v21 }
 0x307   :  { %3429 = vrcp.f32 %v1025_v10  ;;  %v1037_v1 = vand.u32 2147483648, %v1025_v10  ;;  %v1035_v9 = vand.u32 2147483647, %v1025_v10  ;;  %vm1031_vm6 = vweird.f32 %v1025_v10 }
 0x308   :  { %3431 = vrcp.f32 %v1044_v29  ;;  %v1056_v22 = vand.u32 2147483648, %v1044_v29  ;;  %v1054_v32 = vand.u32 2147483647, %v1044_v29  ;;  %vm1050_vm7 = vweird.f32 %v1044_v29 }
 0x309   :  { %v1038_v27 = vor.u32 1.1754944e-38, %v1037_v1  ;;  %vm1036_vm10 = vcmp.eq.f32.partialorder %v1035_v9, 8.507059e+37 }
 0x30a   :  { %vm1055_vm11 = vcmp.eq.f32.partialorder %v1054_v32, 8.507059e+37 }
 0x30b   :  { %v3428_v5 = vpop.eup %3427 }
 0x30c   :  { %v1064_v2 = vadd.f32 1.0, %v3428_v5 }
 0x30d   :  { %v3430_v20 = vpop.eup %3429 }
 0x30e   :  { %v3432_v28 = vpop.eup %3431  ;;  %v1027_v7 = vmul.f32 %v3430_v20, %v1025_v10  ;;  %3433 = vrcp.f32 %v1064_v2  ;;  %vm1032_vm4 = vweird.f32 %v3430_v20  ;;  %vm1070_vm13 = vweird.f32 %v1064_v2 }
 0x30f   :  { %v1046_v24 = vmul.f32 %v3432_v28, %v1044_v29  ;;  %3435 = vtanh.f32 %v1020_v6  ;;  %vm1051_vm5 = vweird.f32 %v3432_v28  ;;  %vm1033_vm8 = vmor %vm1031_vm6, %vm1032_vm4 }
 0x310   :  { %v1028_v23 = vsub.f32 1.0, %v1027_v7  ;;  %vm1052_vm9 = vmor %vm1050_vm7, %vm1051_vm5  ;;  %v1057_v7 = vor.u32 1.1754944e-38, %v1056_v22 }
 0x311   :  { %v1047_v8 = vsub.f32 1.0, %v1046_v24 }
 0x312   :  { %v1029_v21 = vmul.f32 %v3430_v20, %v1028_v23 }
 0x313   :  { %v1048_v42 = vmul.f32 %v3432_v28, %v1047_v8 }
 0x314   :  { %v3434_v18 = vpop.eup %3433  ;;  %v1030_v4 = vadd.f32 %v3430_v20, %v1029_v21 }
 0x315   :  { %v1049_v5 = vadd.f32 %v3432_v28, %v1048_v42  ;;  %v1066_v3 = vmul.f32 %v3434_v18, %v1064_v2  ;;  %v3436_v6 = vpop.eup %3435  ;;  %vm1071_vm12 = vweird.f32 %v3434_v18  ;;  %v1076_v42 = vand.u32 2147483648, %v1064_v2 }
 0x316   :  { %v1034_v24 = vsel %vm1033_vm8, %v3430_v20, %v1030_v4  ;;  %v1074_v20 = vand.u32 2147483647, %v1064_v2  ;;  %vm1072_vm14 = vmor %vm1070_vm13, %vm1071_vm12  ;;  %v6446_v2 = vld [vmem:[#allocation36_spill] sm:$0xff]  ;;  %v6447_v4 = vld [vmem:[#allocation38_spill] sm:$0xff] }
 0x317   :  { %v1039_v52 = vsel %vm1036_vm10, %v1038_v27, %v1034_v24  ;;  %v1053_v23 = vsel %vm1052_vm9, %v3432_v28, %v1049_v5  ;;  %v1067_v17 = vsub.f32 1.0, %v1066_v3  ;;  %v1077_v22 = vor.u32 1.1754944e-38, %v1076_v42  ;;  %v6448_v27 = vld [vmem:[#allocation39_spill] sm:$0xff]  ;;  %v6449_v5 = vld [vmem:[#allocation41_spill] sm:$0xff]  ;;  %v6450_v3 = vld [vmem:[#allocation40_spill] sm:$0xff] }
 0x318   :  { %v1058_v8 = vsel %vm1055_vm11, %v1057_v7, %v1053_v23  ;;  %v1081_v16 = vmul.f32 %v3436_v6, %v1039_v52  ;;  %vm1075_vm15 = vcmp.eq.f32.partialorder %v1074_v20, 8.507059e+37  ;;  %v6440_v52 = vld [vmem:[#allocation31_spill] sm:$0xff]  ;;  %v6451_v7 = vld [vmem:[#allocation42_spill] sm:$0xff]  ;;  %v6453_v6 = vld [vmem:[#allocation44_spill] sm:$0xff] }
 0x319   :  { %v1080_v15 = vmul.f32 %v1058_v8, %v4686_v19  ;;  %v1068_v21 = vmul.f32 %v3434_v18, %v1067_v17  ;;  %v6441_v19 = vld [vmem:[#allocation33_spill] sm:$0xff]  ;;  %v6444_v17 = vld [vmem:[#allocation35_spill] sm:$0xff]  ;;  %v6455_v8 = vld [vmem:[#allocation46_spill] sm:$0xff] }
 0x31a   :  { %v6452_v24 = vld [vmem:[#allocation43_spill] sm:$0xff]  ;;  %v6454_v23 = vld [vmem:[#allocation45_spill] sm:$0xff]  ;;  %v6459_v20 = vld [vmem:[#allocation50_spill] sm:$0xff] }
 0x31b   :  { %v4820_v10 = vadd.f32 %v1081_v16, %v1080_v15  ;;  %v1069_v29 = vadd.f32 %v3434_v18, %v1068_v21  ;;  %v6442_v15 = vld [vmem:[#allocation32_spill] sm:$0xff]  ;;  %v6443_v16 = vld [vmem:[#allocation34_spill] sm:$0xff]  ;;  %v6456_v21 = vld [vmem:[#allocation47_spill] sm:$0xff] }
 0x31c   :  { %v6458_v42 = vld [vmem:[#allocation49_spill] sm:$0xff] }
 0x31d   :  { %3437 = vtanh.f32 %v4820_v10  ;;  %v1073_v1 = vsel %vm1072_vm14, %v3434_v18, %v1069_v29  ;;  %v6445_v18 = vld [vmem:[#allocation37_spill] sm:$0xff]  ;;  %v6457_v29 = vld [vmem:[#allocation48_spill] sm:$0xff] }
 0x31e   :  { %v1078_v28 = vsel %vm1075_vm15, %v1077_v22, %v1073_v1  ;;  %v6460_v1 = vld [vmem:[#allocation51_spill] sm:$0xff]  ;;  %v6461_v22 = vld [vmem:[#allocation53_spill] sm:$0xff] }
 0x323   :  { %v3438_v32 = vpop.eup %3437 }
 0x324   :  { %v4823_v9 = vmul.f32 %v3438_v32, %v1078_v28  ;;  %v6462_v32 = vld [vmem:[#allocation52_spill] sm:$0xff]  ;;  %v6463_v28 = vld [vmem:[#allocation54_spill] sm:$0xff] }
 0x326   :  { %6439 = vst [vmem:[#allocation56_spill] sm:$0xff] %v4823_v9  ;;  %1110 = vmatmul.f32.vlgmr.msrb.gmra.mxu0 %v4823_v9  ;;  %1130 = vmatmul.f32.vlgmr.msrb.gmra.mxu1 %v4823_v9 }
 0x327   :  { %1150 = vmatmul.f32.vlgmr.msrb.gmra.mxu2 %v4823_v9  ;;  %1170 = vmatmul.f32.vlgmr.msrb.gmra.mxu3 %v4823_v9  ;;  %v6464_v9 = vld [vmem:[#allocation55_spill] sm:$0xff] }
 0x328   :  { %1406 = vmatpush.msrb.mxu0 %v4537_v61  ;;  %1426 = vmatpush.msrb.mxu1 %v4540_v39 }
 0x329   :  { %1446 = vmatpush.msrb.mxu2 %v4543_v63  ;;  %1466 = vmatpush.msrb.mxu3 %v4546_v51 }
 0x32a   :  { %1407 = vmatpush.msrb.mxu0 %v4549_v30  ;;  %1427 = vmatpush.msrb.mxu1 %v4552_v31 }
 0x32b   :  { %1447 = vmatpush.msrb.mxu2 %v4555_v33  ;;  %1467 = vmatpush.msrb.mxu3 %v4558_v34 }
 0x32c   :  { %1408 = vmatpush.msrb.mxu0 %v4561_v35  ;;  %1428 = vmatpush.msrb.mxu1 %v4564_v36 }
 0x32d   :  { %1448 = vmatpush.msrb.mxu2 %v4567_v37  ;;  %1468 = vmatpush.msrb.mxu3 %v4570_v38 }
 0x32e   :  { %1409 = vmatpush.msrb.mxu0 %v4573_v40  ;;  %1429 = vmatpush.msrb.mxu1 %v4576_v41 }
 0x32f   :  { %1449 = vmatpush.msrb.mxu2 %v4579_v43  ;;  %1469 = vmatpush.msrb.mxu3 %v4582_v44 }
 0x330   :  { %1410 = vmatpush.msrb.mxu0 %v4585_v45  ;;  %1430 = vmatpush.msrb.mxu1 %v4588_v47 }
 0x331   :  { %1450 = vmatpush.msrb.mxu2 %v4591_v54  ;;  %1470 = vmatpush.msrb.mxu3 %v4594_v58 }
 0x332   :  { %1411 = vmatpush.msrb.mxu0 %v4597_v0  ;;  %1431 = vmatpush.msrb.mxu1 %v4600_v50 }
 0x333   :  { %1451 = vmatpush.msrb.mxu2 %v4603_v55  ;;  %1471 = vmatpush.msrb.mxu3 %v4606_v62 }
 0x334   :  { %1412 = vmatpush.msrb.mxu0 %v4609_v53  ;;  %1432 = vmatpush.msrb.mxu1 %v4612_v49 }
 0x335   :  { %1452 = vmatpush.msrb.mxu2 %v4615_v13  ;;  %1472 = vmatpush.msrb.mxu3 %v6404_v57 }
 0x336   :  { %1413 = vmatpush.msrb.mxu0 %v6405_v25  ;;  %1433 = vmatpush.msrb.mxu1 %v6406_v11 }
 0x337   :  { %1453 = vmatpush.msrb.mxu2 %v6407_v12  ;;  %1473 = vmatpush.msrb.mxu3 %v6408_v14 }
 0x338   :  { %1414 = vmatpush.msrb.mxu0 %v4633_v26  ;;  %1434 = vmatpush.msrb.mxu1 %v4636_v46 }
 0x339   :  { %1454 = vmatpush.msrb.mxu2 %v4639_v56  ;;  %1474 = vmatpush.msrb.mxu3 %v4642_v48 }
 0x33a   :  { %1415 = vmatpush.msrb.mxu0 %v4645_v59  ;;  %1435 = vmatpush.msrb.mxu1 %v4648_v60 }
 0x33b   :  { %1455 = vmatpush.msrb.mxu2 %v6440_v52  ;;  %1475 = vmatpush.msrb.mxu3 %v6441_v19 }
 0x33c   :  { %1416 = vmatpush.msrb.mxu0 %v6442_v15  ;;  %1436 = vmatpush.msrb.mxu1 %v6443_v16 }
 0x33d   :  { %1456 = vmatpush.msrb.mxu2 %v6444_v17  ;;  %1476 = vmatpush.msrb.mxu3 %v6445_v18 }
 0x33e   :  { %1417 = vmatpush.msrb.mxu0 %v6446_v2  ;;  %1437 = vmatpush.msrb.mxu1 %v6447_v4 }
 0x33f   :  { %1457 = vmatpush.msrb.mxu2 %v6448_v27  ;;  %1477 = vmatpush.msrb.mxu3 %v6449_v5  ;;  %v6471_v27 = vld [vmem:[#allocation64_spill] sm:$0xff] }
 0x340   :  { %1418 = vmatpush.msrb.mxu0 %v6450_v3  ;;  %1438 = vmatpush.msrb.mxu1 %v6451_v7 }
 0x341   :  { %1458 = vmatpush.msrb.mxu2 %v6452_v24  ;;  %1478 = vmatpush.msrb.mxu3 %v6453_v6  ;;  %v6469_v24 = vld [vmem:[#allocation63_spill] sm:$0xff] }
 0x342   :  { %1419 = vmatpush.msrb.mxu0 %v6454_v23  ;;  %1439 = vmatpush.msrb.mxu1 %v6455_v8  ;;  %v6465_v23 = vld [vmem:[#allocation57_spill] sm:$0xff]  ;;  %v6466_v8 = vld [vmem:[#allocation75_spill] sm:$0xff] }
 0x343   :  { %1459 = vmatpush.msrb.mxu2 %v6456_v21  ;;  %1479 = vmatpush.msrb.mxu3 %v6457_v29  ;;  %v6467_v21 = vld [vmem:[#allocation62_spill] sm:$0xff]  ;;  %v6468_v29 = vld [vmem:[#allocation76_spill] sm:$0xff] }
 0x344   :  { %1420 = vmatpush.msrb.mxu0 %v6458_v42  ;;  %1440 = vmatpush.msrb.mxu1 %v6459_v20  ;;  %v234_v6 = vadd.f32 %v6467_v21, %v6466_v8  ;;  %v275_v42 = vadd.f32 %v6469_v24, %v6468_v29 }
 0x345   :  { %1460 = vmatpush.msrb.mxu2 %v6460_v1  ;;  %1480 = vmatpush.msrb.mxu3 %v6461_v22 }
 0x346   :  { %1421 = vmatpush.msrb.mxu0 %v6462_v32  ;;  %1441 = vmatpush.msrb.mxu1 %v6463_v28  ;;  %v6470_v32 = vld [vmem:[#allocation79_spill] sm:$0xff] }
 0x347   :  { %1461 = vmatpush.msrb.mxu2 %v6464_v9  ;;  %1481 = vmatpush.msrb.mxu3 %v6465_v23  ;;  %v357_v28 = vadd.f32 %v6471_v27, %v6470_v32 }
 0x3a3   :  { %v1111_v7 = vpop.f32.mrf.mxu0  ;;  %v1131_v20 = vpop.f32.mrf.mxu1 }
 0x3a4   :  { %v1174_v3 = vadd.f32 %v1111_v7, %v234_v6  ;;  %v1175_v1 = vadd.f32 %v1131_v20, %v275_v42  ;;  %v6472_v6 = vld [vmem:[#allocation81_spill] sm:$0xff] }
 0x3a6   :  { %v3326_v5 = vmul.f32 -1.442695, %v1174_v3  ;;  %v3327_v22 = vmul.f32 -1.442695, %v1175_v1  ;;  %v6473_v3 = vld [vmem:[#allocation67_spill] sm:$0xff] }
 0x3a7   :  { %v316_v42 = vadd.f32 %v6473_v3, %v6472_v6 }
 0x3a8   :  { %3439 = vpow2.f32 %v3326_v5 }
 0x3a9   :  { %3441 = vpow2.f32 %v3327_v22 }
 0x3aa   :  { %v1171_v9 = vpop.f32.mrf.mxu3  ;;  %v1151_v24 = vpop.f32.mrf.mxu2 }
 0x3ab   :  { %v1177_v4 = vadd.f32 %v1171_v9, %v357_v28  ;;  %v1176_v1 = vadd.f32 %v1151_v24, %v316_v42 }
 0x3ad   :  { %v3328_v23 = vmul.f32 -1.442695, %v1177_v4 }
 0x3ae   :  { %v3440_v2 = vpop.eup %3439 }
 0x3af   :  { %v3442_v18 = vpop.eup %3441  ;;  %v1181_v21 = vadd.f32 1.0, %v3440_v2  ;;  %3443 = vpow2.f32 %v3328_v23 }
 0x3b0   :  { %v1200_v8 = vadd.f32 1.0, %v3442_v18 }
 0x3b1   :  { %3445 = vrcp.f32 %v1181_v21  ;;  %v1193_v32 = vand.u32 2147483648, %v1181_v21  ;;  %v1191_v23 = vand.u32 2147483647, %v1181_v21  ;;  %vm1187_vm2 = vweird.f32 %v1181_v21 }
 0x3b2   :  { %3447 = vrcp.f32 %v1200_v8  ;;  %v1212_v2 = vand.u32 2147483648, %v1200_v8  ;;  %v1210_v17 = vand.u32 2147483647, %v1200_v8  ;;  %vm1206_vm3 = vweird.f32 %v1200_v8 }
 0x3b3   :  { %v1194_v24 = vor.u32 1.1754944e-38, %v1193_v32  ;;  %vm1192_vm6 = vcmp.eq.f32.partialorder %v1191_v23, 8.507059e+37 }
 0x3b4   :  { %vm1211_vm7 = vcmp.eq.f32.partialorder %v1210_v17, 8.507059e+37 }
 0x3b5   :  { %v3444_v7 = vpop.eup %3443 }
 0x3b6   :  { %v1220_v5 = vadd.f32 1.0, %v3444_v7 }
 0x3b7   :  { %v3446_v20 = vpop.eup %3445 }
 0x3b8   :  { %v3448_v27 = vpop.eup %3447  ;;  %v1183_v22 = vmul.f32 %v3446_v20, %v1181_v21  ;;  %3449 = vrcp.f32 %v1220_v5  ;;  %vm1188_vm0 = vweird.f32 %v3446_v20  ;;  %vm1226_vm9 = vweird.f32 %v1220_v5 }
 0x3b9   :  { %v1202_v9 = vmul.f32 %v3448_v27, %v1200_v8  ;;  %3451 = vtanh.f32 %v1176_v1  ;;  %vm1207_vm1 = vweird.f32 %v3448_v27  ;;  %vm1189_vm4 = vmor %vm1187_vm2, %vm1188_vm0  ;;  %v1230_v32 = vand.u32 2147483647, %v1220_v5 }
 0x3ba   :  { %v1184_v4 = vsub.f32 1.0, %v1183_v22  ;;  %vm1208_vm5 = vmor %vm1206_vm3, %vm1207_vm1  ;;  %v1213_v22 = vor.u32 1.1754944e-38, %v1212_v2 }
 0x3bb   :  { %v1203_v28 = vsub.f32 1.0, %v1202_v9  ;;  %vm1231_vm11 = vcmp.eq.f32.partialorder %v1230_v32, 8.507059e+37 }
 0x3bc   :  { %v1185_v18 = vmul.f32 %v3446_v20, %v1184_v4 }
 0x3bd   :  { %v1204_v29 = vmul.f32 %v3448_v27, %v1203_v28 }
 0x3be   :  { %v3450_v16 = vpop.eup %3449  ;;  %v1186_v3 = vadd.f32 %v3446_v20, %v1185_v18 }
 0x3bf   :  { %v1205_v7 = vadd.f32 %v3448_v27, %v1204_v29  ;;  %v1222_v42 = vmul.f32 %v3450_v16, %v1220_v5  ;;  %v3452_v1 = vpop.eup %3451  ;;  %vm1227_vm8 = vweird.f32 %v3450_v16  ;;  %v1232_v29 = vand.u32 2147483648, %v1220_v5 }
 0x3c0   :  { %v1190_v9 = vsel %vm1189_vm4, %v3446_v20, %v1186_v3  ;;  %vm1228_vm10 = vmor %vm1226_vm9, %vm1227_vm8 }
 0x3c1   :  { %v1195_v6 = vsel %vm1192_vm6, %v1194_v24, %v1190_v9  ;;  %v1209_v4 = vsel %vm1208_vm5, %v3448_v27, %v1205_v7  ;;  %v1223_v15 = vsub.f32 1.0, %v1222_v42  ;;  %v1233_v2 = vor.u32 1.1754944e-38, %v1232_v29  ;;  %v6506_v9 = vld [vmem:[#allocation81_spill] sm:$0xff] }
 0x3c2   :  { %v1214_v28 = vsel %vm1211_vm7, %v1213_v22, %v1209_v4  ;;  %v1237_v19 = vmul.f32 %v3452_v1, %v1195_v6  ;;  %v6507_v1 = vld [vmem:[#allocation71_spill] sm:$0xff] }
 0x3c3   :  { %v1236_v52 = vmul.f32 %v1214_v28, %v4820_v10  ;;  %v1224_v18 = vmul.f32 %v3450_v16, %v1223_v15  ;;  %v6504_v10 = vld [vmem:[#allocation79_spill] sm:$0xff]  ;;  %v319_v4 = vadd.f32 %v6507_v1, %v6506_v9  ;;  %v6508_v1 = vld [vmem:[#allocation69_spill] sm:$0xff] }
 0x3c5   :  { %v4902_v21 = vadd.f32 %v1237_v19, %v1236_v52  ;;  %v1225_v8 = vadd.f32 %v3450_v16, %v1224_v18  ;;  %v6505_v52 = vld [vmem:[#allocation68_spill] sm:$0xff] }
 0x3c6   :  { %v360_v19 = vadd.f32 %v6505_v52, %v6504_v10  ;;  %v1773_v52 = vld [vmem:[#allocation12 + $0x1a0] sm:$0xff] }
 0x3c7   :  { %3453 = vtanh.f32 %v4902_v21  ;;  %v1229_v20 = vsel %vm1228_vm10, %v3450_v16, %v1225_v8 }
 0x3c8   :  { %v1234_v27 = vsel %vm1231_vm11, %v1233_v2, %v1229_v20 }
 0x3cd   :  { %v3454_v17 = vpop.eup %3453 }
 0x3ce   :  { %v4905_v23 = vmul.f32 %v3454_v17, %v1234_v27 }
 0x3d0   :  { %1266 = vmatmul.f32.vlgmr.msra.gmra.mxu0 %v4905_v23  ;;  %1286 = vmatmul.f32.vlgmr.msra.gmra.mxu1 %v4905_v23 }
 0x3d1   :  { %1306 = vmatmul.f32.vlgmr.msra.gmra.mxu2 %v4905_v23  ;;  %1326 = vmatmul.f32.vlgmr.msra.gmra.mxu3 %v4905_v23 }
 0x3d2   :  { %1562 = vmatpush.msra.mxu0 %v4537_v61  ;;  %1582 = vmatpush.msra.mxu1 %v4540_v39  ;;  %v6474_v61 = vld [vmem:[#allocation31_spill] sm:$0xff]  ;;  %v6475_v39 = vld [vmem:[#allocation33_spill] sm:$0xff] }
 0x3d3   :  { %1602 = vmatpush.msra.mxu2 %v4543_v63  ;;  %1622 = vmatpush.msra.mxu3 %v4546_v51  ;;  %v6476_v63 = vld [vmem:[#allocation32_spill] sm:$0xff]  ;;  %v6477_v51 = vld [vmem:[#allocation34_spill] sm:$0xff] }
 0x3d4   :  { %1563 = vmatpush.msra.mxu0 %v4549_v30  ;;  %1583 = vmatpush.msra.mxu1 %v4552_v31  ;;  %v6478_v30 = vld [vmem:[#allocation35_spill] sm:$0xff]  ;;  %v6480_v31 = vld [vmem:[#allocation36_spill] sm:$0xff] }
 0x3d5   :  { %1603 = vmatpush.msra.mxu2 %v4555_v33  ;;  %1623 = vmatpush.msra.mxu3 %v4558_v34  ;;  %v6481_v33 = vld [vmem:[#allocation38_spill] sm:$0xff]  ;;  %v6482_v34 = vld [vmem:[#allocation39_spill] sm:$0xff] }
 0x3d6   :  { %1564 = vmatpush.msra.mxu0 %v4561_v35  ;;  %1584 = vmatpush.msra.mxu1 %v4564_v36  ;;  %v6483_v35 = vld [vmem:[#allocation41_spill] sm:$0xff]  ;;  %v6485_v36 = vld [vmem:[#allocation42_spill] sm:$0xff] }
 0x3d7   :  { %1604 = vmatpush.msra.mxu2 %v4567_v37  ;;  %1624 = vmatpush.msra.mxu3 %v4570_v38  ;;  %v6486_v37 = vld [vmem:[#allocation43_spill] sm:$0xff]  ;;  %v6487_v38 = vld [vmem:[#allocation44_spill] sm:$0xff] }
 0x3d8   :  { %1565 = vmatpush.msra.mxu0 %v4573_v40  ;;  %1585 = vmatpush.msra.mxu1 %v4576_v41  ;;  %v6488_v40 = vld [vmem:[#allocation45_spill] sm:$0xff]  ;;  %v6489_v41 = vld [vmem:[#allocation46_spill] sm:$0xff] }
 0x3d9   :  { %1605 = vmatpush.msra.mxu2 %v4579_v43  ;;  %1625 = vmatpush.msra.mxu3 %v4582_v44  ;;  %v6490_v43 = vld [vmem:[#allocation47_spill] sm:$0xff]  ;;  %v6491_v44 = vld [vmem:[#allocation48_spill] sm:$0xff] }
 0x3da   :  { %1566 = vmatpush.msra.mxu0 %v4585_v45  ;;  %1586 = vmatpush.msra.mxu1 %v4588_v47  ;;  %v6492_v45 = vld [vmem:[#allocation49_spill] sm:$0xff]  ;;  %v6493_v47 = vld [vmem:[#allocation50_spill] sm:$0xff] }
 0x3db   :  { %1606 = vmatpush.msra.mxu2 %v4591_v54  ;;  %1626 = vmatpush.msra.mxu3 %v4594_v58  ;;  %v6494_v54 = vld [vmem:[#allocation51_spill] sm:$0xff]  ;;  %v6495_v58 = vld [vmem:[#allocation53_spill] sm:$0xff] }
 0x3dc   :  { %1567 = vmatpush.msra.mxu0 %v4597_v0  ;;  %1587 = vmatpush.msra.mxu1 %v4600_v50  ;;  %v6496_v0 = vld [vmem:[#allocation52_spill] sm:$0xff]  ;;  %v6497_v50 = vld [vmem:[#allocation54_spill] sm:$0xff] }
 0x3dd   :  { %1607 = vmatpush.msra.mxu2 %v4603_v55  ;;  %1627 = vmatpush.msra.mxu3 %v4606_v62  ;;  %v6498_v55 = vld [vmem:[#allocation55_spill] sm:$0xff]  ;;  %v6499_v62 = vld [vmem:[#allocation57_spill] sm:$0xff] }
 0x3de   :  { %1568 = vmatpush.msra.mxu0 %v4609_v53  ;;  %1588 = vmatpush.msra.mxu1 %v4612_v49  ;;  %v6500_v53 = vld [vmem:[#allocation75_spill] sm:$0xff]  ;;  %v6501_v49 = vld [vmem:[#allocation65_spill] sm:$0xff] }
 0x3df   :  { %1608 = vmatpush.msra.mxu2 %v4615_v13  ;;  %1628 = vmatpush.msra.mxu3 %v6404_v57  ;;  %v237_v13 = vadd.f32 %v6501_v49, %v6500_v53 }
 0x3e0   :  { %1569 = vmatpush.msra.mxu0 %v6405_v25  ;;  %1589 = vmatpush.msra.mxu1 %v6406_v11 }
 0x3e1   :  { %1609 = vmatpush.msra.mxu2 %v6407_v12  ;;  %1629 = vmatpush.msra.mxu3 %v6408_v14 }
 0x3e2   :  { %1570 = vmatpush.msra.mxu0 %v4633_v26  ;;  %1590 = vmatpush.msra.mxu1 %v4636_v46  ;;  %v6479_v26 = vld [vmem:[#allocation37_spill] sm:$0xff]  ;;  %v6502_v46 = vld [vmem:[#allocation76_spill] sm:$0xff] }
 0x3e3   :  { %1610 = vmatpush.msra.mxu2 %v4639_v56  ;;  %1630 = vmatpush.msra.mxu3 %v4642_v48  ;;  %v6503_v56 = vld [vmem:[#allocation66_spill] sm:$0xff] }
 0x3e4   :  { %1571 = vmatpush.msra.mxu0 %v4645_v59  ;;  %1591 = vmatpush.msra.mxu1 %v4648_v60  ;;  %v6484_v60 = vld [vmem:[#allocation40_spill] sm:$0xff]  ;;  %v278_v48 = vadd.f32 %v6503_v56, %v6502_v46 }
 0x3e5   :  { %1611 = vmatpush.msra.mxu2 %v6474_v61  ;;  %1631 = vmatpush.msra.mxu3 %v6475_v39 }
 0x3e6   :  { %1572 = vmatpush.msra.mxu0 %v6476_v63  ;;  %1592 = vmatpush.msra.mxu1 %v6477_v51 }
 0x3e7   :  { %1612 = vmatpush.msra.mxu2 %v6478_v30  ;;  %1632 = vmatpush.msra.mxu3 %v6479_v26 }
 0x3e8   :  { %1573 = vmatpush.msra.mxu0 %v6480_v31  ;;  %1593 = vmatpush.msra.mxu1 %v6481_v33 }
 0x3e9   :  { %1613 = vmatpush.msra.mxu2 %v6482_v34  ;;  %1633 = vmatpush.msra.mxu3 %v6483_v35 }
 0x3ea   :  { %1574 = vmatpush.msra.mxu0 %v6484_v60  ;;  %1594 = vmatpush.msra.mxu1 %v6485_v36 }
 0x3eb   :  { %1614 = vmatpush.msra.mxu2 %v6486_v37  ;;  %1634 = vmatpush.msra.mxu3 %v6487_v38 }
 0x3ec   :  { %1575 = vmatpush.msra.mxu0 %v6488_v40  ;;  %1595 = vmatpush.msra.mxu1 %v6489_v41 }
 0x3ed   :  { %1615 = vmatpush.msra.mxu2 %v6490_v43  ;;  %1635 = vmatpush.msra.mxu3 %v6491_v44 }
 0x3ee   :  { %1576 = vmatpush.msra.mxu0 %v6492_v45  ;;  %1596 = vmatpush.msra.mxu1 %v6493_v47 }
 0x3ef   :  { %1616 = vmatpush.msra.mxu2 %v6494_v54  ;;  %1636 = vmatpush.msra.mxu3 %v6495_v58 }
 0x3f0   :  { %1577 = vmatpush.msra.mxu0 %v6496_v0  ;;  %1597 = vmatpush.msra.mxu1 %v6497_v50 }
 0x3f1   :  { %1617 = vmatpush.msra.mxu2 %v6498_v55  ;;  %1637 = vmatpush.msra.mxu3 %v6499_v62 }
 0x44d   :  { %v1267_v59 = vpop.f32.mrf.mxu0  ;;  %v1287_v57 = vpop.f32.mrf.mxu1 }
 0x44e   :  { %v1330_v25 = vadd.f32 %v1267_v59, %v237_v13  ;;  %v1331_v11 = vadd.f32 %v1287_v57, %v278_v48  ;;  %v1782_v48 = vld [vmem:[#allocation12 + $0x1e8] sm:$0xff]  ;;  %v1783_v59 = vld [vmem:[#allocation12 + $0x1f0] sm:$0xff]  ;;  %v1784_v57 = vld [vmem:[#allocation12 + $0x1f8] sm:$0xff] }
 0x450   :  { %v3329_v12 = vmul.f32 -1.442695, %v1330_v25  ;;  %v3330_v14 = vmul.f32 -1.442695, %v1331_v11  ;;  %v1777_v25 = vld [vmem:[#allocation12 + $0x1c0] sm:$0xff]  ;;  %v1778_v11 = vld [vmem:[#allocation12 + $0x1c8] sm:$0xff] }
 0x452   :  { %3455 = vpow2.f32 %v3329_v12  ;;  %v1779_v12 = vld [vmem:[#allocation12 + $0x1d0] sm:$0xff] }
 0x453   :  { %3457 = vpow2.f32 %v3330_v14  ;;  %v1780_v14 = vld [vmem:[#allocation12 + $0x1d8] sm:$0xff] }
 0x454   :  { %v1327_v15 = vpop.f32.mrf.mxu3  ;;  %v1307_v42 = vpop.f32.mrf.mxu2 }
 0x455   :  { %v1333_v16 = vadd.f32 %v1327_v15, %v360_v19  ;;  %v1332_v8 = vadd.f32 %v1307_v42, %v319_v4  ;;  %v1774_v19 = vld [vmem:[#allocation12 + $0x1a8] sm:$0xff]  ;;  %v1775_v15 = vld [vmem:[#allocation12 + $0x1b0] sm:$0xff]  ;;  %v240_v4 = vadd.f32 %v6508_v1, %v6500_v53 }
 0x456   :  { %v1766_v42 = vld [vmem:[#allocation12 + $0x168] sm:$0xff] }
 0x457   :  { %v3331_v6 = vmul.f32 -1.442695, %v1333_v16  ;;  %v1776_v16 = vld [vmem:[#allocation12 + $0x1b8] sm:$0xff] }
 0x458   :  { %v3456_v5 = vpop.eup %3455 }
 0x459   :  { %v3458_v3 = vpop.eup %3457  ;;  %v1337_v24 = vadd.f32 1.0, %v3456_v5  ;;  %3459 = vpow2.f32 %v3331_v6  ;;  %v1769_v6 = vld [vmem:[#allocation12 + $0x180] sm:$0xff]  ;;  %v1770_v5 = vld [vmem:[#allocation12 + $0x188] sm:$0xff] }
 0x45a   :  { %v1356_v7 = vadd.f32 1.0, %v3458_v3  ;;  %v1771_v3 = vld [vmem:[#allocation12 + $0x190] sm:$0xff] }
 0x45b   :  { %3461 = vrcp.f32 %v1337_v24  ;;  %v1349_v27 = vand.u32 2147483648, %v1337_v24  ;;  %v1347_v63 = vand.u32 2147483647, %v1337_v24  ;;  %vm1343_vm14 = vweird.f32 %v1337_v24 }
 0x45c   :  { %3463 = vrcp.f32 %v1356_v7  ;;  %v1368_v61 = vand.u32 2147483648, %v1356_v7  ;;  %v1366_v30 = vand.u32 2147483647, %v1356_v7  ;;  %vm1362_vm15 = vweird.f32 %v1356_v7 }
 0x45d   :  { %v1350_v33 = vor.u32 1.1754944e-38, %v1349_v27  ;;  %vm1348_vm2 = vcmp.eq.f32.partialorder %v1347_v63, 8.507059e+37  ;;  %v1757_v63 = vld [vmem:[#allocation12 + $0x120] sm:$0xff] }
 0x45e   :  { %v1369_v60 = vor.u32 1.1754944e-38, %v1368_v61  ;;  %vm1367_vm3 = vcmp.eq.f32.partialorder %v1366_v30, 8.507059e+37  ;;  %v1759_v30 = vld [vmem:[#allocation12 + $0x130] sm:$0xff] }
 0x45f   :  { %v3460_v22 = vpop.eup %3459 }
 0x460   :  { %v1376_v28 = vadd.f32 1.0, %v3460_v22  ;;  %v1767_v22 = vld [vmem:[#allocation12 + $0x170] sm:$0xff] }
 0x461   :  { %v3462_v18 = vpop.eup %3461 }
 0x462   :  { %v3464_v29 = vpop.eup %3463  ;;  %v1339_v32 = vmul.f32 %v3462_v18, %v1337_v24  ;;  %3465 = vrcp.f32 %v1376_v28  ;;  %vm1344_vm12 = vweird.f32 %v3462_v18  ;;  %v1388_v0 = vand.u32 2147483648, %v1376_v28  ;;  %v1772_v24 = vld [vmem:[#allocation12 + $0x198] sm:$0xff] }
 0x463   :  { %v1358_v20 = vmul.f32 %v3464_v29, %v1356_v7  ;;  %3467 = vtanh.f32 %v1332_v8  ;;  %vm1363_vm13 = vweird.f32 %v3464_v29  ;;  %vm1345_vm0 = vmor %vm1343_vm14, %vm1344_vm12  ;;  %vm1382_vm5 = vweird.f32 %v1376_v28  ;;  %v1765_v7 = vld [vmem:[#allocation12 + $0x160] sm:$0xff]  ;;  %v1768_v8 = vld [vmem:[#allocation12 + $0x178] sm:$0xff] }
 0x464   :  { %v1340_v2 = vsub.f32 1.0, %v1339_v32  ;;  %vm1364_vm1 = vmor %vm1362_vm15, %vm1363_vm13  ;;  %v1386_v50 = vand.u32 2147483647, %v1376_v28  ;;  %v1389_v62 = vor.u32 1.1754944e-38, %v1388_v0  ;;  %v1746_v0 = vld [vmem:[#allocation12 + $0xc8] sm:$0xff] }
 0x465   :  { %v1359_v17 = vsub.f32 1.0, %v1358_v20  ;;  %v1761_v20 = vld [vmem:[#allocation12 + $0x140] sm:$0xff] }
 0x466   :  { %v1341_v39 = vmul.f32 %v3462_v18, %v1340_v2  ;;  %vm1387_vm7 = vcmp.eq.f32.partialorder %v1386_v50, 8.507059e+37  ;;  %v1762_v2 = vld [vmem:[#allocation12 + $0x148] sm:$0xff]  ;;  %v1747_v50 = vld [vmem:[#allocation12 + $0xd0] sm:$0xff] }
 0x467   :  { %v1360_v51 = vmul.f32 %v3464_v29, %v1359_v17  ;;  %v1763_v17 = vld [vmem:[#allocation12 + $0x150] sm:$0xff] }
 0x468   :  { %v3466_v26 = vpop.eup %3465  ;;  %v1342_v31 = vadd.f32 %v3462_v18, %v1341_v39  ;;  %v1764_v39 = vld [vmem:[#allocation12 + $0x158] sm:$0xff] }
 0x469   :  { %v1361_v34 = vadd.f32 %v3464_v29, %v1360_v51  ;;  %v1378_v35 = vmul.f32 %v3466_v26, %v1376_v28  ;;  %v3468_v37 = vpop.eup %3467  ;;  %vm1383_vm4 = vweird.f32 %v3466_v26  ;;  %v6509_v28 = vld [vmem:[#allocation70_spill] sm:$0xff]  ;;  %v1758_v51 = vld [vmem:[#allocation12 + $0x128] sm:$0xff] }
 0x46a   :  { %v1346_v36 = vsel %vm1345_vm0, %v3462_v18, %v1342_v31  ;;  %vm1384_vm6 = vmor %vm1382_vm5, %vm1383_vm4  ;;  %v281_v18 = vadd.f32 %v6509_v28, %v6502_v46  ;;  %v1727_v28 = vld [vmem:[#allocation12 + $0x30] sm:$0xff] }
 0x46b   :  { %v1351_v38 = vsel %vm1348_vm2, %v1350_v33, %v1346_v36  ;;  %v1365_v40 = vsel %vm1364_vm1, %v3464_v29, %v1361_v34  ;;  %v1379_v41 = vsub.f32 1.0, %v1378_v35  ;;  %v1760_v33 = vld [vmem:[#allocation12 + $0x138] sm:$0xff]  ;;  %v1753_v34 = vld [vmem:[#allocation12 + $0x100] sm:$0xff]  ;;  %v1754_v35 = vld [vmem:[#allocation12 + $0x108] sm:$0xff] }
 0x46c   :  { %v1370_v43 = vsel %vm1367_vm3, %v1369_v60, %v1365_v40  ;;  %v1393_v44 = vmul.f32 %v3468_v37, %v1351_v38  ;;  %v1755_v60 = vld [vmem:[#allocation12 + $0x110] sm:$0xff]  ;;  %v1756_v36 = vld [vmem:[#allocation12 + $0x118] sm:$0xff]  ;;  %v6510_v37 = vld [vmem:[#allocation72_spill] sm:$0xff] }
 0x46d   :  { %v1392_v45 = vmul.f32 %v1370_v43, %v4902_v21  ;;  %v1380_v47 = vmul.f32 %v3466_v26, %v1379_v41  ;;  %v1781_v21 = vld [vmem:[#allocation12 + $0x1e0] sm:$0xff]  ;;  %v363_v38 = vadd.f32 %v6510_v37, %v6504_v10  ;;  %v1750_v41 = vld [vmem:[#allocation12 + $0xe8] sm:$0xff]  ;;  %v1751_v43 = vld [vmem:[#allocation12 + $0xf0] sm:$0xff] }
 0x46e   :  { %v1749_v40 = vld [vmem:[#allocation12 + $0xe0] sm:$0xff] }
 0x46f   :  { %v4984_v54 = vadd.f32 %v1393_v44, %v1392_v45  ;;  %v1381_v58 = vadd.f32 %v3466_v26, %v1380_v47  ;;  %v1752_v45 = vld [vmem:[#allocation12 + $0xf8] sm:$0xff] }
 0x471   :  { %3469 = vtanh.f32 %v4984_v54  ;;  %v1385_v55 = vsel %vm1384_vm6, %v3466_v26, %v1381_v58  ;;  %v1745_v58 = vld [vmem:[#allocation12 + $0xc0] sm:$0xff] }
 0x472   :  { %v1390_v13 = vsel %vm1387_vm7, %v1389_v62, %v1385_v55  ;;  %v1748_v55 = vld [vmem:[#allocation12 + $0xd8] sm:$0xff] }
 0x477   :  { %v3470_v49 = vpop.eup %3469 }
 0x478   :  { %v4987_v56 = vmul.f32 %v3470_v49, %v1390_v13  ;;  %v1741_v49 = vld [vmem:[#allocation12 + $0xa0] sm:$0xff]  ;;  %v1742_v13 = vld [vmem:[#allocation12 + $0xa8] sm:$0xff] }
 0x47a   :  { %1422 = vmatmul.f32.vlgmr.msrb.gmra.mxu0 %v4987_v56  ;;  %1442 = vmatmul.f32.vlgmr.msrb.gmra.mxu1 %v4987_v56 }
 0x47b   :  { %1462 = vmatmul.f32.vlgmr.msrb.gmra.mxu2 %v4987_v56  ;;  %1482 = vmatmul.f32.vlgmr.msrb.gmra.mxu3 %v4987_v56 }
 0x47c   :  { %1795 = vmatpush.msrb.mxu0 %v1781_v21  ;;  %1836 = vmatpush.msrb.mxu1 %v1782_v48  ;;  %v1743_v21 = vld [vmem:[#allocation12 + $0xb0] sm:$0xff] }
 0x47d   :  { %1877 = vmatpush.msrb.mxu2 %v1783_v59  ;;  %1918 = vmatpush.msrb.mxu3 %v1784_v57  ;;  %v1744_v59 = vld [vmem:[#allocation12 + $0xb8] sm:$0xff]  ;;  %v1737_v57 = vld [vmem:[#allocation12 + $0x80] sm:$0xff] }
 0x47e   :  { %1796 = vmatpush.msrb.mxu0 %v1777_v25  ;;  %1837 = vmatpush.msrb.mxu1 %v1778_v11  ;;  %v1738_v25 = vld [vmem:[#allocation12 + $0x88] sm:$0xff] }
 0x47f   :  { %1878 = vmatpush.msrb.mxu2 %v1779_v12  ;;  %1919 = vmatpush.msrb.mxu3 %v1780_v14  ;;  %v1739_v14 = vld [vmem:[#allocation12 + $0x90] sm:$0xff] }
 0x480   :  { %1797 = vmatpush.msrb.mxu0 %v1773_v52  ;;  %1838 = vmatpush.msrb.mxu1 %v1774_v19  ;;  %v1740_v52 = vld [vmem:[#allocation12 + $0x98] sm:$0xff] }
 0x481   :  { %1879 = vmatpush.msrb.mxu2 %v1775_v15  ;;  %1920 = vmatpush.msrb.mxu3 %v1776_v16  ;;  %v1733_v15 = vld [vmem:[#allocation12 + $0x60] sm:$0xff]  ;;  %v1734_v16 = vld [vmem:[#allocation12 + $0x68] sm:$0xff] }
 0x482   :  { %1798 = vmatpush.msrb.mxu0 %v1769_v6  ;;  %1839 = vmatpush.msrb.mxu1 %v1770_v5  ;;  %v1735_v6 = vld [vmem:[#allocation12 + $0x70] sm:$0xff]  ;;  %v1736_v5 = vld [vmem:[#allocation12 + $0x78] sm:$0xff] }
 0x483   :  { %1880 = vmatpush.msrb.mxu2 %v1771_v3  ;;  %1921 = vmatpush.msrb.mxu3 %v1772_v24  ;;  %v1729_v3 = vld [vmem:[#allocation12 + $0x40] sm:$0xff]  ;;  %v1730_v24 = vld [vmem:[#allocation12 + $0x48] sm:$0xff] }
 0x484   :  { %1799 = vmatpush.msrb.mxu0 %v1765_v7  ;;  %1840 = vmatpush.msrb.mxu1 %v1766_v42  ;;  %v1731_v7 = vld [vmem:[#allocation12 + $0x50] sm:$0xff]  ;;  %v1732_v42 = vld [vmem:[#allocation12 + $0x58] sm:$0xff] }
 0x485   :  { %1881 = vmatpush.msrb.mxu2 %v1767_v22  ;;  %1922 = vmatpush.msrb.mxu3 %v1768_v8  ;;  %v1725_v22 = vld [vmem:[#allocation12 + $0x20] sm:$0xff] }
 0x486   :  { %1800 = vmatpush.msrb.mxu0 %v1761_v20  ;;  %1841 = vmatpush.msrb.mxu1 %v1762_v2  ;;  %v1721_v20 = vld [vmem:[#allocation12] sm:$0xff]  ;;  %v1722_v2 = vld [vmem:[#allocation12 + $0x8] sm:$0xff] }
 0x487   :  { %1882 = vmatpush.msrb.mxu2 %v1763_v17  ;;  %1923 = vmatpush.msrb.mxu3 %v1764_v39 }
 0x488   :  { %1801 = vmatpush.msrb.mxu0 %v1757_v63  ;;  %1842 = vmatpush.msrb.mxu1 %v1758_v51 }
 0x489   :  { %1883 = vmatpush.msrb.mxu2 %v1759_v30  ;;  %1924 = vmatpush.msrb.mxu3 %v1760_v33 }
 0x48a   :  { %1802 = vmatpush.msrb.mxu0 %v1753_v34  ;;  %1843 = vmatpush.msrb.mxu1 %v1754_v35 }
 0x48b   :  { %1884 = vmatpush.msrb.mxu2 %v1755_v60  ;;  %1925 = vmatpush.msrb.mxu3 %v1756_v36 }
 0x48c   :  { %1803 = vmatpush.msrb.mxu0 %v1749_v40  ;;  %1844 = vmatpush.msrb.mxu1 %v1750_v41 }
 0x48d   :  { %1885 = vmatpush.msrb.mxu2 %v1751_v43  ;;  %1926 = vmatpush.msrb.mxu3 %v1752_v45 }
 0x48e   :  { %1804 = vmatpush.msrb.mxu0 %v1745_v58  ;;  %1845 = vmatpush.msrb.mxu1 %v1746_v0 }
 0x48f   :  { %1886 = vmatpush.msrb.mxu2 %v1747_v50  ;;  %1927 = vmatpush.msrb.mxu3 %v1748_v55 }
 0x490   :  { %1805 = vmatpush.msrb.mxu0 %v1741_v49  ;;  %1846 = vmatpush.msrb.mxu1 %v1742_v13 }
 0x491   :  { %1887 = vmatpush.msrb.mxu2 %v1743_v21  ;;  %1928 = vmatpush.msrb.mxu3 %v1744_v59 }
 0x492   :  { %1806 = vmatpush.msrb.mxu0 %v1737_v57  ;;  %1847 = vmatpush.msrb.mxu1 %v1738_v25 }
 0x493   :  { %1888 = vmatpush.msrb.mxu2 %v1739_v14  ;;  %1929 = vmatpush.msrb.mxu3 %v1740_v52 }
 0x494   :  { %1807 = vmatpush.msrb.mxu0 %v1733_v15  ;;  %1848 = vmatpush.msrb.mxu1 %v1734_v16  ;;  %v6513_v16 = vld [vmem:[#allocation25_spill] sm:$0xff] }
 0x495   :  { %1889 = vmatpush.msrb.mxu2 %v1735_v6  ;;  %1930 = vmatpush.msrb.mxu3 %v1736_v5  ;;  %v6514_v6 = vld [vmem:[#allocation30_spill] sm:$0xff]  ;;  %v5031_v5 = vld [vmem:[#allocation13 + $0x1e0] sm:$0xff] }
 0x496   :  { %1808 = vmatpush.msrb.mxu0 %v1729_v3  ;;  %1849 = vmatpush.msrb.mxu1 %v1730_v24  ;;  %v5033_v3 = vld [vmem:[#allocation13 + $0x1e8] sm:$0xff]  ;;  %v5035_v24 = vld [vmem:[#allocation13 + $0x1c0] sm:$0xff] }
 0x497   :  { %1890 = vmatpush.msrb.mxu2 %v1731_v7  ;;  %1931 = vmatpush.msrb.mxu3 %v1732_v42  ;;  %v5039_v7 = vld [vmem:[#allocation13 + $0x1c8] sm:$0xff]  ;;  %v5041_v42 = vld [vmem:[#allocation13 + $0x1f8] sm:$0xff] }
 0x498   :  { %1809 = vmatpush.msrb.mxu0 %v1725_v22  ;;  %6515 = vst [vmem:[#allocation24_spill] sm:$0xff] %v5039_v7  ;;  %v5044_v22 = vld [vmem:[#allocation13 + $0x1a0] sm:$0xff] }
 0x499   :  { %1891 = vmatpush.msrb.mxu2 %v1727_v28  ;;  %6516 = vst [vmem:[#allocation26_spill] sm:$0xff] %v5041_v42  ;;  %v6519_v28 = vld [vmem:[#allocation56_spill] sm:$0xff] }
 0x49a   :  { %1810 = vmatpush.msrb.mxu0 %v1721_v20  ;;  %6517 = vst [vmem:[#allocation27_spill] sm:$0xff] %v5044_v22  ;;  %v5084_v20 = vld [vmem:[#allocation13 + $0x168] sm:$0xff] }
 0x4f7   :  { %v1423_v29 = vpop.f32.mrf.mxu0  ;;  %v1443_v32 = vpop.f32.mrf.mxu1 }
 0x4f8   :  { %v1486_v27 = vadd.f32 %v1423_v29, %v240_v4  ;;  %v1487_v61 = vadd.f32 %v1443_v32, %v281_v18  ;;  %v1726_v4 = vld [vmem:[#allocation12 + $0x28] sm:$0xff]  ;;  %v1728_v18 = vld [vmem:[#allocation12 + $0x38] sm:$0xff] }
 0x4f9   :  { %v6511_v29 = vld [vmem:[#allocation77_spill] sm:$0xff]  ;;  %1850 = vmatpush.msrb.mxu1 %v1726_v4  ;;  %1932 = vmatpush.msrb.mxu3 %v1728_v18  ;;  %v5048_v4 = vld [vmem:[#allocation13 + $0x1d8] sm:$0xff]  ;;  %v5067_v18 = vld [vmem:[#allocation13 + $0x1f0] sm:$0xff] }
 0x4fa   :  { %v3332_v26 = vmul.f32 -1.442695, %v1486_v27  ;;  %v3333_v31 = vmul.f32 -1.442695, %v1487_v61  ;;  %v322_v32 = vadd.f32 %v6511_v29, %v6506_v9  ;;  %v1723_v27 = vld [vmem:[#allocation12 + $0x10] sm:$0xff]  ;;  %v1724_v61 = vld [vmem:[#allocation12 + $0x18] sm:$0xff] }
 0x4fb   :  { %1851 = vmatpush.msrb.mxu1 %v1722_v2  ;;  %1892 = vmatpush.msrb.mxu2 %v1723_v27  ;;  %v5072_v29 = vld [vmem:[#allocation13 + $0x1b8] sm:$0xff]  ;;  %v5092_v27 = vld [vmem:[#allocation13 + $0x190] sm:$0xff] }
 0x4fc   :  { %3471 = vpow2.f32 %v3332_v26  ;;  %1933 = vmatpush.msrb.mxu3 %v1724_v61  ;;  %6520 = vst [vmem:[#allocation28_spill] sm:$0xff] %v5072_v29  ;;  %v5086_v2 = vld [vmem:[#allocation13 + $0x198] sm:$0xff] }
 0x4fd   :  { %3473 = vpow2.f32 %v3333_v31  ;;  %v5096_v61 = vld [vmem:[#allocation13 + $0x178] sm:$0xff] }
 0x4fe   :  { %v1483_v44 = vpop.f32.mrf.mxu3  ;;  %v1463_v1 = vpop.f32.mrf.mxu2 }
 0x4ff   :  { %v1489_v47 = vadd.f32 %v1483_v44, %v363_v38  ;;  %v1488_v63 = vadd.f32 %v1463_v1, %v322_v32  ;;  %v5046_v1 = vld [vmem:[#allocation13 + $0x1a8] sm:$0xff] }
 0x500   :  { %6518 = vst [vmem:[#allocation29_spill] sm:$0xff] %v5046_v1  ;;  %v5077_v32 = vld [vmem:[#allocation13 + $0x188] sm:$0xff] }
 0x501   :  { %v3334_v62 = vmul.f32 -1.442695, %v1489_v47 }
 0x502   :  { %v3472_v48 = vpop.eup %3471 }
 0x503   :  { %v3474_v11 = vpop.eup %3473  ;;  %v4999_v12 = vadd.f32 1.0, %v3472_v48  ;;  %3475 = vpow2.f32 %v3334_v62 }
 0x504   :  { %v5001_v19 = vadd.f32 1.0, %v3474_v11 }
 0x505   :  { %3477 = vrcp.f32 %v4999_v12  ;;  %v1505_v34 = vand.u32 2147483648, %v4999_v12  ;;  %v1503_v36 = vand.u32 2147483647, %v4999_v12  ;;  %vm1499_vm10 = vweird.f32 %v4999_v12 }
 0x506   :  { %3479 = vrcp.f32 %v5001_v19  ;;  %v1524_v35 = vand.u32 2147483648, %v5001_v19  ;;  %v1522_v38 = vand.u32 2147483647, %v5001_v19  ;;  %vm1518_vm11 = vweird.f32 %v5001_v19 }
 0x507   :  { %v1506_v43 = vor.u32 1.1754944e-38, %v1505_v34  ;;  %vm1504_vm14 = vcmp.eq.f32.partialorder %v1503_v36, 8.507059e+37  ;;  %v5106_v34 = vld [vmem:[#allocation13 + $0x140] sm:$0xff] }
 0x508   :  { %v1525_v47 = vor.u32 1.1754944e-38, %v1524_v35  ;;  %vm1523_vm15 = vcmp.eq.f32.partialorder %v1522_v38, 8.507059e+37  ;;  %v5108_v35 = vld [vmem:[#allocation13 + $0x148] sm:$0xff] }
 0x509   :  { %v3476_v8 = vpop.eup %3475  ;;  %v5119_v38 = vld [vmem:[#allocation13 + $0x128] sm:$0xff] }
 0x50a   :  { %v1532_v17 = vadd.f32 1.0, %v3476_v8  ;;  %v5070_v8 = vld [vmem:[#allocation13 + $0x1d0] sm:$0xff] }
 0x50b   :  { %v3478_v39 = vpop.eup %3477 }
 0x50c   :  { %v3480_v51 = vpop.eup %3479  ;;  %v1495_v30 = vmul.f32 %v3478_v39, %v4999_v12  ;;  %3481 = vrcp.f32 %v1532_v17  ;;  %vm1500_vm8 = vweird.f32 %v3478_v39  ;;  %v1544_v25 = vand.u32 2147483648, %v1532_v17 }
 0x50d   :  { %v1514_v26 = vmul.f32 %v3480_v51, %v5001_v19  ;;  %3483 = vtanh.f32 %v1488_v63  ;;  %vm1519_vm9 = vweird.f32 %v3480_v51  ;;  %vm1501_vm12 = vmor %vm1499_vm10, %vm1500_vm8  ;;  %vm1538_vm1 = vweird.f32 %v1532_v17  ;;  %v6521_v63 = vld [vmem:[#allocation73_spill] sm:$0xff] }
 0x50e   :  { %v1496_v31 = vsub.f32 1.0, %v1495_v30  ;;  %vm1520_vm13 = vmor %vm1518_vm11, %vm1519_vm9  ;;  %v1542_v11 = vand.u32 2147483647, %v1532_v17  ;;  %v1545_v14 = vor.u32 1.1754944e-38, %v1544_v25  ;;  %v6522_v30 = vld [vmem:[#allocation74_spill] sm:$0xff] }
 0x50f   :  { %v1515_v33 = vsub.f32 1.0, %v1514_v26  ;;  %v284_v26 = vadd.f32 %v6522_v30, %v6502_v46  ;;  %v5117_v46 = vld [vmem:[#allocation13 + $0x120] sm:$0xff]  ;;  %v5156_v25 = vld [vmem:[#allocation13 + $0x110] sm:$0xff] }
 0x510   :  { %v1497_v60 = vmul.f32 %v3478_v39, %v1496_v31  ;;  %vm1543_vm3 = vcmp.eq.f32.partialorder %v1542_v11, 8.507059e+37 }
 0x511   :  { %v1516_v37 = vmul.f32 %v3480_v51, %v1515_v33 }
 0x512   :  { %v3482_v40 = vpop.eup %3481  ;;  %v1498_v41 = vadd.f32 %v3478_v39, %v1497_v60  ;;  %v5110_v60 = vld [vmem:[#allocation13 + $0x158] sm:$0xff] }
 0x513   :  { %v1517_v44 = vadd.f32 %v3480_v51, %v1516_v37  ;;  %v1534_v45 = vmul.f32 %v3482_v40, %v1532_v17  ;;  %v3484_v0 = vpop.eup %3483  ;;  %vm1539_vm0 = vweird.f32 %v3482_v40  ;;  %v5088_v17 = vld [vmem:[#allocation13 + $0x1b0] sm:$0xff] }
 0x514   :  { %v1502_v58 = vsel %vm1501_vm12, %v3478_v39, %v1498_v41  ;;  %vm1540_vm2 = vmor %vm1538_vm1, %vm1539_vm0  ;;  %v5099_v39 = vld [vmem:[#allocation13 + $0x170] sm:$0xff] }
 0x515   :  { %v1507_v50 = vsel %vm1504_vm14, %v1506_v43, %v1502_v58  ;;  %v1521_v55 = vsel %vm1520_vm13, %v3480_v51, %v1517_v44  ;;  %v1535_v62 = vsub.f32 1.0, %v1534_v45  ;;  %v243_v51 = vadd.f32 %v6521_v63, %v6500_v53  ;;  %v5115_v53 = vld [vmem:[#allocation13 + $0x150] sm:$0xff]  ;;  %v5129_v45 = vld [vmem:[#allocation13 + $0x100] sm:$0xff] }
 0x516   :  { %v1526_v49 = vsel %vm1523_vm15, %v1525_v47, %v1521_v55  ;;  %v1549_v13 = vmul.f32 %v3484_v0, %v1507_v50  ;;  %v5127_v44 = vld [vmem:[#allocation13 + $0x130] sm:$0xff]  ;;  %v5131_v47 = vld [vmem:[#allocation13 + $0x108] sm:$0xff]  ;;  %v5134_v58 = vld [vmem:[#allocation13 + $0xe0] sm:$0xff] }
 0x517   :  { %v1548_v21 = vmul.f32 %v1526_v49, %v4984_v54  ;;  %v1536_v48 = vmul.f32 %v3482_v40, %v1535_v62  ;;  %v6512_v54 = vld [vmem:[#allocation82_spill] sm:$0xff]  ;;  %v5139_v0 = vld [vmem:[#allocation13 + $0xe8] sm:$0xff]  ;;  %v5141_v50 = vld [vmem:[#allocation13 + $0x118] sm:$0xff] }
 0x518   :  { %v6523_v55 = vld [vmem:[#allocation78_spill] sm:$0xff]  ;;  %v5146_v49 = vld [vmem:[#allocation13 + $0xc0] sm:$0xff] }
 0x519   :  { %v5016_v59 = vadd.f32 %v1549_v13, %v1548_v21  ;;  %v1537_v57 = vadd.f32 %v3482_v40, %v1536_v48  ;;  %v366_v62 = vadd.f32 %v6523_v55, %v6504_v10  ;;  %v5148_v13 = vld [vmem:[#allocation13 + $0xc8] sm:$0xff]  ;;  %v5150_v21 = vld [vmem:[#allocation13 + $0xf8] sm:$0xff]  ;;  %v5159_v10 = vld [vmem:[#allocation13 + $0xa0] sm:$0xff] }
 0x51a   :  { %6525 = vst [vmem:[#allocation59_spill] sm:$0xff] %v5159_v10  ;;  %v5182_v63 = vld [vmem:[#allocation13 + $0xb0] sm:$0xff] }
 0x51b   :  { %3485 = vtanh.f32 %v5016_v59  ;;  %v1541_v12 = vsel %vm1540_vm2, %v3482_v40, %v1537_v57  ;;  %v5122_v40 = vld [vmem:[#allocation13 + $0x138] sm:$0xff]  ;;  %6532 = vst [vmem:[#allocation31_spill] sm:$0xff] %v5182_v63  ;;  %v5210_v55 = vld [vmem:[#allocation13 + $0x70] sm:$0xff] }
 0x51c   :  { %v1546_v19 = vsel %vm1543_vm3, %v1545_v14, %v1541_v12  ;;  %v5154_v57 = vld [vmem:[#allocation13 + $0xd8] sm:$0xff]  ;;  %v5161_v12 = vld [vmem:[#allocation13 + $0xa8] sm:$0xff]  ;;  %6539 = vst [vmem:[#allocation38_spill] sm:$0xff] %v5210_v55 }
 0x51d   :  { %6524 = vst [vmem:[#allocation58_spill] sm:$0xff] %v5154_v57  ;;  %v5166_v14 = vld [vmem:[#allocation13 + $0xb8] sm:$0xff] }
 0x51e   :  { %6526 = vst [vmem:[#allocation61_spill] sm:$0xff] %v5161_v12 }
 0x51f   :  { %6527 = vst [vmem:[#allocation60_spill] sm:$0xff] %v5166_v14 }
 0x521   :  { %v3486_v52 = vpop.eup %3485 }
 0x522   :  { %v1552_v15 = vmul.f32 %v3486_v52, %v1546_v19  ;;  %v5168_v52 = vld [vmem:[#allocation13 + $0xf0] sm:$0xff] }
 0x524   :  { %1578 = vmatmul.f32.vlgmr.msra.gmra.mxu0 %v1552_v15  ;;  %1598 = vmatmul.f32.vlgmr.msra.gmra.mxu1 %v1552_v15 }
 0x525   :  { %1618 = vmatmul.f32.vlgmr.msra.gmra.mxu2 %v1552_v15  ;;  %1638 = vmatmul.f32.vlgmr.msra.gmra.mxu3 %v1552_v15 }
 0x526   :  { %2059 = vmatpush.msra.mxu0 %v5031_v5  ;;  %2079 = vmatpush.msra.mxu1 %v5033_v3 }
 0x527   :  { %2119 = vmatpush.msra.mxu3 %v5041_v42  ;;  %2099 = vmatpush.msra.mxu2 %v5067_v18 }
 0x528   :  { %2060 = vmatpush.msra.mxu0 %v5035_v24  ;;  %2080 = vmatpush.msra.mxu1 %v5039_v7 }
 0x529   :  { %2120 = vmatpush.msra.mxu3 %v5048_v4  ;;  %2100 = vmatpush.msra.mxu2 %v5070_v8 }
 0x52a   :  { %2061 = vmatpush.msra.mxu0 %v5044_v22  ;;  %2081 = vmatpush.msra.mxu1 %v5046_v1 }
 0x52b   :  { %2121 = vmatpush.msra.mxu3 %v5072_v29  ;;  %2101 = vmatpush.msra.mxu2 %v5088_v17 }
 0x52c   :  { %1811 = vmatmul.f32.vlgmr.msrb.gmra.mxu0 %v6512_v54  ;;  %1852 = vmatmul.f32.vlgmr.msrb.gmra.mxu1 %v6512_v54 }
 0x52d   :  { %1893 = vmatmul.f32.vlgmr.msrb.gmra.mxu2 %v6512_v54  ;;  %1934 = vmatmul.f32.vlgmr.msrb.gmra.mxu3 %v6512_v54  ;;  %v5173_v54 = vld [vmem:[#allocation13 + $0x88] sm:$0xff] }
 0x52e   :  { %2082 = vmatpush.msra.mxu1 %v5077_v32  ;;  %2122 = vmatpush.msra.mxu3 %v5086_v2  ;;  %6529 = vst [vmem:[#allocation63_spill] sm:$0xff] %v5173_v54 }
 0x52f   :  { %2102 = vmatpush.msra.mxu2 %v5092_v27 }
 0x530   :  { %2083 = vmatpush.msra.mxu1 %v5084_v20  ;;  %2123 = vmatpush.msra.mxu3 %v5096_v61 }
 0x531   :  { %2103 = vmatpush.msra.mxu2 %v5099_v39 }
 0x532   :  { %2084 = vmatpush.msra.mxu1 %v5108_v35  ;;  %2124 = vmatpush.msra.mxu3 %v5110_v60 }
 0x533   :  { %2104 = vmatpush.msra.mxu2 %v5115_v53 }
 0x534   :  { %1814 = vmatmul.f32.gmra.mxu0 %v6513_v16  ;;  %1855 = vmatmul.f32.gmra.mxu1 %v6513_v16 }
 0x535   :  { %1896 = vmatmul.f32.gmra.mxu2 %v6513_v16  ;;  %1937 = vmatmul.f32.gmra.mxu3 %v6513_v16  ;;  %v5176_v16 = vld [vmem:[#allocation13 + $0xd0] sm:$0xff] }
 0x536   :  { %2085 = vmatpush.msra.mxu1 %v5119_v38  ;;  %2125 = vmatpush.msra.mxu3 %v5122_v40  ;;  %6530 = vst [vmem:[#allocation64_spill] sm:$0xff] %v5176_v16 }
 0x537   :  { %2105 = vmatpush.msra.mxu2 %v5127_v44 }
 0x538   :  { %2086 = vmatpush.msra.mxu1 %v5131_v47  ;;  %2126 = vmatpush.msra.mxu3 %v5141_v50 }
 0x539   :  { %2106 = vmatpush.msra.mxu2 %v5156_v25 }
 0x53a   :  { %2087 = vmatpush.msra.mxu1 %v5139_v0  ;;  %2127 = vmatpush.msra.mxu3 %v5150_v21 }
 0x53b   :  { %2107 = vmatpush.msra.mxu2 %v5168_v52 }
 0x53c   :  { %1817 = vmatmul.f32.gmra.mxu0 %v6514_v6  ;;  %1858 = vmatmul.f32.gmra.mxu1 %v6514_v6 }
 0x53d   :  { %1899 = vmatmul.f32.gmra.mxu2 %v6514_v6  ;;  %1940 = vmatmul.f32.gmra.mxu3 %v6514_v6 }
 0x53e   :  { %2088 = vmatpush.msra.mxu1 %v5148_v13  ;;  %2128 = vmatpush.msra.mxu3 %v5154_v57 }
 0x53f   :  { %2108 = vmatpush.msra.mxu2 %v5176_v16 }
 0x540   :  { %2089 = vmatpush.msra.mxu1 %v5161_v12  ;;  %2129 = vmatpush.msra.mxu3 %v5166_v14 }
 0x541   :  { %2109 = vmatpush.msra.mxu2 %v5182_v63 }
 0x542   :  { %2090 = vmatpush.msra.mxu1 %v5173_v54 }
 0x544   :  { %1820 = vmatmul.f32.gmra.mxu0 %v6519_v28  ;;  %1861 = vmatmul.f32.gmra.mxu1 %v6519_v28 }
 0x545   :  { %1902 = vmatmul.f32.gmra.mxu2 %v6519_v28  ;;  %1943 = vmatmul.f32.gmra.mxu3 %v6519_v28  ;;  %v5180_v28 = vld [vmem:[#allocation13 + $0x98] sm:$0xff] }
 0x546   :  { %6531 = vst [vmem:[#allocation67_spill] sm:$0xff] %v5180_v28  ;;  %2130 = vmatpush.msra.mxu3 %v5180_v28  ;;  %v5230_v28 = vld [vmem:[#allocation13 + $0x8] sm:$0xff] }
 0x547   :  { %6546 = vst [vmem:[#allocation44_spill] sm:$0xff] %v5230_v28 }
 0x54c   :  { %1823 = vmatmul.f32.gmra.mxu0 %v4905_v23  ;;  %1864 = vmatmul.f32.gmra.mxu1 %v4905_v23 }
 0x54d   :  { %1905 = vmatmul.f32.gmra.mxu2 %v4905_v23  ;;  %1946 = vmatmul.f32.gmra.mxu3 %v4905_v23  ;;  %v5075_v23 = vld [vmem:[#allocation13 + $0x180] sm:$0xff] }
 0x54e   :  { %2062 = vmatpush.msra.mxu0 %v5075_v23 }
 0x554   :  { %1826 = vmatmul.f32.gmra.mxu0 %v4987_v56  ;;  %1867 = vmatmul.f32.gmra.mxu1 %v4987_v56 }
 0x555   :  { %1908 = vmatmul.f32.gmra.mxu2 %v4987_v56  ;;  %1949 = vmatmul.f32.gmra.mxu3 %v4987_v56  ;;  %v5080_v56 = vld [vmem:[#allocation13 + $0x160] sm:$0xff] }
 0x556   :  { %2063 = vmatpush.msra.mxu0 %v5080_v56 }
 0x558   :  { %2064 = vmatpush.msra.mxu0 %v5106_v34 }
 0x55a   :  { %2065 = vmatpush.msra.mxu0 %v5117_v46 }
 0x55c   :  { %1829 = vmatmul.f32.gmra.mxu0 %v1552_v15  ;;  %1870 = vmatmul.f32.gmra.mxu1 %v1552_v15 }
 0x55d   :  { %1911 = vmatmul.f32.gmra.mxu2 %v1552_v15  ;;  %1952 = vmatmul.f32.gmra.mxu3 %v1552_v15  ;;  %v5171_v15 = vld [vmem:[#allocation13 + $0x80] sm:$0xff] }
 0x55e   :  { %2066 = vmatpush.msra.mxu0 %v5129_v45  ;;  %6528 = vst [vmem:[#allocation62_spill] sm:$0xff] %v5171_v15 }
 0x560   :  { %2067 = vmatpush.msra.mxu0 %v5134_v58 }
 0x562   :  { %2068 = vmatpush.msra.mxu0 %v5146_v49 }
 0x564   :  { %2069 = vmatpush.msra.mxu0 %v5159_v10 }
 0x566   :  { %2070 = vmatpush.msra.mxu0 %v5171_v15 }
 0x5a1   :  { %v1579_v31 = vpop.f32.mrf.mxu0  ;;  %v1599_v33 = vpop.f32.mrf.mxu1 }
 0x5a2   :  { %v1642_v36 = vadd.f32 %v1579_v31, %v243_v51  ;;  %v1643_v37 = vadd.f32 %v1599_v33, %v284_v26  ;;  %v5187_v26 = vld [vmem:[#allocation13 + $0x60] sm:$0xff]  ;;  %v5189_v31 = vld [vmem:[#allocation13 + $0x68] sm:$0xff] }
 0x5a3   :  { %6533 = vst [vmem:[#allocation33_spill] sm:$0xff] %v5187_v26  ;;  %2071 = vmatpush.msra.mxu0 %v5187_v26  ;;  %2091 = vmatpush.msra.mxu1 %v5189_v31 }
 0x5a4   :  { %v3335_v41 = vmul.f32 -1.442695, %v1642_v36  ;;  %v3336_v43 = vmul.f32 -1.442695, %v1643_v37  ;;  %6534 = vst [vmem:[#allocation32_spill] sm:$0xff] %v5189_v31  ;;  %v5196_v36 = vld [vmem:[#allocation13 + $0x78] sm:$0xff] }
 0x5a5   :  { %6535 = vst [vmem:[#allocation34_spill] sm:$0xff] %v5196_v36  ;;  %v5198_v37 = vld [vmem:[#allocation13 + $0x90] sm:$0xff]  ;;  %2131 = vmatpush.msra.mxu3 %v5196_v36  ;;  %v6544_v31 = vld [vmem:[#allocation80_spill] sm:$0xff] }
 0x5a6   :  { %3487 = vpow2.f32 %v3335_v41  ;;  %6536 = vst [vmem:[#allocation35_spill] sm:$0xff] %v5198_v37  ;;  %v5202_v41 = vld [vmem:[#allocation13 + $0x40] sm:$0xff]  ;;  %2110 = vmatpush.msra.mxu2 %v5198_v37  ;;  %v325_v26 = vadd.f32 %v6544_v31, %v6506_v9  ;;  %v5232_v37 = vld [vmem:[#allocation13 + $0x38] sm:$0xff] }
 0x5a7   :  { %3489 = vpow2.f32 %v3336_v43  ;;  %6537 = vst [vmem:[#allocation37_spill] sm:$0xff] %v5202_v41  ;;  %v5204_v43 = vld [vmem:[#allocation13 + $0x48] sm:$0xff]  ;;  %2072 = vmatpush.msra.mxu0 %v5202_v41  ;;  %v5228_v36 = vld [vmem:[#allocation13] sm:$0xff]  ;;  %v5240_v41 = vld [vmem:[#allocation13 + $0x18] sm:$0xff] }
 0x5a8   :  { %v1639_v48 = vpop.f32.mrf.mxu3  ;;  %6538 = vst [vmem:[#allocation36_spill] sm:$0xff] %v5204_v43  ;;  %2092 = vmatpush.msra.mxu1 %v5204_v43  ;;  %2111 = vmatpush.msra.mxu2 %v5210_v55  ;;  %v5238_v43 = vld [vmem:[#allocation13 + $0x30] sm:$0xff] }
 0x5a9   :  { %v1645_v11 = vadd.f32 %v1639_v48, %v366_v62  ;;  %v5212_v62 = vld [vmem:[#allocation13 + $0x58] sm:$0xff]  ;;  %v5216_v48 = vld [vmem:[#allocation13 + $0x20] sm:$0xff]  ;;  %6545 = vst [vmem:[#allocation43_spill] sm:$0xff] %v5228_v36 }
 0x5aa   :  { %6540 = vst [vmem:[#allocation39_spill] sm:$0xff] %v5212_v62  ;;  %2132 = vmatpush.msra.mxu3 %v5212_v62  ;;  %2073 = vmatpush.msra.mxu0 %v5216_v48 }
 0x5ab   :  { %v3337_v19 = vmul.f32 -1.442695, %v1645_v11  ;;  %6541 = vst [vmem:[#allocation41_spill] sm:$0xff] %v5216_v48  ;;  %v5218_v11 = vld [vmem:[#allocation13 + $0x28] sm:$0xff] }
 0x5ac   :  { %v3488_v6 = vpop.eup %3487  ;;  %6542 = vst [vmem:[#allocation40_spill] sm:$0xff] %v5218_v11  ;;  %2093 = vmatpush.msra.mxu1 %v5218_v11  ;;  %2133 = vmatpush.msra.mxu3 %v5232_v37 }
 0x5ad   :  { %v3490_v51 = vpop.eup %3489  ;;  %v5184_v30 = vadd.f32 1.0, %v3488_v6  ;;  %3491 = vpow2.f32 %v3337_v19  ;;  %v1619_v19 = vpop.f32.mrf.mxu2  ;;  %v5222_v6 = vld [vmem:[#allocation13 + $0x50] sm:$0xff]  ;;  %6547 = vst [vmem:[#allocation45_spill] sm:$0xff] %v5232_v37  ;;  %2074 = vmatpush.msra.mxu0 %v5228_v36 }
 0x5ae   :  { %v5192_v33 = vadd.f32 1.0, %v3490_v51  ;;  %6543 = vst [vmem:[#allocation42_spill] sm:$0xff] %v5222_v6  ;;  %v1644_v31 = vadd.f32 %v1619_v19, %v325_v26  ;;  %2112 = vmatpush.msra.mxu2 %v5222_v6  ;;  %2094 = vmatpush.msra.mxu1 %v5230_v28 }
 0x5af   :  { %3493 = vrcp.f32 %v5184_v30  ;;  %6548 = vst [vmem:[#allocation46_spill] sm:$0xff] %v5238_v43  ;;  %2134 = vmatpush.msra.mxu3 %v5240_v41  ;;  %2210 = vmatpush.msrb.mxu0 %v5031_v5  ;;  %v1661_v37 = vand.u32 2147483648, %v5184_v30  ;;  %vm1655_vm6 = vweird.f32 %v5184_v30 }
 0x5b0   :  { %3495 = vrcp.f32 %v5192_v33  ;;  %6549 = vst [vmem:[#allocation47_spill] sm:$0xff] %v5240_v41  ;;  %2113 = vmatpush.msra.mxu2 %v5238_v43  ;;  %2230 = vmatpush.msrb.mxu1 %v5033_v3  ;;  %v1680_v28 = vand.u32 2147483648, %v5192_v33  ;;  %v1659_v43 = vand.u32 2147483647, %v5184_v30  ;;  %vm1674_vm7 = vweird.f32 %v5192_v33 }
 0x5b1   :  { %2270 = vmatpush.msrb.mxu3 %v5041_v42  ;;  %2211 = vmatpush.msrb.mxu0 %v5035_v24 }
 0x5b2   :  { %2231 = vmatpush.msrb.mxu1 %v5039_v7  ;;  %vm1660_vm10 = vcmp.eq.f32.partialorder %v1659_v43, 8.507059e+37 }
 0x5b3   :  { %v3492_v51 = vpop.eup %3491  ;;  %2271 = vmatpush.msrb.mxu3 %v5048_v4  ;;  %2212 = vmatpush.msrb.mxu0 %v5044_v22 }
 0x5b4   :  { %v5234_v54 = vadd.f32 1.0, %v3492_v51  ;;  %v5248_v51 = vld [vmem:[#allocation13 + $0x10] sm:$0xff]  ;;  %2232 = vmatpush.msrb.mxu1 %v5046_v1 }
 0x5b5   :  { %v3494_v9 = vpop.eup %3493  ;;  %6550 = vst [vmem:[#allocation48_spill] sm:$0xff] %v5248_v51  ;;  %2114 = vmatpush.msra.mxu2 %v5248_v51  ;;  %2272 = vmatpush.msrb.mxu3 %v5072_v29 }
 0x5b6   :  { %v3496_v62 = vpop.eup %3495  ;;  %v1651_v55 = vmul.f32 %v3494_v9, %v5184_v30  ;;  %3497 = vrcp.f32 %v5234_v54  ;;  %vm1656_vm4 = vweird.f32 %v3494_v9  ;;  %v1681_v30 = vor.u32 1.1754944e-38, %v1680_v28  ;;  %2213 = vmatpush.msrb.mxu0 %v5075_v23  ;;  %2233 = vmatpush.msrb.mxu1 %v5077_v32 }
 0x5b7   :  { %v1670_v11 = vmul.f32 %v3496_v62, %v5192_v33  ;;  %3499 = vtanh.f32 %v1644_v31  ;;  %2250 = vmatpush.msrb.mxu2 %v5067_v18  ;;  %vm1675_vm5 = vweird.f32 %v3496_v62  ;;  %vm1657_vm8 = vmor %vm1655_vm6, %vm1656_vm4  ;;  %2273 = vmatpush.msrb.mxu3 %v5086_v2  ;;  %vm1694_vm13 = vweird.f32 %v5234_v54 }
 0x5b8   :  { %v1652_v26 = vsub.f32 1.0, %v1651_v55  ;;  %vm1676_vm9 = vmor %vm1674_vm7, %vm1675_vm5  ;;  %2214 = vmatpush.msrb.mxu0 %v5080_v56  ;;  %2234 = vmatpush.msrb.mxu1 %v5084_v20 }
 0x5b9   :  { %v1671_v19 = vsub.f32 1.0, %v1670_v11  ;;  %v1678_v11 = vand.u32 2147483647, %v5192_v33  ;;  %2251 = vmatpush.msrb.mxu2 %v5070_v8  ;;  %2274 = vmatpush.msrb.mxu3 %v5096_v61 }
 0x5ba   :  { %v1653_v36 = vmul.f32 %v3494_v9, %v1652_v26  ;;  %v1662_v26 = vor.u32 1.1754944e-38, %v1661_v37  ;;  %2215 = vmatpush.msrb.mxu0 %v5106_v34  ;;  %2235 = vmatpush.msrb.mxu1 %v5108_v35 }
 0x5bb   :  { %v1672_v55 = vmul.f32 %v3496_v62, %v1671_v19  ;;  %2252 = vmatpush.msrb.mxu2 %v5088_v17  ;;  %vm1679_vm11 = vcmp.eq.f32.partialorder %v1678_v11, 8.507059e+37  ;;  %2275 = vmatpush.msrb.mxu3 %v5110_v60  ;;  %v6551_v11 = vld [vmem:[#allocation63_spill] sm:$0xff] }
 0x5bc   :  { %v5265_v31 = vpop.eup %3497  ;;  %v1654_v42 = vadd.f32 %v3494_v9, %v1653_v36  ;;  %2216 = vmatpush.msrb.mxu0 %v5117_v46  ;;  %2236 = vmatpush.msrb.mxu1 %v5119_v38 }
 0x5bd   :  { %v1673_v19 = vadd.f32 %v3496_v62, %v1672_v55  ;;  %v1690_v7 = vmul.f32 %v5265_v31, %v5234_v54  ;;  %v3500_v33 = vpop.eup %3499  ;;  %2253 = vmatpush.msrb.mxu2 %v5092_v27  ;;  %vm1695_vm12 = vweird.f32 %v5265_v31  ;;  %2276 = vmatpush.msrb.mxu3 %v5122_v40 }
 0x5be   :  { %v1658_v36 = vsel %vm1657_vm8, %v3494_v9, %v1654_v42  ;;  %vm1696_vm14 = vmor %vm1694_vm13, %vm1695_vm12  ;;  %2217 = vmatpush.msrb.mxu0 %v5129_v45  ;;  %2237 = vmatpush.msrb.mxu1 %v5131_v47 }
 0x5bf   :  { %v1663_v22 = vsel %vm1660_vm10, %v1662_v26, %v1658_v36  ;;  %v1677_v37 = vsel %vm1676_vm9, %v3496_v62, %v1673_v19  ;;  %v1691_v55 = vsub.f32 1.0, %v1690_v7  ;;  %2254 = vmatpush.msrb.mxu2 %v5099_v39  ;;  %2277 = vmatpush.msrb.mxu3 %v5141_v50  ;;  %v6553_v26 = vld [vmem:[#allocation67_spill] sm:$0xff]  ;;  %v6554_v19 = vld [vmem:[#allocation33_spill] sm:$0xff]  ;;  %v6556_v36 = vld [vmem:[#allocation38_spill] sm:$0xff] }
 0x5c0   :  { %v1682_v1 = vsel %vm1679_vm11, %v1681_v30, %v1677_v37  ;;  %v1705_v29 = vmul.f32 %v3500_v33, %v1663_v22  ;;  %2218 = vmatpush.msrb.mxu0 %v5134_v58  ;;  %2238 = vmatpush.msrb.mxu1 %v5139_v0  ;;  %v6555_v30 = vld [vmem:[#allocation32_spill] sm:$0xff]  ;;  %v6557_v33 = vld [vmem:[#allocation34_spill] sm:$0xff]  ;;  %v6558_v37 = vld [vmem:[#allocation37_spill] sm:$0xff] }
 0x5c1   :  { %v1704_v42 = vmul.f32 %v1682_v1, %v5016_v59  ;;  %v1692_v28 = vmul.f32 %v5265_v31, %v1691_v55  ;;  %2255 = vmatpush.msrb.mxu2 %v5115_v53  ;;  %v1700_v59 = vand.u32 2147483648, %v5234_v54  ;;  %v1698_v1 = vand.u32 2147483647, %v5234_v54  ;;  %2278 = vmatpush.msrb.mxu3 %v5150_v21  ;;  %v6559_v55 = vld [vmem:[#allocation36_spill] sm:$0xff] }
 0x5c2   :  { %2219 = vmatpush.msrb.mxu0 %v5146_v49  ;;  %2239 = vmatpush.msrb.mxu1 %v5148_v13 }
 0x5c3   :  { %v1706_v7 = vadd.f32 %v1705_v29, %v1704_v42  ;;  %v1693_v22 = vadd.f32 %v5265_v31, %v1692_v28  ;;  %2256 = vmatpush.msrb.mxu2 %v5127_v44  ;;  %v1701_v43 = vor.u32 1.1754944e-38, %v1700_v59  ;;  %vm1699_vm15 = vcmp.eq.f32.partialorder %v1698_v1, 8.507059e+37  ;;  %2279 = vmatpush.msrb.mxu3 %v5154_v57  ;;  %v6561_v28 = vld [vmem:[#allocation39_spill] sm:$0xff]  ;;  %v6564_v59 = vld [vmem:[#allocation45_spill] sm:$0xff] }
 0x5c4   :  { %2220 = vmatpush.msrb.mxu0 %v5159_v10  ;;  %2240 = vmatpush.msrb.mxu1 %v5161_v12  ;;  %v6560_v42 = vmov 0.0   ;;  %v6565_v1 = vld [vmem:[#allocation43_spill] sm:$0xff] }
 0x5c5   :  { %3501 = vtanh.f32 %v1706_v7  ;;  %1712 = vst [vmem:[#allocation16] sm:$0xff] %v1706_v7  ;;  %v1697_v29 = vsel %vm1696_vm14, %v5265_v31, %v1693_v22  ;;  %2257 = vmatpush.msrb.mxu2 %v5156_v25  ;;  %2280 = vmatpush.msrb.mxu3 %v5166_v14  ;;  %v6552_v31 = vld [vmem:[#allocation35_spill] sm:$0xff]  ;;  %v6562_v7 = vld [vmem:[#allocation40_spill] sm:$0xff]  ;;  %v6563_v22 = vld [vmem:[#allocation46_spill] sm:$0xff] }
 0x5c6   :  { %v1702_v62 = vsel %vm1699_vm15, %v1701_v43, %v1697_v29  ;;  %2221 = vmatpush.msrb.mxu0 %v5171_v15  ;;  %2241 = vmatpush.msrb.mxu1 %v6551_v11  ;;  %v6566_v29 = vld [vmem:[#allocation44_spill] sm:$0xff]  ;;  %v6567_v43 = vld [vmem:[#allocation26_spill] sm:$0xff] }
 0x5c7   :  { %2258 = vmatpush.msrb.mxu2 %v5168_v52  ;;  %2281 = vmatpush.msrb.mxu3 %v6553_v26 }
 0x5c8   :  { %2222 = vmatpush.msrb.mxu0 %v6554_v19  ;;  %2242 = vmatpush.msrb.mxu1 %v6555_v30 }
 0x5c9   :  { %2259 = vmatpush.msrb.mxu2 %v5176_v16  ;;  %2282 = vmatpush.msrb.mxu3 %v6557_v33 }
 0x5ca   :  { %2223 = vmatpush.msrb.mxu0 %v6558_v37  ;;  %2243 = vmatpush.msrb.mxu1 %v6559_v55 }
 0x5cb   :  { %v3502_v54 = vpop.eup %3501  ;;  %2260 = vmatpush.msrb.mxu2 %v5182_v63  ;;  %2283 = vmatpush.msrb.mxu3 %v6561_v28 }
 0x5cc   :  { %v1708_v9 = vmul.f32 %v3502_v54, %v1702_v62  ;;  %2224 = vmatpush.msrb.mxu0 %v5216_v48  ;;  %2244 = vmatpush.msrb.mxu1 %v6562_v7  ;;  %v6568_v54 = vld [vmem:[#allocation24_spill] sm:$0xff]  ;;  %v6569_v62 = vld [vmem:[#allocation27_spill] sm:$0xff] }
 0x5cd   :  { %2261 = vmatpush.msrb.mxu2 %v6552_v31  ;;  %2284 = vmatpush.msrb.mxu3 %v6564_v59 }
 0x5ce   :  { %1832 = vmatmul.f32.gmra.mxu0 %v1708_v9  ;;  %1711 = vst [vmem:[#allocation15] sm:$0xff] %v1708_v9  ;;  %1873 = vmatmul.f32.gmra.mxu1 %v1708_v9 }
 0x5cf   :  { %1914 = vmatmul.f32.gmra.mxu2 %v1708_v9  ;;  %1955 = vmatmul.f32.gmra.mxu3 %v1708_v9  ;;  %v6570_v9 = vld [vmem:[#allocation29_spill] sm:$0xff] }
 0x5d0   :  { %2262 = vmatpush.msrb.mxu2 %v6556_v36  ;;  %2225 = vmatpush.msrb.mxu0 %v6565_v1 }
 0x5d1   :  { %2245 = vmatpush.msrb.mxu1 %v6566_v29  ;;  %2285 = vmatpush.msrb.mxu3 %v5240_v41 }
 0x5d2   :  { %2263 = vmatpush.msrb.mxu2 %v5222_v6 }
 0x5d4   :  { %2264 = vmatpush.msrb.mxu2 %v6563_v22 }
 0x5d6   :  { %2075 = vmatmul.f32.vlgmr.msra.gmra.mxu0 %v6560_v42  ;;  %2095 = vmatmul.f32.vlgmr.msra.gmra.mxu1 %v6560_v42 }
 0x5d7   :  { %2115 = vmatmul.f32.vlgmr.msra.gmra.mxu2 %v6560_v42  ;;  %2135 = vmatmul.f32.vlgmr.msra.gmra.mxu3 %v6560_v42  ;;  %v6571_v42 = vld [vmem:[#allocation28_spill] sm:$0xff] }
 0x5d8   :  { %2265 = vmatpush.msrb.mxu2 %v5248_v51  ;;  %2361 = vmatpush.msra.mxu0 %v5031_v5 }
 0x5d9   :  { %2381 = vmatpush.msra.mxu1 %v5033_v3  ;;  %2421 = vmatpush.msra.mxu3 %v6567_v43 }
 0x5da   :  { %2401 = vmatpush.msra.mxu2 %v5067_v18  ;;  %2362 = vmatpush.msra.mxu0 %v5035_v24 }
 0x5db   :  { %2382 = vmatpush.msra.mxu1 %v6568_v54  ;;  %2422 = vmatpush.msra.mxu3 %v5048_v4 }
 0x5dc   :  { %2402 = vmatpush.msra.mxu2 %v5070_v8  ;;  %2363 = vmatpush.msra.mxu0 %v6569_v62 }
 0x5dd   :  { %2383 = vmatpush.msra.mxu1 %v6570_v9  ;;  %2423 = vmatpush.msra.mxu3 %v6571_v42 }
 0x5de   :  { %2403 = vmatpush.msra.mxu2 %v5088_v17  ;;  %2364 = vmatpush.msra.mxu0 %v5075_v23 }
 0x5df   :  { %2384 = vmatpush.msra.mxu1 %v5077_v32  ;;  %2424 = vmatpush.msra.mxu3 %v5086_v2 }
 0x5e0   :  { %2404 = vmatpush.msra.mxu2 %v5092_v27  ;;  %2365 = vmatpush.msra.mxu0 %v5080_v56 }
 0x5e1   :  { %2385 = vmatpush.msra.mxu1 %v5084_v20  ;;  %2425 = vmatpush.msra.mxu3 %v5096_v61 }
 0x5e2   :  { %2405 = vmatpush.msra.mxu2 %v5099_v39  ;;  %2366 = vmatpush.msra.mxu0 %v5106_v34 }
 0x5e3   :  { %2386 = vmatpush.msra.mxu1 %v5108_v35  ;;  %2426 = vmatpush.msra.mxu3 %v5110_v60 }
 0x5e4   :  { %2406 = vmatpush.msra.mxu2 %v5115_v53  ;;  %2367 = vmatpush.msra.mxu0 %v5117_v46 }
 0x5e5   :  { %2387 = vmatpush.msra.mxu1 %v5119_v38  ;;  %2427 = vmatpush.msra.mxu3 %v5122_v40 }
 0x5e6   :  { %2407 = vmatpush.msra.mxu2 %v5127_v44  ;;  %2368 = vmatpush.msra.mxu0 %v5129_v45 }
 0x5e7   :  { %2388 = vmatpush.msra.mxu1 %v5131_v47  ;;  %2428 = vmatpush.msra.mxu3 %v5141_v50 }
 0x5e8   :  { %2408 = vmatpush.msra.mxu2 %v5156_v25  ;;  %2369 = vmatpush.msra.mxu0 %v5134_v58 }
 0x5e9   :  { %2389 = vmatpush.msra.mxu1 %v5139_v0  ;;  %2429 = vmatpush.msra.mxu3 %v5150_v21 }
 0x5ea   :  { %2409 = vmatpush.msra.mxu2 %v5168_v52  ;;  %2370 = vmatpush.msra.mxu0 %v5146_v49 }
 0x5eb   :  { %2390 = vmatpush.msra.mxu1 %v5148_v13  ;;  %2430 = vmatpush.msra.mxu3 %v5154_v57 }
 0x5ec   :  { %2410 = vmatpush.msra.mxu2 %v5176_v16  ;;  %2371 = vmatpush.msra.mxu0 %v5159_v10 }
 0x5ed   :  { %2391 = vmatpush.msra.mxu1 %v5161_v12  ;;  %2431 = vmatpush.msra.mxu3 %v5166_v14 }
 0x5ee   :  { %2411 = vmatpush.msra.mxu2 %v5182_v63  ;;  %2372 = vmatpush.msra.mxu0 %v5171_v15 }
 0x5ef   :  { %2392 = vmatpush.msra.mxu1 %v6551_v11  ;;  %2432 = vmatpush.msra.mxu3 %v6553_v26 }
 0x5f0   :  { %2412 = vmatpush.msra.mxu2 %v6552_v31  ;;  %2373 = vmatpush.msra.mxu0 %v6554_v19 }
 0x5f1   :  { %2393 = vmatpush.msra.mxu1 %v6555_v30  ;;  %2433 = vmatpush.msra.mxu3 %v6557_v33 }
 0x5f2   :  { %2413 = vmatpush.msra.mxu2 %v6556_v36  ;;  %2374 = vmatpush.msra.mxu0 %v6558_v37  ;;  %v1935_v37 = vpop.f32.mrf.mxu3 }
 0x5f3   :  { %2394 = vmatpush.msra.mxu1 %v6559_v55  ;;  %2434 = vmatpush.msra.mxu3 %v6561_v28  ;;  %v1812_v55 = vpop.f32.mrf.mxu0 }
 0x5f4   :  { %2414 = vmatpush.msra.mxu2 %v5222_v6  ;;  %2375 = vmatpush.msra.mxu0 %v5216_v48  ;;  %v1853_v6 = vpop.f32.mrf.mxu1 }
 0x5f5   :  { %2395 = vmatpush.msra.mxu1 %v6562_v7  ;;  %2435 = vmatpush.msra.mxu3 %v6564_v59  ;;  %v1894_v7 = vpop.f32.mrf.mxu2 }
 0x5f6   :  { %2415 = vmatpush.msra.mxu2 %v6563_v22  ;;  %2376 = vmatpush.msra.mxu0 %v6565_v1 }
 0x5f7   :  { %2396 = vmatpush.msra.mxu1 %v6566_v29  ;;  %2436 = vmatpush.msra.mxu3 %v5240_v41 }
 0x5f8   :  { %2416 = vmatpush.msra.mxu2 %v5248_v51 }
 0x5fa   :  { %v5410_v33 = vpop.f32.mrf.mxu3 }
 0x5fb   :  { %v5406_v28 = vpop.f32.mrf.mxu0  ;;  %6574 = vst [vmem:[#allocation51_spill] sm:$0xff] %v5410_v33 }
 0x5fc   :  { %6572 = vst [vmem:[#allocation49_spill] sm:$0xff] %v5406_v28  ;;  %v5408_v48 = vpop.f32.mrf.mxu1 }
 0x5fd   :  { %6573 = vst [vmem:[#allocation50_spill] sm:$0xff] %v5408_v48  ;;  %v5416_v1 = vpop.f32.mrf.mxu2 }
 0x5fe   :  { %6577 = vst [vmem:[#allocation54_spill] sm:$0xff] %v5416_v1 }
 0x602   :  { %v5418_v29 = vpop.f32.mrf.mxu3 }
 0x603   :  { %v5412_v22 = vpop.f32.mrf.mxu0  ;;  %6578 = vst [vmem:[#allocation55_spill] sm:$0xff] %v5418_v29 }
 0x604   :  { %6575 = vst [vmem:[#allocation53_spill] sm:$0xff] %v5412_v22  ;;  %v5414_v59 = vpop.f32.mrf.mxu1 }
 0x605   :  { %6576 = vst [vmem:[#allocation52_spill] sm:$0xff] %v5414_v59  ;;  %v5424_v36 = vpop.f32.mrf.mxu2 }
 0x606   :  { %6581 = vst [vmem:[#allocation65_spill] sm:$0xff] %v5424_v36 }
 0x60a   :  { %v5426_v28 = vpop.f32.mrf.mxu3 }
 0x60b   :  { %v5420_v51 = vpop.f32.mrf.mxu0  ;;  %6582 = vst [vmem:[#allocation76_spill] sm:$0xff] %v5426_v28 }
 0x60c   :  { %6579 = vst [vmem:[#allocation57_spill] sm:$0xff] %v5420_v51  ;;  %v5422_v41 = vpop.f32.mrf.mxu1 }
 0x60d   :  { %6580 = vst [vmem:[#allocation75_spill] sm:$0xff] %v5422_v41  ;;  %v5432_v33 = vpop.f32.mrf.mxu2 }
 0x60e   :  { %6585 = vst [vmem:[#allocation68_spill] sm:$0xff] %v5432_v33 }
 0x612   :  { %v5434_v22 = vpop.f32.mrf.mxu3 }
 0x613   :  { %v5428_v48 = vpop.f32.mrf.mxu0  ;;  %6586 = vst [vmem:[#allocation81_spill] sm:$0xff] %v5434_v22  ;;  %v1785_v22 = vld [vmem:[%s6027_s6] sm:$0xf]  ;;  %s3974_s6 = smov [#allocation16]  }
 0x614   :  { %6583 = vst [vmem:[#allocation66_spill] sm:$0xff] %v5428_v48  ;;  %v5430_v30 = vpop.f32.mrf.mxu1  ;;  %v5469_v31 = vperm.slane %v1785_v22, 3  ;;  %s3284_s13 = sshll.u32 %s3974_s6, 4  ;;  %s3285_s13 = int_to_ptr.vmem [resolvable:$true] %s3284_s13 }
 0x615   :  { %6584 = vst [vmem:[#allocation79_spill] sm:$0xff] %v5430_v30  ;;  %v5440_v29 = vpop.f32.mrf.mxu2 }
 0x616   :  { %6589 = vst [vmem:[#allocation70_spill] sm:$0xff] %v5440_v29  ;;  %v5461_v29 = vperm.slane %v1785_v22, 1  ;;  %v1936_v11 = vadd.f32 %v1935_v37, %v5469_v31 }
 0x617   :  { %6601 = vst [vmem:[#allocation24_spill] sm:$0xff] %v5469_v31 }
 0x618   :  { %6598 = vst [vmem:[#allocation78_spill] sm:$0xff] %v5461_v29 }
 0x61a   :  { %v5442_v51 = vpop.f32.mrf.mxu3 }
 0x61b   :  { %v5436_v59 = vpop.f32.mrf.mxu0  ;;  %6590 = vst [vmem:[#allocation72_spill] sm:$0xff] %v5442_v51 }
 0x61c   :  { %6587 = vst [vmem:[#allocation71_spill] sm:$0xff] %v5436_v59  ;;  %v5438_v1 = vpop.f32.mrf.mxu1 }
 0x61d   :  { %6588 = vst [vmem:[#allocation69_spill] sm:$0xff] %v5438_v1  ;;  %v5448_v28 = vpop.f32.mrf.mxu2  ;;  %v5459_v1 = vperm.slane %v1785_v22, 0 }
 0x61e   :  { %6593 = vst [vmem:[#allocation25_spill] sm:$0xff] %v5448_v28 }
 0x61f   :  { %6597 = vst [vmem:[#allocation74_spill] sm:$0xff] %v5459_v1 }
 0x622   :  { %v5450_v48 = vpop.f32.mrf.mxu3 }
 0x623   :  { %v5444_v41 = vpop.f32.mrf.mxu0  ;;  %6594 = vst [vmem:[#allocation30_spill] sm:$0xff] %v5450_v48 }
 0x624   :  { %6591 = vst [vmem:[#allocation77_spill] sm:$0xff] %v5444_v41  ;;  %v5446_v36 = vpop.f32.mrf.mxu1  ;;  %v1813_v41 = vadd.f32 %v1812_v55, %v5459_v1 }
 0x625   :  { %6592 = vst [vmem:[#allocation82_spill] sm:$0xff] %v5446_v36  ;;  %v1854_v36 = vadd.f32 %v1853_v6, %v5461_v29  ;;  %v5465_v51 = vpop.f32.mrf.mxu2 }
 0x626   :  { %6599 = vst [vmem:[#allocation80_spill] sm:$0xff] %v5465_v51 }
 0x64b   :  { %v5455_v30 = vpop.f32.mrf.mxu0  ;;  %v5457_v59 = vpop.f32.mrf.mxu1 }
 0x64c   :  { %6595 = vst [vmem:[#allocation56_spill] sm:$0xff] %v5455_v30 }
 0x64d   :  { %6596 = vst [vmem:[#allocation73_spill] sm:$0xff] %v5457_v59 }
 0x652   :  { %v5467_v28 = vpop.f32.mrf.mxu3  ;;  %v5472_v15 = vpop.f32.mrf.mxu2 }
 0x653   :  { %6600 = vst [vmem:[#allocation26_spill] sm:$0xff] %v5467_v28  ;;  %v2076_v48 = vpop.f32.mrf.mxu0  ;;  %v2096_v33 = vpop.f32.mrf.mxu1 }
 0x654   :  { %v2139_v19 = vadd.f32 %v2076_v48, %v1813_v41  ;;  %v2140_v26 = vadd.f32 %v2096_v33, %v1854_v36  ;;  %6602 = vst [vmem:[#allocation27_spill] sm:$0xff] %v5472_v15  ;;  %v5474_v41 = vperm.slane %v1785_v22, 2 }
 0x656   :  { %v3338_v30 = vmul.f32 -1.442695, %v2139_v19  ;;  %v3339_v59 = vmul.f32 -1.442695, %v2140_v26  ;;  %6603 = vst [vmem:[#allocation29_spill] sm:$0xff] %v5474_v41  ;;  %v1895_v19 = vadd.f32 %v1894_v7, %v5474_v41 }
 0x658   :  { %3503 = vpow2.f32 %v3338_v30 }
 0x659   :  { %3505 = vpow2.f32 %v3339_v59 }
 0x65a   :  { %v2136_v55 = vpop.f32.mrf.mxu3  ;;  %v2116_v48 = vpop.f32.mrf.mxu2 }
 0x65b   :  { %v2142_v6 = vadd.f32 %v2136_v55, %v1936_v11  ;;  %v2141_v33 = vadd.f32 %v2116_v48, %v1895_v19 }
 0x65d   :  { %v3340_v29 = vmul.f32 -1.442695, %v2142_v6 }
 0x65e   :  { %v3504_v51 = vpop.eup %3503 }
 0x65f   :  { %v3506_v1 = vpop.eup %3505  ;;  %v2146_v28 = vadd.f32 1.0, %v3504_v51  ;;  %3507 = vpow2.f32 %v3340_v29 }
 0x660   :  { %v2165_v14 = vadd.f32 1.0, %v3506_v1 }
 0x661   :  { %3509 = vrcp.f32 %v2146_v28  ;;  %v2158_v51 = vand.u32 2147483648, %v2146_v28  ;;  %v2156_v29 = vand.u32 2147483647, %v2146_v28  ;;  %vm2152_vm2 = vweird.f32 %v2146_v28 }
 0x662   :  { %3511 = vrcp.f32 %v2165_v14  ;;  %v2177_v1 = vand.u32 2147483648, %v2165_v14  ;;  %v2175_v31 = vand.u32 2147483647, %v2165_v14  ;;  %vm2171_vm3 = vweird.f32 %v2165_v14 }
 0x663   :  { %v2159_v48 = vor.u32 1.1754944e-38, %v2158_v51  ;;  %vm2157_vm5 = vcmp.eq.f32.partialorder %v2156_v29, 8.507059e+37 }
 0x664   :  { %v2178_v41 = vor.u32 1.1754944e-38, %v2177_v1  ;;  %vm2176_vm7 = vcmp.eq.f32.partialorder %v2175_v31, 8.507059e+37 }
 0x665   :  { %v3508_v26 = vpop.eup %3507 }
 0x666   :  { %v2185_v30 = vadd.f32 1.0, %v3508_v26 }
 0x667   :  { %v3510_v36 = vpop.eup %3509 }
 0x668   :  { %v3512_v37 = vpop.eup %3511  ;;  %v2148_v59 = vmul.f32 %v3510_v36, %v2146_v28  ;;  %3513 = vrcp.f32 %v2185_v30  ;;  %vm2153_vm0 = vweird.f32 %v3510_v36  ;;  %vm2191_vm9 = vweird.f32 %v2185_v30 }
 0x669   :  { %v2167_v11 = vmul.f32 %v3512_v37, %v2165_v14  ;;  %3515 = vtanh.f32 %v2141_v33  ;;  %vm2172_vm1 = vweird.f32 %v3512_v37  ;;  %vm2154_vm4 = vmor %vm2152_vm2, %vm2153_vm0  ;;  %v2195_v28 = vand.u32 2147483647, %v2185_v30 }
 0x66a   :  { %v2149_v55 = vsub.f32 1.0, %v2148_v59  ;;  %vm2173_vm6 = vmor %vm2171_vm3, %vm2172_vm1 }
 0x66b   :  { %v2168_v6 = vsub.f32 1.0, %v2167_v11  ;;  %vm2196_vm11 = vcmp.eq.f32.partialorder %v2195_v28, 8.507059e+37 }
 0x66c   :  { %v2150_v22 = vmul.f32 %v3510_v36, %v2149_v55 }
 0x66d   :  { %v2169_v15 = vmul.f32 %v3512_v37, %v2168_v6 }
 0x66e   :  { %v3514_v63 = vpop.eup %3513  ;;  %v2151_v7 = vadd.f32 %v3510_v36, %v2150_v22 }
 0x66f   :  { %v2170_v26 = vadd.f32 %v3512_v37, %v2169_v15  ;;  %v2187_v19 = vmul.f32 %v3514_v63, %v2185_v30  ;;  %v3516_v33 = vpop.eup %3515  ;;  %vm2192_vm8 = vweird.f32 %v3514_v63  ;;  %v2197_v15 = vand.u32 2147483648, %v2185_v30 }
 0x670   :  { %v2155_v59 = vsel %vm2154_vm4, %v3510_v36, %v2151_v7  ;;  %vm2193_vm10 = vmor %vm2191_vm9, %vm2192_vm8 }
 0x671   :  { %v2160_v11 = vsel %vm2157_vm5, %v2159_v48, %v2155_v59  ;;  %v2174_v55 = vsel %vm2173_vm6, %v3512_v37, %v2170_v26  ;;  %v2188_v12 = vsub.f32 1.0, %v2187_v19  ;;  %v2198_v51 = vor.u32 1.1754944e-38, %v2197_v15  ;;  %v6636_v59 = vld [vmem:[#allocation29_spill] sm:$0xff] }
 0x672   :  { %v2179_v6 = vsel %vm2176_vm7, %v2178_v41, %v2174_v55  ;;  %v2202_v10 = vmul.f32 %v3516_v33, %v2160_v11  ;;  %v6637_v33 = vld [vmem:[#allocation54_spill] sm:$0xff] }
 0x673   :  { %v2201_v57 = vmul.f32 0.0, %v2179_v6  ;;  %v2189_v16 = vmul.f32 %v3514_v63, %v2188_v12  ;;  %v1898_v11 = vadd.f32 %v6637_v33, %v6636_v59  ;;  %v5616_v33 = vld [vmem:[#allocation13 + $0x140] sm:$0xff] }
 0x675   :  { %v5477_v22 = vadd.f32 %v2202_v10, %v2201_v57  ;;  %v2190_v14 = vadd.f32 %v3514_v63, %v2189_v16 }
 0x677   :  { %3517 = vtanh.f32 %v5477_v22  ;;  %v2194_v36 = vsel %vm2193_vm10, %v3514_v63, %v2190_v14 }
 0x678   :  { %v2199_v31 = vsel %vm2196_vm11, %v2198_v51, %v2194_v36 }
 0x67d   :  { %v3518_v37 = vpop.eup %3517 }
 0x67e   :  { %v2205_v1 = vmul.f32 %v3518_v37, %v2199_v31 }
 0x680   :  { %2226 = vmatmul.f32.vlgmr.msrb.gmra.mxu0 %v2205_v1  ;;  %2246 = vmatmul.f32.vlgmr.msrb.gmra.mxu1 %v2205_v1 }
 0x681   :  { %2266 = vmatmul.f32.vlgmr.msrb.gmra.mxu2 %v2205_v1  ;;  %2286 = vmatmul.f32.vlgmr.msrb.gmra.mxu3 %v2205_v1 }
 0x682   :  { %2512 = vmatpush.msrb.mxu0 %v5031_v5  ;;  %2532 = vmatpush.msrb.mxu1 %v5033_v3  ;;  %v6604_v5 = vld [vmem:[#allocation64_spill] sm:$0xff]  ;;  %v6605_v3 = vld [vmem:[#allocation58_spill] sm:$0xff] }
 0x683   :  { %2552 = vmatpush.msrb.mxu2 %v5067_v18  ;;  %2572 = vmatpush.msrb.mxu3 %v6567_v43  ;;  %v6608_v18 = vld [vmem:[#allocation31_spill] sm:$0xff]  ;;  %v6634_v43 = vld [vmem:[#allocation24_spill] sm:$0xff] }
 0x684   :  { %2513 = vmatpush.msrb.mxu0 %v5035_v24  ;;  %2533 = vmatpush.msrb.mxu1 %v6568_v54  ;;  %v6606_v24 = vld [vmem:[#allocation59_spill] sm:$0xff] }
 0x685   :  { %2553 = vmatpush.msrb.mxu2 %v5070_v8  ;;  %2573 = vmatpush.msrb.mxu3 %v5048_v4  ;;  %v6607_v4 = vld [vmem:[#allocation61_spill] sm:$0xff]  ;;  %v6609_v8 = vld [vmem:[#allocation60_spill] sm:$0xff]  ;;  %v6635_v54 = vld [vmem:[#allocation51_spill] sm:$0xff] }
 0x686   :  { %2514 = vmatpush.msrb.mxu0 %v6569_v62  ;;  %2534 = vmatpush.msrb.mxu1 %v6570_v9  ;;  %v1939_v62 = vadd.f32 %v6635_v54, %v6634_v43  ;;  %v5583_v54 = vld [vmem:[#allocation13 + $0x1a8] sm:$0xff] }
 0x687   :  { %2554 = vmatpush.msrb.mxu2 %v5088_v17  ;;  %2574 = vmatpush.msrb.mxu3 %v6571_v42  ;;  %v6615_v17 = vld [vmem:[#allocation32_spill] sm:$0xff] }
 0x688   :  { %2515 = vmatpush.msrb.mxu0 %v5075_v23  ;;  %2535 = vmatpush.msrb.mxu1 %v5077_v32  ;;  %v6610_v23 = vld [vmem:[#allocation62_spill] sm:$0xff]  ;;  %v6611_v32 = vld [vmem:[#allocation63_spill] sm:$0xff] }
 0x689   :  { %2555 = vmatpush.msrb.mxu2 %v5092_v27  ;;  %2575 = vmatpush.msrb.mxu3 %v5086_v2  ;;  %v6614_v2 = vld [vmem:[#allocation33_spill] sm:$0xff]  ;;  %v6616_v27 = vld [vmem:[#allocation38_spill] sm:$0xff] }
 0x68a   :  { %2516 = vmatpush.msrb.mxu0 %v5080_v56  ;;  %2536 = vmatpush.msrb.mxu1 %v5084_v20  ;;  %v6612_v56 = vld [vmem:[#allocation35_spill] sm:$0xff] }
 0x68b   :  { %2556 = vmatpush.msrb.mxu2 %v5099_v39  ;;  %2576 = vmatpush.msrb.mxu3 %v5096_v61  ;;  %v6613_v20 = vld [vmem:[#allocation67_spill] sm:$0xff]  ;;  %v6617_v61 = vld [vmem:[#allocation34_spill] sm:$0xff]  ;;  %v6618_v39 = vld [vmem:[#allocation37_spill] sm:$0xff] }
 0x68c   :  { %2517 = vmatpush.msrb.mxu0 %v5106_v34  ;;  %2537 = vmatpush.msrb.mxu1 %v5108_v35  ;;  %v6619_v34 = vld [vmem:[#allocation36_spill] sm:$0xff]  ;;  %v6620_v35 = vld [vmem:[#allocation42_spill] sm:$0xff] }
 0x68d   :  { %2557 = vmatpush.msrb.mxu2 %v5115_v53  ;;  %2577 = vmatpush.msrb.mxu3 %v5110_v60  ;;  %v6621_v60 = vld [vmem:[#allocation39_spill] sm:$0xff]  ;;  %v6622_v53 = vld [vmem:[#allocation41_spill] sm:$0xff] }
 0x68e   :  { %2518 = vmatpush.msrb.mxu0 %v5117_v46  ;;  %2538 = vmatpush.msrb.mxu1 %v5119_v38  ;;  %v6623_v46 = vld [vmem:[#allocation40_spill] sm:$0xff]  ;;  %v6624_v38 = vld [vmem:[#allocation46_spill] sm:$0xff] }
 0x68f   :  { %2558 = vmatpush.msrb.mxu2 %v5127_v44  ;;  %2578 = vmatpush.msrb.mxu3 %v5122_v40  ;;  %v6625_v40 = vld [vmem:[#allocation45_spill] sm:$0xff]  ;;  %v6626_v44 = vld [vmem:[#allocation43_spill] sm:$0xff] }
 0x690   :  { %2519 = vmatpush.msrb.mxu0 %v5129_v45  ;;  %2539 = vmatpush.msrb.mxu1 %v5131_v47  ;;  %v6627_v45 = vld [vmem:[#allocation44_spill] sm:$0xff] }
 0x691   :  { %2559 = vmatpush.msrb.mxu2 %v5156_v25  ;;  %2579 = vmatpush.msrb.mxu3 %v5141_v50  ;;  %v6628_v47 = vld [vmem:[#allocation48_spill] sm:$0xff]  ;;  %v6631_v50 = vld [vmem:[#allocation49_spill] sm:$0xff] }
 0x692   :  { %2520 = vmatpush.msrb.mxu0 %v5134_v58  ;;  %2540 = vmatpush.msrb.mxu1 %v5139_v0  ;;  %v6629_v58 = vld [vmem:[#allocation47_spill] sm:$0xff]  ;;  %v6630_v0 = vld [vmem:[#allocation74_spill] sm:$0xff] }
 0x693   :  { %2560 = vmatpush.msrb.mxu2 %v5168_v52  ;;  %2580 = vmatpush.msrb.mxu3 %v5150_v21  ;;  %v6633_v21 = vld [vmem:[#allocation50_spill] sm:$0xff] }
 0x694   :  { %2521 = vmatpush.msrb.mxu0 %v5146_v49  ;;  %2541 = vmatpush.msrb.mxu1 %v5148_v13  ;;  %v1816_v49 = vadd.f32 %v6631_v50, %v6630_v0  ;;  %v6632_v13 = vld [vmem:[#allocation78_spill] sm:$0xff] }
 0x695   :  { %2561 = vmatpush.msrb.mxu2 %v6604_v5  ;;  %2581 = vmatpush.msrb.mxu3 %v6605_v3  ;;  %v1857_v57 = vadd.f32 %v6633_v21, %v6632_v13  ;;  %v5559_v21 = vld [vmem:[#allocation13 + $0x1e8] sm:$0xff] }
 0x696   :  { %2522 = vmatpush.msrb.mxu0 %v6606_v24  ;;  %2542 = vmatpush.msrb.mxu1 %v6607_v4 }
 0x697   :  { %2562 = vmatpush.msrb.mxu2 %v6608_v18  ;;  %2582 = vmatpush.msrb.mxu3 %v6609_v8 }
 0x698   :  { %2523 = vmatpush.msrb.mxu0 %v6610_v23  ;;  %2543 = vmatpush.msrb.mxu1 %v6611_v32 }
 0x699   :  { %2563 = vmatpush.msrb.mxu2 %v6612_v56  ;;  %2583 = vmatpush.msrb.mxu3 %v6613_v20 }
 0x69a   :  { %2524 = vmatpush.msrb.mxu0 %v6614_v2  ;;  %2544 = vmatpush.msrb.mxu1 %v6615_v17 }
 0x69b   :  { %2564 = vmatpush.msrb.mxu2 %v6616_v27  ;;  %2584 = vmatpush.msrb.mxu3 %v6617_v61 }
 0x69c   :  { %2525 = vmatpush.msrb.mxu0 %v6618_v39  ;;  %2545 = vmatpush.msrb.mxu1 %v6619_v34 }
 0x69d   :  { %2565 = vmatpush.msrb.mxu2 %v6620_v35  ;;  %2585 = vmatpush.msrb.mxu3 %v6621_v60 }
 0x69e   :  { %2526 = vmatpush.msrb.mxu0 %v6622_v53  ;;  %2546 = vmatpush.msrb.mxu1 %v6623_v46 }
 0x69f   :  { %2566 = vmatpush.msrb.mxu2 %v6624_v38  ;;  %2586 = vmatpush.msrb.mxu3 %v6625_v40 }
 0x6a0   :  { %2527 = vmatpush.msrb.mxu0 %v6626_v44  ;;  %2547 = vmatpush.msrb.mxu1 %v6627_v45 }
 0x6a1   :  { %2567 = vmatpush.msrb.mxu2 %v6628_v47  ;;  %2587 = vmatpush.msrb.mxu3 %v6629_v58 }
 0x6fd   :  { %v2227_v25 = vpop.f32.mrf.mxu0  ;;  %v2247_v10 = vpop.f32.mrf.mxu1 }
 0x6fe   :  { %v2290_v12 = vadd.f32 %v2227_v25, %v1816_v49  ;;  %v2291_v52 = vadd.f32 %v2247_v10, %v1857_v57  ;;  %v5562_v57 = vld [vmem:[#allocation13 + $0x1f0] sm:$0xff]  ;;  %v5565_v25 = vld [vmem:[#allocation13 + $0x1f8] sm:$0xff]  ;;  %v5568_v10 = vld [vmem:[#allocation13 + $0x1c0] sm:$0xff] }
 0x700   :  { %v3341_v16 = vmul.f32 -1.442695, %v2290_v12  ;;  %v3342_v63 = vmul.f32 -1.442695, %v2291_v52  ;;  %v5571_v12 = vld [vmem:[#allocation13 + $0x1c8] sm:$0xff]  ;;  %v5574_v52 = vld [vmem:[#allocation13 + $0x1d0] sm:$0xff] }
 0x702   :  { %3519 = vpow2.f32 %v3341_v16  ;;  %v5577_v16 = vld [vmem:[#allocation13 + $0x1d8] sm:$0xff] }
 0x703   :  { %3521 = vpow2.f32 %v3342_v63  ;;  %v5580_v63 = vld [vmem:[#allocation13 + $0x1a0] sm:$0xff] }
 0x704   :  { %v2287_v9 = vpop.f32.mrf.mxu3  ;;  %v2267_v26 = vpop.f32.mrf.mxu2 }
 0x705   :  { %v2293_v42 = vadd.f32 %v2287_v9, %v1939_v62  ;;  %v2292_v14 = vadd.f32 %v2267_v26, %v1898_v11  ;;  %v5586_v62 = vld [vmem:[#allocation13 + $0x1b0] sm:$0xff]  ;;  %v5589_v9 = vld [vmem:[#allocation13 + $0x1b8] sm:$0xff]  ;;  %v5619_v11 = vld [vmem:[#allocation13 + $0x148] sm:$0xff] }
 0x706   :  { %v5610_v26 = vld [vmem:[#allocation13 + $0x170] sm:$0xff] }
 0x707   :  { %v3343_v41 = vmul.f32 -1.442695, %v2293_v42  ;;  %v5592_v42 = vld [vmem:[#allocation13 + $0x180] sm:$0xff] }
 0x708   :  { %v3520_v30 = vpop.eup %3519 }
 0x709   :  { %v3522_v29 = vpop.eup %3521  ;;  %v2297_v7 = vadd.f32 1.0, %v3520_v30  ;;  %3523 = vpow2.f32 %v3343_v41  ;;  %v5595_v41 = vld [vmem:[#allocation13 + $0x188] sm:$0xff]  ;;  %v5598_v30 = vld [vmem:[#allocation13 + $0x190] sm:$0xff] }
 0x70a   :  { %v2316_v48 = vadd.f32 1.0, %v3522_v29  ;;  %v5601_v29 = vld [vmem:[#allocation13 + $0x198] sm:$0xff] }
 0x70b   :  { %3525 = vrcp.f32 %v2297_v7  ;;  %v2309_v31 = vand.u32 2147483648, %v2297_v7  ;;  %v2307_v3 = vand.u32 2147483647, %v2297_v7  ;;  %vm2303_vm14 = vweird.f32 %v2297_v7 }
 0x70c   :  { %3527 = vrcp.f32 %v2316_v48  ;;  %v2328_v1 = vand.u32 2147483648, %v2316_v48  ;;  %v2326_v4 = vand.u32 2147483647, %v2316_v48  ;;  %vm2322_vm15 = vweird.f32 %v2316_v48 }
 0x70d   :  { %v2310_v23 = vor.u32 1.1754944e-38, %v2309_v31  ;;  %vm2308_vm2 = vcmp.eq.f32.partialorder %v2307_v3, 8.507059e+37  ;;  %v5646_v31 = vld [vmem:[#allocation13 + $0x110] sm:$0xff]  ;;  %v5655_v3 = vld [vmem:[#allocation13 + $0xe8] sm:$0xff] }
 0x70e   :  { %v2329_v20 = vor.u32 1.1754944e-38, %v2328_v1  ;;  %vm2327_vm3 = vcmp.eq.f32.partialorder %v2326_v4, 8.507059e+37  ;;  %v5649_v1 = vld [vmem:[#allocation13 + $0x118] sm:$0xff] }
 0x70f   :  { %v3524_v19 = vpop.eup %3523  ;;  %v5661_v4 = vld [vmem:[#allocation13 + $0xf8] sm:$0xff] }
 0x710   :  { %v2336_v55 = vadd.f32 1.0, %v3524_v19  ;;  %v5613_v19 = vld [vmem:[#allocation13 + $0x178] sm:$0xff] }
 0x711   :  { %v3526_v6 = vpop.eup %3525 }
 0x712   :  { %v3528_v15 = vpop.eup %3527  ;;  %v2299_v28 = vmul.f32 %v3526_v6, %v2297_v7  ;;  %3529 = vrcp.f32 %v2336_v55  ;;  %vm2304_vm12 = vweird.f32 %v3526_v6  ;;  %v2348_v40 = vand.u32 2147483648, %v2336_v55  ;;  %v5604_v7 = vld [vmem:[#allocation13 + $0x160] sm:$0xff] }
 0x713   :  { %v2318_v36 = vmul.f32 %v3528_v15, %v2316_v48  ;;  %3531 = vtanh.f32 %v2292_v14  ;;  %vm2323_vm13 = vweird.f32 %v3528_v15  ;;  %vm2305_vm0 = vmor %vm2303_vm14, %vm2304_vm12  ;;  %vm2342_vm5 = vweird.f32 %v2336_v55  ;;  %v5607_v48 = vld [vmem:[#allocation13 + $0x168] sm:$0xff]  ;;  %v5628_v14 = vld [vmem:[#allocation13 + $0x120] sm:$0xff] }
 0x714   :  { %v2300_v51 = vsub.f32 1.0, %v2299_v28  ;;  %vm2324_vm1 = vmor %vm2322_vm15, %vm2323_vm13  ;;  %v2346_v44 = vand.u32 2147483647, %v2336_v55  ;;  %v2349_v47 = vor.u32 1.1754944e-38, %v2348_v40  ;;  %v5634_v28 = vld [vmem:[#allocation13 + $0x130] sm:$0xff]  ;;  %v5712_v40 = vld [vmem:[#allocation13 + $0x40] sm:$0xff] }
 0x715   :  { %v2319_v37 = vsub.f32 1.0, %v2318_v36  ;;  %v5637_v36 = vld [vmem:[#allocation13 + $0x138] sm:$0xff]  ;;  %6652 = vst [vmem:[#allocation34_spill] sm:$0xff] %v5712_v40 }
 0x716   :  { %v2301_v5 = vmul.f32 %v3526_v6, %v2300_v51  ;;  %vm2347_vm7 = vcmp.eq.f32.partialorder %v2346_v44, 8.507059e+37  ;;  %v5640_v51 = vld [vmem:[#allocation13 + $0x100] sm:$0xff]  ;;  %v5715_v44 = vld [vmem:[#allocation13 + $0x48] sm:$0xff] }
 0x717   :  { %v2320_v24 = vmul.f32 %v3528_v15, %v2319_v37  ;;  %v5643_v37 = vld [vmem:[#allocation13 + $0x108] sm:$0xff]  ;;  %6653 = vst [vmem:[#allocation37_spill] sm:$0xff] %v5715_v44 }
 0x718   :  { %v3530_v18 = vpop.eup %3529  ;;  %v2302_v8 = vadd.f32 %v3526_v6, %v2301_v5  ;;  %v5652_v5 = vld [vmem:[#allocation13 + $0xe0] sm:$0xff] }
 0x719   :  { %v2321_v32 = vadd.f32 %v3528_v15, %v2320_v24  ;;  %v2338_v56 = vmul.f32 %v3530_v18, %v2336_v55  ;;  %v3532_v17 = vpop.eup %3531  ;;  %vm2343_vm4 = vweird.f32 %v3530_v18  ;;  %v5622_v55 = vld [vmem:[#allocation13 + $0x150] sm:$0xff] }
 0x71a   :  { %v2306_v2 = vsel %vm2305_vm0, %v3526_v6, %v2302_v8  ;;  %vm2344_vm6 = vmor %vm2342_vm5, %vm2343_vm4  ;;  %v5625_v6 = vld [vmem:[#allocation13 + $0x158] sm:$0xff]  ;;  %v5658_v24 = vld [vmem:[#allocation13 + $0xf0] sm:$0xff] }
 0x71b   :  { %v2311_v27 = vsel %vm2308_vm2, %v2310_v23, %v2306_v2  ;;  %v2325_v61 = vsel %vm2324_vm1, %v3528_v15, %v2321_v32  ;;  %v2339_v39 = vsub.f32 1.0, %v2338_v56  ;;  %v5631_v15 = vld [vmem:[#allocation13 + $0x128] sm:$0xff]  ;;  %v5670_v23 = vld [vmem:[#allocation13 + $0xd0] sm:$0xff]  ;;  %v5673_v32 = vld [vmem:[#allocation13 + $0xd8] sm:$0xff] }
 0x71c   :  { %v2330_v34 = vsel %vm2327_vm3, %v2329_v20, %v2325_v61  ;;  %v2353_v35 = vmul.f32 %v3532_v17, %v2311_v27  ;;  %v5667_v8 = vld [vmem:[#allocation13 + $0xc8] sm:$0xff]  ;;  %6638 = vst [vmem:[#allocation28_spill] sm:$0xff] %v5670_v23  ;;  %v5676_v56 = vld [vmem:[#allocation13 + $0xa0] sm:$0xff]  ;;  %v5682_v2 = vld [vmem:[#allocation13 + $0xb0] sm:$0xff] }
 0x71d   :  { %v2352_v60 = vmul.f32 %v2330_v34, %v5477_v22  ;;  %v2340_v53 = vmul.f32 %v3530_v18, %v2339_v39  ;;  %v5556_v22 = vld [vmem:[#allocation13 + $0x1e0] sm:$0xff]  ;;  %6639 = vst [vmem:[#allocation64_spill] sm:$0xff] %v5673_v32  ;;  %v5679_v20 = vld [vmem:[#allocation13 + $0xa8] sm:$0xff]  ;;  %v5685_v17 = vld [vmem:[#allocation13 + $0xb8] sm:$0xff] }
 0x71e   :  { %6640 = vst [vmem:[#allocation58_spill] sm:$0xff] %v5676_v56  ;;  %v5688_v27 = vld [vmem:[#allocation13 + $0x80] sm:$0xff]  ;;  %v5691_v61 = vld [vmem:[#allocation13 + $0x88] sm:$0xff]  ;;  %v5694_v39 = vld [vmem:[#allocation13 + $0x90] sm:$0xff] }
 0x71f   :  { %v5553_v46 = vadd.f32 %v2353_v35, %v2352_v60  ;;  %v2341_v38 = vadd.f32 %v3530_v18, %v2340_v53  ;;  %6641 = vst [vmem:[#allocation59_spill] sm:$0xff] %v5679_v20  ;;  %v5697_v34 = vld [vmem:[#allocation13 + $0x98] sm:$0xff]  ;;  %v5700_v35 = vld [vmem:[#allocation13 + $0x60] sm:$0xff]  ;;  %v5703_v60 = vld [vmem:[#allocation13 + $0x68] sm:$0xff] }
 0x720   :  { %6642 = vst [vmem:[#allocation61_spill] sm:$0xff] %v5682_v2  ;;  %v5706_v53 = vld [vmem:[#allocation13 + $0x70] sm:$0xff] }
 0x721   :  { %3533 = vtanh.f32 %v5553_v46  ;;  %v2345_v45 = vsel %vm2344_vm6, %v3530_v18, %v2341_v38  ;;  %v5664_v18 = vld [vmem:[#allocation13 + $0xc0] sm:$0xff]  ;;  %6643 = vst [vmem:[#allocation31_spill] sm:$0xff] %v5685_v17  ;;  %v5709_v38 = vld [vmem:[#allocation13 + $0x78] sm:$0xff] }
 0x722   :  { %v2350_v50 = vsel %vm2347_vm7, %v2349_v47, %v2345_v45  ;;  %6644 = vst [vmem:[#allocation60_spill] sm:$0xff] %v5688_v27  ;;  %v5718_v45 = vld [vmem:[#allocation13 + $0x50] sm:$0xff]  ;;  %v5721_v47 = vld [vmem:[#allocation13 + $0x58] sm:$0xff] }
 0x723   :  { %6645 = vst [vmem:[#allocation62_spill] sm:$0xff] %v5691_v61 }
 0x724   :  { %6646 = vst [vmem:[#allocation63_spill] sm:$0xff] %v5694_v39 }
 0x725   :  { %6647 = vst [vmem:[#allocation35_spill] sm:$0xff] %v5697_v34 }
 0x726   :  { %6648 = vst [vmem:[#allocation67_spill] sm:$0xff] %v5700_v35 }
 0x727   :  { %v3534_v58 = vpop.eup %3533  ;;  %6649 = vst [vmem:[#allocation33_spill] sm:$0xff] %v5703_v60 }
 0x728   :  { %v2356_v49 = vmul.f32 %v3534_v58, %v2350_v50  ;;  %6650 = vst [vmem:[#allocation32_spill] sm:$0xff] %v5706_v53  ;;  %v5724_v58 = vld [vmem:[#allocation13 + $0x20] sm:$0xff]  ;;  %v5727_v50 = vld [vmem:[#allocation13 + $0x28] sm:$0xff] }
 0x729   :  { %6651 = vst [vmem:[#allocation38_spill] sm:$0xff] %v5709_v38 }
 0x72a   :  { %2377 = vmatmul.f32.vlgmr.msra.gmra.mxu0 %v2356_v49  ;;  %2397 = vmatmul.f32.vlgmr.msra.gmra.mxu1 %v2356_v49  ;;  %6654 = vst [vmem:[#allocation36_spill] sm:$0xff] %v5718_v45 }
 0x72b   :  { %2417 = vmatmul.f32.vlgmr.msra.gmra.mxu2 %v2356_v49  ;;  %2437 = vmatmul.f32.vlgmr.msra.gmra.mxu3 %v2356_v49  ;;  %6655 = vst [vmem:[#allocation42_spill] sm:$0xff] %v5721_v47  ;;  %v5730_v49 = vld [vmem:[#allocation13 + $0x30] sm:$0xff] }
 0x72c   :  { %2663 = vmatpush.msra.mxu0 %v5556_v22  ;;  %2683 = vmatpush.msra.mxu1 %v5559_v21  ;;  %6656 = vst [vmem:[#allocation39_spill] sm:$0xff] %v5724_v58 }
 0x72d   :  { %2703 = vmatpush.msra.mxu2 %v5562_v57  ;;  %2723 = vmatpush.msra.mxu3 %v5565_v25  ;;  %6657 = vst [vmem:[#allocation41_spill] sm:$0xff] %v5727_v50 }
 0x72e   :  { %2664 = vmatpush.msra.mxu0 %v5568_v10  ;;  %2684 = vmatpush.msra.mxu1 %v5571_v12  ;;  %6658 = vst [vmem:[#allocation40_spill] sm:$0xff] %v5730_v49 }
 0x72f   :  { %2704 = vmatpush.msra.mxu2 %v5574_v52  ;;  %2724 = vmatpush.msra.mxu3 %v5577_v16 }
 0x730   :  { %2665 = vmatpush.msra.mxu0 %v5580_v63  ;;  %2685 = vmatpush.msra.mxu1 %v5583_v54 }
 0x731   :  { %2705 = vmatpush.msra.mxu2 %v5586_v62  ;;  %2725 = vmatpush.msra.mxu3 %v5589_v9 }
 0x732   :  { %2666 = vmatpush.msra.mxu0 %v5592_v42  ;;  %2686 = vmatpush.msra.mxu1 %v5595_v41 }
 0x733   :  { %2706 = vmatpush.msra.mxu2 %v5598_v30  ;;  %2726 = vmatpush.msra.mxu3 %v5601_v29 }
 0x734   :  { %2667 = vmatpush.msra.mxu0 %v5604_v7  ;;  %2687 = vmatpush.msra.mxu1 %v5607_v48 }
 0x735   :  { %2707 = vmatpush.msra.mxu2 %v5610_v26  ;;  %2727 = vmatpush.msra.mxu3 %v5613_v19 }
 0x736   :  { %2668 = vmatpush.msra.mxu0 %v5616_v33  ;;  %2688 = vmatpush.msra.mxu1 %v5619_v11 }
 0x737   :  { %2708 = vmatpush.msra.mxu2 %v5622_v55  ;;  %2728 = vmatpush.msra.mxu3 %v5625_v6 }
 0x738   :  { %2669 = vmatpush.msra.mxu0 %v5628_v14  ;;  %2689 = vmatpush.msra.mxu1 %v5631_v15 }
 0x739   :  { %2709 = vmatpush.msra.mxu2 %v5634_v28  ;;  %2729 = vmatpush.msra.mxu3 %v5637_v36 }
 0x73a   :  { %2670 = vmatpush.msra.mxu0 %v5640_v51  ;;  %2690 = vmatpush.msra.mxu1 %v5643_v37 }
 0x73b   :  { %2710 = vmatpush.msra.mxu2 %v5646_v31  ;;  %2730 = vmatpush.msra.mxu3 %v5649_v1 }
 0x73c   :  { %2671 = vmatpush.msra.mxu0 %v5652_v5  ;;  %2691 = vmatpush.msra.mxu1 %v5655_v3 }
 0x73d   :  { %2711 = vmatpush.msra.mxu2 %v5658_v24  ;;  %2731 = vmatpush.msra.mxu3 %v5661_v4 }
 0x73e   :  { %2672 = vmatpush.msra.mxu0 %v5664_v18  ;;  %2692 = vmatpush.msra.mxu1 %v5667_v8 }
 0x73f   :  { %2712 = vmatpush.msra.mxu2 %v5670_v23  ;;  %2732 = vmatpush.msra.mxu3 %v5673_v32 }
 0x740   :  { %2673 = vmatpush.msra.mxu0 %v5676_v56  ;;  %2693 = vmatpush.msra.mxu1 %v5679_v20 }
 0x741   :  { %2713 = vmatpush.msra.mxu2 %v5682_v2  ;;  %2733 = vmatpush.msra.mxu3 %v5685_v17 }
 0x742   :  { %2674 = vmatpush.msra.mxu0 %v5688_v27  ;;  %2694 = vmatpush.msra.mxu1 %v5691_v61 }
 0x743   :  { %2714 = vmatpush.msra.mxu2 %v5694_v39  ;;  %2734 = vmatpush.msra.mxu3 %v5697_v34  ;;  %v6666_v39 = vld [vmem:[#allocation55_spill] sm:$0xff] }
 0x744   :  { %2675 = vmatpush.msra.mxu0 %v5700_v35  ;;  %2695 = vmatpush.msra.mxu1 %v5703_v60 }
 0x745   :  { %2715 = vmatpush.msra.mxu2 %v5706_v53  ;;  %2735 = vmatpush.msra.mxu3 %v5709_v38 }
 0x746   :  { %2676 = vmatpush.msra.mxu0 %v5712_v40  ;;  %2696 = vmatpush.msra.mxu1 %v5715_v44  ;;  %v5733_v44 = vld [vmem:[#allocation13 + $0x38] sm:$0xff] }
 0x747   :  { %2716 = vmatpush.msra.mxu2 %v5718_v45  ;;  %2736 = vmatpush.msra.mxu3 %v5721_v47  ;;  %6659 = vst [vmem:[#allocation46_spill] sm:$0xff] %v5733_v44  ;;  %v5736_v45 = vld [vmem:[#allocation13] sm:$0xff]  ;;  %v5739_v47 = vld [vmem:[#allocation13 + $0x8] sm:$0xff] }
 0x748   :  { %2677 = vmatpush.msra.mxu0 %v5724_v58  ;;  %2697 = vmatpush.msra.mxu1 %v5727_v50  ;;  %6660 = vst [vmem:[#allocation45_spill] sm:$0xff] %v5736_v45  ;;  %v5742_v58 = vld [vmem:[#allocation13 + $0x10] sm:$0xff]  ;;  %v5745_v50 = vld [vmem:[#allocation13 + $0x18] sm:$0xff] }
 0x749   :  { %2717 = vmatpush.msra.mxu2 %v5730_v49  ;;  %2737 = vmatpush.msra.mxu3 %v5733_v44  ;;  %6661 = vst [vmem:[#allocation43_spill] sm:$0xff] %v5739_v47  ;;  %v6664_v49 = vld [vmem:[#allocation53_spill] sm:$0xff]  ;;  %v6665_v44 = vld [vmem:[#allocation52_spill] sm:$0xff] }
 0x74a   :  { %2678 = vmatpush.msra.mxu0 %v5736_v45  ;;  %2698 = vmatpush.msra.mxu1 %v5739_v47  ;;  %6662 = vst [vmem:[#allocation44_spill] sm:$0xff] %v5742_v58  ;;  %v1819_v40 = vadd.f32 %v6664_v49, %v6630_v0  ;;  %v1860_v38 = vadd.f32 %v6665_v44, %v6632_v13 }
 0x74b   :  { %2718 = vmatpush.msra.mxu2 %v5742_v58  ;;  %6663 = vst [vmem:[#allocation48_spill] sm:$0xff] %v5745_v50  ;;  %2738 = vmatpush.msra.mxu3 %v5745_v50  ;;  %v1942_v58 = vadd.f32 %v6666_v39, %v6634_v43 }
 0x7a7   :  { %v2378_v53 = vpop.f32.mrf.mxu0  ;;  %v2398_v45 = vpop.f32.mrf.mxu1 }
 0x7a8   :  { %v2441_v60 = vadd.f32 %v2378_v53, %v1819_v40  ;;  %v2442_v35 = vadd.f32 %v2398_v45, %v1860_v38 }
 0x7aa   :  { %v3344_v34 = vmul.f32 -1.442695, %v2441_v60  ;;  %v3345_v47 = vmul.f32 -1.442695, %v2442_v35  ;;  %v6667_v60 = vld [vmem:[#allocation65_spill] sm:$0xff] }
 0x7ab   :  { %v1901_v35 = vadd.f32 %v6667_v60, %v6636_v59 }
 0x7ac   :  { %3535 = vpow2.f32 %v3344_v34 }
 0x7ad   :  { %3537 = vpow2.f32 %v3345_v47 }
 0x7ae   :  { %v2438_v61 = vpop.f32.mrf.mxu3  ;;  %v2418_v44 = vpop.f32.mrf.mxu2 }
 0x7af   :  { %v2444_v27 = vadd.f32 %v2438_v61, %v1942_v58  ;;  %v2443_v40 = vadd.f32 %v2418_v44, %v1901_v35 }
 0x7b1   :  { %v3346_v50 = vmul.f32 -1.442695, %v2444_v27 }
 0x7b2   :  { %v3536_v17 = vpop.eup %3535 }
 0x7b3   :  { %v3538_v2 = vpop.eup %3537  ;;  %v2448_v49 = vadd.f32 1.0, %v3536_v17  ;;  %3539 = vpow2.f32 %v3346_v50 }
 0x7b4   :  { %v2467_v0 = vadd.f32 1.0, %v3538_v2 }
 0x7b5   :  { %3541 = vrcp.f32 %v2448_v49  ;;  %v2460_v58 = vand.u32 2147483648, %v2448_v49  ;;  %v2458_v50 = vand.u32 2147483647, %v2448_v49  ;;  %vm2454_vm10 = vweird.f32 %v2448_v49 }
 0x7b6   :  { %3543 = vrcp.f32 %v2467_v0  ;;  %v2479_v17 = vand.u32 2147483648, %v2467_v0  ;;  %v2477_v13 = vand.u32 2147483647, %v2467_v0  ;;  %vm2473_vm11 = vweird.f32 %v2467_v0 }
 0x7b7   :  { %v2461_v44 = vor.u32 1.1754944e-38, %v2460_v58  ;;  %vm2459_vm14 = vcmp.eq.f32.partialorder %v2458_v50, 8.507059e+37 }
 0x7b8   :  { %vm2478_vm15 = vcmp.eq.f32.partialorder %v2477_v13, 8.507059e+37 }
 0x7b9   :  { %v3540_v53 = vpop.eup %3539 }
 0x7ba   :  { %v2487_v34 = vadd.f32 1.0, %v3540_v53 }
 0x7bb   :  { %v3542_v38 = vpop.eup %3541 }
 0x7bc   :  { %v3544_v39 = vpop.eup %3543  ;;  %v2450_v45 = vmul.f32 %v3542_v38, %v2448_v49  ;;  %3545 = vrcp.f32 %v2487_v34  ;;  %vm2455_vm8 = vweird.f32 %v3542_v38  ;;  %vm2493_vm1 = vweird.f32 %v2487_v34 }
 0x7bd   :  { %v2469_v61 = vmul.f32 %v3544_v39, %v2467_v0  ;;  %3547 = vtanh.f32 %v2443_v40  ;;  %vm2474_vm9 = vweird.f32 %v3544_v39  ;;  %vm2456_vm12 = vmor %vm2454_vm10, %vm2455_vm8 }
 0x7be   :  { %v2451_v27 = vsub.f32 1.0, %v2450_v45  ;;  %vm2475_vm13 = vmor %vm2473_vm11, %vm2474_vm9  ;;  %v2480_v45 = vor.u32 1.1754944e-38, %v2479_v17 }
 0x7bf   :  { %v2470_v47 = vsub.f32 1.0, %v2469_v61 }
 0x7c0   :  { %v2452_v2 = vmul.f32 %v3542_v38, %v2451_v27 }
 0x7c1   :  { %v2471_v43 = vmul.f32 %v3544_v39, %v2470_v47 }
 0x7c2   :  { %v3546_v20 = vpop.eup %3545  ;;  %v2453_v60 = vadd.f32 %v3542_v38, %v2452_v2 }
 0x7c3   :  { %v2472_v53 = vadd.f32 %v3544_v39, %v2471_v43  ;;  %v2489_v35 = vmul.f32 %v3546_v20, %v2487_v34  ;;  %v3548_v40 = vpop.eup %3547  ;;  %vm2494_vm0 = vweird.f32 %v3546_v20  ;;  %v2499_v43 = vand.u32 2147483648, %v2487_v34 }
 0x7c4   :  { %v2457_v61 = vsel %vm2456_vm12, %v3542_v38, %v2453_v60  ;;  %v2497_v38 = vand.u32 2147483647, %v2487_v34  ;;  %vm2495_vm2 = vmor %vm2493_vm1, %vm2494_vm0  ;;  %v6674_v34 = vld [vmem:[#allocation60_spill] sm:$0xff]  ;;  %v6675_v60 = vld [vmem:[#allocation62_spill] sm:$0xff] }
 0x7c5   :  { %v2462_v59 = vsel %vm2459_vm14, %v2461_v44, %v2457_v61  ;;  %v2476_v27 = vsel %vm2475_vm13, %v3544_v39, %v2472_v53  ;;  %v2490_v56 = vsub.f32 1.0, %v2489_v35  ;;  %v2500_v17 = vor.u32 1.1754944e-38, %v2499_v43  ;;  %v6676_v44 = vld [vmem:[#allocation63_spill] sm:$0xff]  ;;  %v6680_v61 = vld [vmem:[#allocation32_spill] sm:$0xff] }
 0x7c6   :  { %v2481_v47 = vsel %vm2478_vm15, %v2480_v45, %v2476_v27  ;;  %v2504_v32 = vmul.f32 %v3548_v40, %v2462_v59  ;;  %vm2498_vm3 = vcmp.eq.f32.partialorder %v2497_v38, 8.507059e+37  ;;  %v6668_v59 = vld [vmem:[#allocation28_spill] sm:$0xff]  ;;  %v6677_v53 = vld [vmem:[#allocation35_spill] sm:$0xff]  ;;  %v6679_v45 = vld [vmem:[#allocation33_spill] sm:$0xff] }
 0x7c7   :  { %v2503_v23 = vmul.f32 %v2481_v47, %v5553_v46  ;;  %v2491_v2 = vmul.f32 %v3546_v20, %v2490_v56  ;;  %v6669_v46 = vld [vmem:[#allocation64_spill] sm:$0xff]  ;;  %v6672_v56 = vld [vmem:[#allocation61_spill] sm:$0xff]  ;;  %v6678_v35 = vld [vmem:[#allocation67_spill] sm:$0xff] }
 0x7c8   :  { %v6681_v40 = vld [vmem:[#allocation38_spill] sm:$0xff]  ;;  %v6683_v47 = vld [vmem:[#allocation37_spill] sm:$0xff]  ;;  %v6686_v43 = vld [vmem:[#allocation39_spill] sm:$0xff] }
 0x7c9   :  { %v5757_v49 = vadd.f32 %v2504_v32, %v2503_v23  ;;  %v2492_v0 = vadd.f32 %v3546_v20, %v2491_v2  ;;  %v6670_v23 = vld [vmem:[#allocation58_spill] sm:$0xff]  ;;  %v6671_v32 = vld [vmem:[#allocation59_spill] sm:$0xff]  ;;  %v6684_v2 = vld [vmem:[#allocation36_spill] sm:$0xff] }
 0x7ca   :  { %v6682_v27 = vld [vmem:[#allocation34_spill] sm:$0xff]  ;;  %v6687_v38 = vld [vmem:[#allocation41_spill] sm:$0xff] }
 0x7cb   :  { %3549 = vtanh.f32 %v5757_v49  ;;  %v2496_v58 = vsel %vm2495_vm2, %v3546_v20, %v2492_v0  ;;  %v6673_v20 = vld [vmem:[#allocation31_spill] sm:$0xff]  ;;  %v6685_v0 = vld [vmem:[#allocation42_spill] sm:$0xff] }
 0x7cc   :  { %v2501_v39 = vsel %vm2498_vm3, %v2500_v17, %v2496_v58  ;;  %v6688_v58 = vld [vmem:[#allocation40_spill] sm:$0xff]  ;;  %v6689_v17 = vld [vmem:[#allocation46_spill] sm:$0xff] }
 0x7d1   :  { %v3550_v13 = vpop.eup %3549 }
 0x7d2   :  { %v2507_v50 = vmul.f32 %v3550_v13, %v2501_v39  ;;  %v6690_v13 = vld [vmem:[#allocation45_spill] sm:$0xff]  ;;  %v6691_v39 = vld [vmem:[#allocation43_spill] sm:$0xff] }
 0x7d4   :  { %2528 = vmatmul.f32.vlgmr.msrb.gmra.mxu0 %v2507_v50  ;;  %2548 = vmatmul.f32.vlgmr.msrb.gmra.mxu1 %v2507_v50 }
 0x7d5   :  { %2568 = vmatmul.f32.vlgmr.msrb.gmra.mxu2 %v2507_v50  ;;  %2588 = vmatmul.f32.vlgmr.msrb.gmra.mxu3 %v2507_v50  ;;  %v6692_v50 = vld [vmem:[#allocation44_spill] sm:$0xff] }
 0x7d6   :  { %2814 = vmatpush.msrb.mxu0 %v5556_v22  ;;  %2834 = vmatpush.msrb.mxu1 %v5559_v21 }
 0x7d7   :  { %2854 = vmatpush.msrb.mxu2 %v5562_v57  ;;  %2874 = vmatpush.msrb.mxu3 %v5565_v25 }
 0x7d8   :  { %2815 = vmatpush.msrb.mxu0 %v5568_v10  ;;  %2835 = vmatpush.msrb.mxu1 %v5571_v12 }
 0x7d9   :  { %2855 = vmatpush.msrb.mxu2 %v5574_v52  ;;  %2875 = vmatpush.msrb.mxu3 %v5577_v16 }
 0x7da   :  { %2816 = vmatpush.msrb.mxu0 %v5580_v63  ;;  %2836 = vmatpush.msrb.mxu1 %v5583_v54 }
 0x7db   :  { %2856 = vmatpush.msrb.mxu2 %v5586_v62  ;;  %2876 = vmatpush.msrb.mxu3 %v5589_v9 }
 0x7dc   :  { %2817 = vmatpush.msrb.mxu0 %v5592_v42  ;;  %2837 = vmatpush.msrb.mxu1 %v5595_v41 }
 0x7dd   :  { %2857 = vmatpush.msrb.mxu2 %v5598_v30  ;;  %2877 = vmatpush.msrb.mxu3 %v5601_v29 }
 0x7de   :  { %2818 = vmatpush.msrb.mxu0 %v5604_v7  ;;  %2838 = vmatpush.msrb.mxu1 %v5607_v48 }
 0x7df   :  { %2858 = vmatpush.msrb.mxu2 %v5610_v26  ;;  %2878 = vmatpush.msrb.mxu3 %v5613_v19 }
 0x7e0   :  { %2819 = vmatpush.msrb.mxu0 %v5616_v33  ;;  %2839 = vmatpush.msrb.mxu1 %v5619_v11 }
 0x7e1   :  { %2859 = vmatpush.msrb.mxu2 %v5622_v55  ;;  %2879 = vmatpush.msrb.mxu3 %v5625_v6 }
 0x7e2   :  { %2820 = vmatpush.msrb.mxu0 %v5628_v14  ;;  %2840 = vmatpush.msrb.mxu1 %v5631_v15 }
 0x7e3   :  { %2860 = vmatpush.msrb.mxu2 %v5634_v28  ;;  %2880 = vmatpush.msrb.mxu3 %v5637_v36 }
 0x7e4   :  { %2821 = vmatpush.msrb.mxu0 %v5640_v51  ;;  %2841 = vmatpush.msrb.mxu1 %v5643_v37 }
 0x7e5   :  { %2861 = vmatpush.msrb.mxu2 %v5646_v31  ;;  %2881 = vmatpush.msrb.mxu3 %v5649_v1 }
 0x7e6   :  { %2822 = vmatpush.msrb.mxu0 %v5652_v5  ;;  %2842 = vmatpush.msrb.mxu1 %v5655_v3 }
 0x7e7   :  { %2862 = vmatpush.msrb.mxu2 %v5658_v24  ;;  %2882 = vmatpush.msrb.mxu3 %v5661_v4 }
 0x7e8   :  { %2823 = vmatpush.msrb.mxu0 %v5664_v18  ;;  %2843 = vmatpush.msrb.mxu1 %v5667_v8 }
 0x7e9   :  { %2863 = vmatpush.msrb.mxu2 %v6668_v59  ;;  %2883 = vmatpush.msrb.mxu3 %v6669_v46 }
 0x7ea   :  { %2824 = vmatpush.msrb.mxu0 %v6670_v23  ;;  %2844 = vmatpush.msrb.mxu1 %v6671_v32 }
 0x7eb   :  { %2864 = vmatpush.msrb.mxu2 %v6672_v56  ;;  %2884 = vmatpush.msrb.mxu3 %v6673_v20 }
 0x7ec   :  { %2825 = vmatpush.msrb.mxu0 %v6674_v34  ;;  %2845 = vmatpush.msrb.mxu1 %v6675_v60 }
 0x7ed   :  { %2865 = vmatpush.msrb.mxu2 %v6676_v44  ;;  %2885 = vmatpush.msrb.mxu3 %v6677_v53  ;;  %v6699_v44 = vld [vmem:[#allocation76_spill] sm:$0xff] }
 0x7ee   :  { %2826 = vmatpush.msrb.mxu0 %v6678_v35  ;;  %2846 = vmatpush.msrb.mxu1 %v6679_v45 }
 0x7ef   :  { %2866 = vmatpush.msrb.mxu2 %v6680_v61  ;;  %2886 = vmatpush.msrb.mxu3 %v6681_v40  ;;  %v6697_v61 = vld [vmem:[#allocation75_spill] sm:$0xff] }
 0x7f0   :  { %2827 = vmatpush.msrb.mxu0 %v6682_v27  ;;  %2847 = vmatpush.msrb.mxu1 %v6683_v47  ;;  %v6693_v27 = vld [vmem:[#allocation48_spill] sm:$0xff]  ;;  %v6694_v47 = vld [vmem:[#allocation74_spill] sm:$0xff] }
 0x7f1   :  { %2867 = vmatpush.msrb.mxu2 %v6684_v2  ;;  %2887 = vmatpush.msrb.mxu3 %v6685_v0  ;;  %v6695_v2 = vld [vmem:[#allocation57_spill] sm:$0xff]  ;;  %v6696_v0 = vld [vmem:[#allocation78_spill] sm:$0xff] }
 0x7f2   :  { %2828 = vmatpush.msrb.mxu0 %v6686_v43  ;;  %2848 = vmatpush.msrb.mxu1 %v6687_v38  ;;  %v1822_v40 = vadd.f32 %v6695_v2, %v6694_v47  ;;  %v1863_v43 = vadd.f32 %v6697_v61, %v6696_v0 }
 0x7f3   :  { %2868 = vmatpush.msrb.mxu2 %v6688_v58  ;;  %2888 = vmatpush.msrb.mxu3 %v6689_v17 }
 0x7f4   :  { %2829 = vmatpush.msrb.mxu0 %v6690_v13  ;;  %2849 = vmatpush.msrb.mxu1 %v6691_v39  ;;  %v6698_v13 = vld [vmem:[#allocation24_spill] sm:$0xff] }
 0x7f5   :  { %2869 = vmatpush.msrb.mxu2 %v6692_v50  ;;  %2889 = vmatpush.msrb.mxu3 %v6693_v27  ;;  %v1945_v39 = vadd.f32 %v6699_v44, %v6698_v13 }
 0x851   :  { %v2529_v45 = vpop.f32.mrf.mxu0  ;;  %v2549_v38 = vpop.f32.mrf.mxu1 }
 0x852   :  { %v2592_v35 = vadd.f32 %v2529_v45, %v1822_v40  ;;  %v2593_v58 = vadd.f32 %v2549_v38, %v1863_v43  ;;  %v6700_v40 = vld [vmem:[#allocation29_spill] sm:$0xff] }
 0x854   :  { %v3347_v53 = vmul.f32 -1.442695, %v2592_v35  ;;  %v3348_v17 = vmul.f32 -1.442695, %v2593_v58  ;;  %v6701_v35 = vld [vmem:[#allocation68_spill] sm:$0xff] }
 0x855   :  { %v1904_v43 = vadd.f32 %v6701_v35, %v6700_v40 }
 0x856   :  { %3551 = vpow2.f32 %v3347_v53 }
 0x857   :  { %3553 = vpow2.f32 %v3348_v17 }
 0x858   :  { %v2589_v50 = vpop.f32.mrf.mxu3  ;;  %v2569_v61 = vpop.f32.mrf.mxu2 }
 0x859   :  { %v2595_v60 = vadd.f32 %v2589_v50, %v1945_v39  ;;  %v2594_v58 = vadd.f32 %v2569_v61, %v1904_v43 }
 0x85b   :  { %v3349_v27 = vmul.f32 -1.442695, %v2595_v60 }
 0x85c   :  { %v3552_v34 = vpop.eup %3551 }
 0x85d   :  { %v3554_v20 = vpop.eup %3553  ;;  %v2599_v2 = vadd.f32 1.0, %v3552_v34  ;;  %3555 = vpow2.f32 %v3349_v27 }
 0x85e   :  { %v2618_v47 = vadd.f32 1.0, %v3554_v20 }
 0x85f   :  { %3557 = vrcp.f32 %v2599_v2  ;;  %v2611_v13 = vand.u32 2147483648, %v2599_v2  ;;  %v2609_v27 = vand.u32 2147483647, %v2599_v2  ;;  %vm2605_vm6 = vweird.f32 %v2599_v2 }
 0x860   :  { %3559 = vrcp.f32 %v2618_v47  ;;  %v2630_v34 = vand.u32 2147483648, %v2618_v47  ;;  %v2628_v56 = vand.u32 2147483647, %v2618_v47  ;;  %vm2624_vm7 = vweird.f32 %v2618_v47 }
 0x861   :  { %v2612_v61 = vor.u32 1.1754944e-38, %v2611_v13  ;;  %vm2610_vm10 = vcmp.eq.f32.partialorder %v2609_v27, 8.507059e+37 }
 0x862   :  { %vm2629_vm11 = vcmp.eq.f32.partialorder %v2628_v56, 8.507059e+37 }
 0x863   :  { %v3556_v45 = vpop.eup %3555 }
 0x864   :  { %v2638_v53 = vadd.f32 1.0, %v3556_v45 }
 0x865   :  { %v3558_v38 = vpop.eup %3557 }
 0x866   :  { %v3560_v44 = vpop.eup %3559  ;;  %v2601_v17 = vmul.f32 %v3558_v38, %v2599_v2  ;;  %3561 = vrcp.f32 %v2638_v53  ;;  %vm2606_vm4 = vweird.f32 %v3558_v38  ;;  %vm2644_vm13 = vweird.f32 %v2638_v53 }
 0x867   :  { %v2620_v39 = vmul.f32 %v3560_v44, %v2618_v47  ;;  %3563 = vtanh.f32 %v2594_v58  ;;  %vm2625_vm5 = vweird.f32 %v3560_v44  ;;  %vm2607_vm8 = vmor %vm2605_vm6, %vm2606_vm4  ;;  %v2648_v13 = vand.u32 2147483647, %v2638_v53 }
 0x868   :  { %v2602_v60 = vsub.f32 1.0, %v2601_v17  ;;  %vm2626_vm9 = vmor %vm2624_vm7, %vm2625_vm5  ;;  %v2631_v17 = vor.u32 1.1754944e-38, %v2630_v34 }
 0x869   :  { %v2621_v50 = vsub.f32 1.0, %v2620_v39  ;;  %vm2649_vm15 = vcmp.eq.f32.partialorder %v2648_v13, 8.507059e+37  ;;  %v6721_v13 = vld [vmem:[#allocation41_spill] sm:$0xff] }
 0x86a   :  { %v2603_v20 = vmul.f32 %v3558_v38, %v2602_v60 }
 0x86b   :  { %v2622_v0 = vmul.f32 %v3560_v44, %v2621_v50 }
 0x86c   :  { %v3562_v32 = vpop.eup %3561  ;;  %v2604_v35 = vadd.f32 %v3558_v38, %v2603_v20 }
 0x86d   :  { %v2623_v45 = vadd.f32 %v3560_v44, %v2622_v0  ;;  %v2640_v43 = vmul.f32 %v3562_v32, %v2638_v53  ;;  %v3564_v58 = vpop.eup %3563  ;;  %vm2645_vm12 = vweird.f32 %v3562_v32  ;;  %v2650_v0 = vand.u32 2147483648, %v2638_v53  ;;  %v6708_v53 = vld [vmem:[#allocation60_spill] sm:$0xff] }
 0x86e   :  { %v2608_v39 = vsel %vm2607_vm8, %v3558_v38, %v2604_v35  ;;  %vm2646_vm14 = vmor %vm2644_vm13, %vm2645_vm12  ;;  %v6709_v35 = vld [vmem:[#allocation62_spill] sm:$0xff] }
 0x86f   :  { %v2613_v40 = vsel %vm2610_vm10, %v2612_v61, %v2608_v39  ;;  %v2627_v60 = vsel %vm2626_vm9, %v3560_v44, %v2623_v45  ;;  %v2641_v23 = vsub.f32 1.0, %v2640_v43  ;;  %v2651_v34 = vor.u32 1.1754944e-38, %v2650_v0  ;;  %v6710_v61 = vld [vmem:[#allocation63_spill] sm:$0xff]  ;;  %v6714_v39 = vld [vmem:[#allocation32_spill] sm:$0xff] }
 0x870   :  { %v2632_v50 = vsel %vm2629_vm11, %v2631_v17, %v2627_v60  ;;  %v2655_v46 = vmul.f32 %v3564_v58, %v2613_v40  ;;  %v6707_v40 = vld [vmem:[#allocation31_spill] sm:$0xff]  ;;  %v6713_v17 = vld [vmem:[#allocation33_spill] sm:$0xff]  ;;  %v6715_v58 = vld [vmem:[#allocation38_spill] sm:$0xff] }
 0x871   :  { %v2654_v59 = vmul.f32 %v2632_v50, %v5757_v49  ;;  %v2642_v20 = vmul.f32 %v3562_v32, %v2641_v23  ;;  %v6702_v49 = vld [vmem:[#allocation28_spill] sm:$0xff]  ;;  %v6705_v23 = vld [vmem:[#allocation59_spill] sm:$0xff]  ;;  %v6716_v60 = vld [vmem:[#allocation34_spill] sm:$0xff] }
 0x872   :  { %v6711_v45 = vld [vmem:[#allocation35_spill] sm:$0xff]  ;;  %v6717_v50 = vld [vmem:[#allocation37_spill] sm:$0xff] }
 0x873   :  { %v5833_v2 = vadd.f32 %v2655_v46, %v2654_v59  ;;  %v2643_v47 = vadd.f32 %v3562_v32, %v2642_v20  ;;  %v6703_v59 = vld [vmem:[#allocation64_spill] sm:$0xff]  ;;  %v6704_v46 = vld [vmem:[#allocation58_spill] sm:$0xff]  ;;  %v6712_v43 = vld [vmem:[#allocation67_spill] sm:$0xff] }
 0x874   :  { %v6718_v20 = vld [vmem:[#allocation36_spill] sm:$0xff]  ;;  %v6720_v0 = vld [vmem:[#allocation39_spill] sm:$0xff] }
 0x875   :  { %3565 = vtanh.f32 %v5833_v2  ;;  %v2647_v38 = vsel %vm2646_vm14, %v3562_v32, %v2643_v47  ;;  %v6706_v32 = vld [vmem:[#allocation61_spill] sm:$0xff]  ;;  %v6719_v47 = vld [vmem:[#allocation42_spill] sm:$0xff] }
 0x876   :  { %v2652_v44 = vsel %vm2649_vm15, %v2651_v34, %v2647_v38  ;;  %v6722_v38 = vld [vmem:[#allocation40_spill] sm:$0xff]  ;;  %v6723_v34 = vld [vmem:[#allocation46_spill] sm:$0xff] }
 0x87b   :  { %v3566_v56 = vpop.eup %3565 }
 0x87c   :  { %v2658_v27 = vmul.f32 %v3566_v56, %v2652_v44  ;;  %v6724_v56 = vld [vmem:[#allocation45_spill] sm:$0xff]  ;;  %v6725_v44 = vld [vmem:[#allocation43_spill] sm:$0xff] }
 0x87e   :  { %2679 = vmatmul.f32.vlgmr.msra.gmra.mxu0 %v2658_v27  ;;  %2699 = vmatmul.f32.vlgmr.msra.gmra.mxu1 %v2658_v27 }
 0x87f   :  { %2719 = vmatmul.f32.vlgmr.msra.gmra.mxu2 %v2658_v27  ;;  %2739 = vmatmul.f32.vlgmr.msra.gmra.mxu3 %v2658_v27  ;;  %v6726_v27 = vld [vmem:[#allocation44_spill] sm:$0xff] }
 0x880   :  { %2965 = vmatpush.msra.mxu0 %v5556_v22  ;;  %2985 = vmatpush.msra.mxu1 %v5559_v21 }
 0x881   :  { %3005 = vmatpush.msra.mxu2 %v5562_v57  ;;  %3025 = vmatpush.msra.mxu3 %v5565_v25 }
 0x882   :  { %2966 = vmatpush.msra.mxu0 %v5568_v10  ;;  %2986 = vmatpush.msra.mxu1 %v5571_v12 }
 0x883   :  { %3006 = vmatpush.msra.mxu2 %v5574_v52  ;;  %3026 = vmatpush.msra.mxu3 %v5577_v16 }
 0x884   :  { %2967 = vmatpush.msra.mxu0 %v5580_v63  ;;  %2987 = vmatpush.msra.mxu1 %v5583_v54 }
 0x885   :  { %3007 = vmatpush.msra.mxu2 %v5586_v62  ;;  %3027 = vmatpush.msra.mxu3 %v5589_v9 }
 0x886   :  { %2968 = vmatpush.msra.mxu0 %v5592_v42  ;;  %2988 = vmatpush.msra.mxu1 %v5595_v41 }
 0x887   :  { %3008 = vmatpush.msra.mxu2 %v5598_v30  ;;  %3028 = vmatpush.msra.mxu3 %v5601_v29 }
 0x888   :  { %2969 = vmatpush.msra.mxu0 %v5604_v7  ;;  %2989 = vmatpush.msra.mxu1 %v5607_v48 }
 0x889   :  { %3009 = vmatpush.msra.mxu2 %v5610_v26  ;;  %3029 = vmatpush.msra.mxu3 %v5613_v19 }
 0x88a   :  { %2970 = vmatpush.msra.mxu0 %v5616_v33  ;;  %2990 = vmatpush.msra.mxu1 %v5619_v11 }
 0x88b   :  { %3010 = vmatpush.msra.mxu2 %v5622_v55  ;;  %3030 = vmatpush.msra.mxu3 %v5625_v6 }
 0x88c   :  { %2971 = vmatpush.msra.mxu0 %v5628_v14  ;;  %2991 = vmatpush.msra.mxu1 %v5631_v15 }
 0x88d   :  { %3011 = vmatpush.msra.mxu2 %v5634_v28  ;;  %3031 = vmatpush.msra.mxu3 %v5637_v36 }
 0x88e   :  { %2972 = vmatpush.msra.mxu0 %v5640_v51  ;;  %2992 = vmatpush.msra.mxu1 %v5643_v37 }
 0x88f   :  { %3012 = vmatpush.msra.mxu2 %v5646_v31  ;;  %3032 = vmatpush.msra.mxu3 %v5649_v1 }
 0x890   :  { %2973 = vmatpush.msra.mxu0 %v5652_v5  ;;  %2993 = vmatpush.msra.mxu1 %v5655_v3 }
 0x891   :  { %3013 = vmatpush.msra.mxu2 %v5658_v24  ;;  %3033 = vmatpush.msra.mxu3 %v5661_v4 }
 0x892   :  { %2974 = vmatpush.msra.mxu0 %v5664_v18  ;;  %2994 = vmatpush.msra.mxu1 %v5667_v8 }
 0x893   :  { %3014 = vmatpush.msra.mxu2 %v6702_v49  ;;  %3034 = vmatpush.msra.mxu3 %v6703_v59 }
 0x894   :  { %2975 = vmatpush.msra.mxu0 %v6704_v46  ;;  %2995 = vmatpush.msra.mxu1 %v6705_v23 }
 0x895   :  { %3015 = vmatpush.msra.mxu2 %v6706_v32  ;;  %3035 = vmatpush.msra.mxu3 %v6707_v40 }
 0x896   :  { %2976 = vmatpush.msra.mxu0 %v6708_v53  ;;  %2996 = vmatpush.msra.mxu1 %v6709_v35 }
 0x897   :  { %3016 = vmatpush.msra.mxu2 %v6710_v61  ;;  %3036 = vmatpush.msra.mxu3 %v6711_v45  ;;  %v6733_v61 = vld [vmem:[#allocation81_spill] sm:$0xff] }
 0x898   :  { %2977 = vmatpush.msra.mxu0 %v6712_v43  ;;  %2997 = vmatpush.msra.mxu1 %v6713_v17 }
 0x899   :  { %3017 = vmatpush.msra.mxu2 %v6714_v39  ;;  %3037 = vmatpush.msra.mxu3 %v6715_v58  ;;  %v6731_v39 = vld [vmem:[#allocation79_spill] sm:$0xff] }
 0x89a   :  { %2978 = vmatpush.msra.mxu0 %v6716_v60  ;;  %2998 = vmatpush.msra.mxu1 %v6717_v50  ;;  %v6727_v60 = vld [vmem:[#allocation48_spill] sm:$0xff]  ;;  %v6728_v50 = vld [vmem:[#allocation74_spill] sm:$0xff] }
 0x89b   :  { %3018 = vmatpush.msra.mxu2 %v6718_v20  ;;  %3038 = vmatpush.msra.mxu3 %v6719_v47  ;;  %v6729_v20 = vld [vmem:[#allocation66_spill] sm:$0xff] }
 0x89c   :  { %2979 = vmatpush.msra.mxu0 %v6720_v0  ;;  %2999 = vmatpush.msra.mxu1 %v6721_v13  ;;  %v1825_v58 = vadd.f32 %v6729_v20, %v6728_v50  ;;  %v6730_v47 = vld [vmem:[#allocation78_spill] sm:$0xff] }
 0x89d   :  { %3019 = vmatpush.msra.mxu2 %v6722_v38  ;;  %3039 = vmatpush.msra.mxu3 %v6723_v34  ;;  %v1866_v0 = vadd.f32 %v6731_v39, %v6730_v47 }
 0x89e   :  { %2980 = vmatpush.msra.mxu0 %v6724_v56  ;;  %3000 = vmatpush.msra.mxu1 %v6725_v44  ;;  %v6732_v56 = vld [vmem:[#allocation24_spill] sm:$0xff] }
 0x89f   :  { %3020 = vmatpush.msra.mxu2 %v6726_v27  ;;  %3040 = vmatpush.msra.mxu3 %v6727_v60  ;;  %v1948_v44 = vadd.f32 %v6733_v61, %v6732_v56 }
 0x8fb   :  { %v2680_v17 = vpop.f32.mrf.mxu0  ;;  %v2700_v13 = vpop.f32.mrf.mxu1 }
 0x8fc   :  { %v2743_v43 = vadd.f32 %v2680_v17, %v1825_v58  ;;  %v2744_v38 = vadd.f32 %v2700_v13, %v1866_v0  ;;  %v6734_v58 = vld [vmem:[#allocation29_spill] sm:$0xff] }
 0x8fe   :  { %v3350_v45 = vmul.f32 -1.442695, %v2743_v43  ;;  %v3351_v34 = vmul.f32 -1.442695, %v2744_v38  ;;  %v6735_v43 = vld [vmem:[#allocation70_spill] sm:$0xff] }
 0x8ff   :  { %v1907_v0 = vadd.f32 %v6735_v43, %v6734_v58 }
 0x900   :  { %3567 = vpow2.f32 %v3350_v45 }
 0x901   :  { %3569 = vpow2.f32 %v3351_v34 }
 0x902   :  { %v2740_v27 = vpop.f32.mrf.mxu3  ;;  %v2720_v39 = vpop.f32.mrf.mxu2 }
 0x903   :  { %v2746_v35 = vadd.f32 %v2740_v27, %v1948_v44  ;;  %v2745_v38 = vadd.f32 %v2720_v39, %v1907_v0 }
 0x905   :  { %v3352_v60 = vmul.f32 -1.442695, %v2746_v35 }
 0x906   :  { %v3568_v53 = vpop.eup %3567 }
 0x907   :  { %v3570_v40 = vpop.eup %3569  ;;  %v2750_v20 = vadd.f32 1.0, %v3568_v53  ;;  %3571 = vpow2.f32 %v3352_v60 }
 0x908   :  { %v2769_v50 = vadd.f32 1.0, %v3570_v40 }
 0x909   :  { %3573 = vrcp.f32 %v2750_v20  ;;  %v2762_v56 = vand.u32 2147483648, %v2750_v20  ;;  %v2760_v60 = vand.u32 2147483647, %v2750_v20  ;;  %vm2756_vm2 = vweird.f32 %v2750_v20 }
 0x90a   :  { %3575 = vrcp.f32 %v2769_v50  ;;  %v2781_v53 = vand.u32 2147483648, %v2769_v50  ;;  %v2779_v32 = vand.u32 2147483647, %v2769_v50  ;;  %vm2775_vm3 = vweird.f32 %v2769_v50 }
 0x90b   :  { %v2763_v39 = vor.u32 1.1754944e-38, %v2762_v56  ;;  %vm2761_vm6 = vcmp.eq.f32.partialorder %v2760_v60, 8.507059e+37 }
 0x90c   :  { %vm2780_vm7 = vcmp.eq.f32.partialorder %v2779_v32, 8.507059e+37 }
 0x90d   :  { %v3572_v17 = vpop.eup %3571 }
 0x90e   :  { %v2789_v45 = vadd.f32 1.0, %v3572_v17 }
 0x90f   :  { %v3574_v13 = vpop.eup %3573 }
 0x910   :  { %v3576_v61 = vpop.eup %3575  ;;  %v2752_v34 = vmul.f32 %v3574_v13, %v2750_v20  ;;  %3577 = vrcp.f32 %v2789_v45  ;;  %vm2757_vm0 = vweird.f32 %v3574_v13  ;;  %vm2795_vm9 = vweird.f32 %v2789_v45 }
 0x911   :  { %v2771_v44 = vmul.f32 %v3576_v61, %v2769_v50  ;;  %3579 = vtanh.f32 %v2745_v38  ;;  %vm2776_vm1 = vweird.f32 %v3576_v61  ;;  %vm2758_vm4 = vmor %vm2756_vm2, %vm2757_vm0  ;;  %v2799_v56 = vand.u32 2147483647, %v2789_v45 }
 0x912   :  { %v2753_v35 = vsub.f32 1.0, %v2752_v34  ;;  %vm2777_vm5 = vmor %vm2775_vm3, %vm2776_vm1  ;;  %v2782_v34 = vor.u32 1.1754944e-38, %v2781_v53 }
 0x913   :  { %v2772_v27 = vsub.f32 1.0, %v2771_v44  ;;  %vm2800_vm11 = vcmp.eq.f32.partialorder %v2799_v56, 8.507059e+37 }
 0x914   :  { %v2754_v40 = vmul.f32 %v3574_v13, %v2753_v35 }
 0x915   :  { %v2773_v47 = vmul.f32 %v3576_v61, %v2772_v27 }
 0x916   :  { %v3578_v23 = vpop.eup %3577  ;;  %v2755_v43 = vadd.f32 %v3574_v13, %v2754_v40 }
 0x917   :  { %v2774_v17 = vadd.f32 %v3576_v61, %v2773_v47  ;;  %v2791_v0 = vmul.f32 %v3578_v23, %v2789_v45  ;;  %v3580_v38 = vpop.eup %3579  ;;  %vm2796_vm8 = vweird.f32 %v3578_v23  ;;  %v2801_v47 = vand.u32 2147483648, %v2789_v45 }
 0x918   :  { %v2759_v44 = vsel %vm2758_vm4, %v3574_v13, %v2755_v43  ;;  %vm2797_vm10 = vmor %vm2795_vm9, %vm2796_vm8 }
 0x919   :  { %v2764_v58 = vsel %vm2761_vm6, %v2763_v39, %v2759_v44  ;;  %v2778_v35 = vsel %vm2777_vm5, %v3576_v61, %v2774_v17  ;;  %v2792_v46 = vsub.f32 1.0, %v2791_v0  ;;  %v2802_v53 = vor.u32 1.1754944e-38, %v2801_v47  ;;  %v6768_v44 = vld [vmem:[#allocation29_spill] sm:$0xff] }
 0x91a   :  { %v2783_v27 = vsel %vm2780_vm7, %v2782_v34, %v2778_v35  ;;  %v2806_v59 = vmul.f32 %v3580_v38, %v2764_v58  ;;  %v6769_v38 = vld [vmem:[#allocation25_spill] sm:$0xff] }
 0x91b   :  { %v2805_v49 = vmul.f32 %v2783_v27, %v5833_v2  ;;  %v2793_v40 = vmul.f32 %v3578_v23, %v2792_v46  ;;  %v6766_v2 = vld [vmem:[#allocation24_spill] sm:$0xff]  ;;  %v1910_v35 = vadd.f32 %v6769_v38, %v6768_v44 }
 0x91d   :  { %v5909_v20 = vadd.f32 %v2806_v59, %v2805_v49  ;;  %v2794_v50 = vadd.f32 %v3578_v23, %v2793_v40  ;;  %v6767_v49 = vld [vmem:[#allocation72_spill] sm:$0xff] }
 0x91e   :  { %v1951_v59 = vadd.f32 %v6767_v49, %v6766_v2 }
 0x91f   :  { %3581 = vtanh.f32 %v5909_v20  ;;  %v2798_v13 = vsel %vm2797_vm10, %v3578_v23, %v2794_v50 }
 0x920   :  { %v2803_v61 = vsel %vm2800_vm11, %v2802_v53, %v2798_v13 }
 0x925   :  { %v3582_v32 = vpop.eup %3581 }
 0x926   :  { %v2809_v60 = vmul.f32 %v3582_v32, %v2803_v61 }
 0x928   :  { %2830 = vmatmul.f32.vlgmr.msrb.gmra.mxu0 %v2809_v60  ;;  %2850 = vmatmul.f32.vlgmr.msrb.gmra.mxu1 %v2809_v60 }
 0x929   :  { %2870 = vmatmul.f32.vlgmr.msrb.gmra.mxu2 %v2809_v60  ;;  %2890 = vmatmul.f32.vlgmr.msrb.gmra.mxu3 %v2809_v60 }
 0x92a   :  { %3116 = vmatpush.msrb.mxu0 %v5556_v22  ;;  %3136 = vmatpush.msrb.mxu1 %v5559_v21  ;;  %v6736_v22 = vld [vmem:[#allocation28_spill] sm:$0xff] }
 0x92b   :  { %3156 = vmatpush.msrb.mxu2 %v5562_v57  ;;  %3176 = vmatpush.msrb.mxu3 %v5565_v25  ;;  %v6737_v21 = vld [vmem:[#allocation64_spill] sm:$0xff]  ;;  %v6738_v57 = vld [vmem:[#allocation58_spill] sm:$0xff]  ;;  %v6739_v25 = vld [vmem:[#allocation59_spill] sm:$0xff] }
 0x92c   :  { %3117 = vmatpush.msrb.mxu0 %v5568_v10  ;;  %3137 = vmatpush.msrb.mxu1 %v5571_v12  ;;  %v6740_v10 = vld [vmem:[#allocation61_spill] sm:$0xff]  ;;  %v6741_v12 = vld [vmem:[#allocation31_spill] sm:$0xff] }
 0x92d   :  { %3157 = vmatpush.msrb.mxu2 %v5574_v52  ;;  %3177 = vmatpush.msrb.mxu3 %v5577_v16  ;;  %v6742_v52 = vld [vmem:[#allocation60_spill] sm:$0xff]  ;;  %v6743_v16 = vld [vmem:[#allocation62_spill] sm:$0xff] }
 0x92e   :  { %3118 = vmatpush.msrb.mxu0 %v5580_v63  ;;  %3138 = vmatpush.msrb.mxu1 %v5583_v54  ;;  %v6744_v63 = vld [vmem:[#allocation63_spill] sm:$0xff] }
 0x92f   :  { %3158 = vmatpush.msrb.mxu2 %v5586_v62  ;;  %3178 = vmatpush.msrb.mxu3 %v5589_v9  ;;  %v6745_v54 = vld [vmem:[#allocation35_spill] sm:$0xff]  ;;  %v6747_v9 = vld [vmem:[#allocation33_spill] sm:$0xff] }
 0x930   :  { %3119 = vmatpush.msrb.mxu0 %v5592_v42  ;;  %3139 = vmatpush.msrb.mxu1 %v5595_v41  ;;  %v6746_v62 = vld [vmem:[#allocation67_spill] sm:$0xff]  ;;  %v6748_v42 = vld [vmem:[#allocation32_spill] sm:$0xff]  ;;  %v6749_v41 = vld [vmem:[#allocation38_spill] sm:$0xff] }
 0x931   :  { %3159 = vmatpush.msrb.mxu2 %v5598_v30  ;;  %3179 = vmatpush.msrb.mxu3 %v5601_v29  ;;  %v6750_v30 = vld [vmem:[#allocation34_spill] sm:$0xff]  ;;  %v6751_v29 = vld [vmem:[#allocation37_spill] sm:$0xff] }
 0x932   :  { %3120 = vmatpush.msrb.mxu0 %v5604_v7  ;;  %3140 = vmatpush.msrb.mxu1 %v5607_v48  ;;  %v6752_v7 = vld [vmem:[#allocation36_spill] sm:$0xff]  ;;  %v6753_v48 = vld [vmem:[#allocation42_spill] sm:$0xff] }
 0x933   :  { %3160 = vmatpush.msrb.mxu2 %v5610_v26  ;;  %3180 = vmatpush.msrb.mxu3 %v5613_v19  ;;  %v6754_v26 = vld [vmem:[#allocation39_spill] sm:$0xff]  ;;  %v6755_v19 = vld [vmem:[#allocation41_spill] sm:$0xff] }
 0x934   :  { %3121 = vmatpush.msrb.mxu0 %v5616_v33  ;;  %3141 = vmatpush.msrb.mxu1 %v5619_v11  ;;  %v6756_v33 = vld [vmem:[#allocation40_spill] sm:$0xff]  ;;  %v6757_v11 = vld [vmem:[#allocation46_spill] sm:$0xff] }
 0x935   :  { %3161 = vmatpush.msrb.mxu2 %v5622_v55  ;;  %3181 = vmatpush.msrb.mxu3 %v5625_v6  ;;  %v6758_v55 = vld [vmem:[#allocation45_spill] sm:$0xff]  ;;  %v6759_v6 = vld [vmem:[#allocation43_spill] sm:$0xff] }
 0x936   :  { %3122 = vmatpush.msrb.mxu0 %v5628_v14  ;;  %3142 = vmatpush.msrb.mxu1 %v5631_v15  ;;  %v6760_v14 = vld [vmem:[#allocation44_spill] sm:$0xff] }
 0x937   :  { %3162 = vmatpush.msrb.mxu2 %v5634_v28  ;;  %3182 = vmatpush.msrb.mxu3 %v5637_v36  ;;  %v6761_v15 = vld [vmem:[#allocation48_spill] sm:$0xff]  ;;  %v6762_v28 = vld [vmem:[#allocation74_spill] sm:$0xff]  ;;  %v6763_v36 = vld [vmem:[#allocation71_spill] sm:$0xff] }
 0x938   :  { %3123 = vmatpush.msrb.mxu0 %v5640_v51  ;;  %3143 = vmatpush.msrb.mxu1 %v5643_v37  ;;  %v1828_v51 = vadd.f32 %v6763_v36, %v6762_v28  ;;  %v6764_v37 = vld [vmem:[#allocation78_spill] sm:$0xff] }
 0x939   :  { %3163 = vmatpush.msrb.mxu2 %v5646_v31  ;;  %3183 = vmatpush.msrb.mxu3 %v5649_v1  ;;  %v6765_v31 = vld [vmem:[#allocation69_spill] sm:$0xff] }
 0x93a   :  { %3124 = vmatpush.msrb.mxu0 %v5652_v5  ;;  %3144 = vmatpush.msrb.mxu1 %v5655_v3  ;;  %v1869_v1 = vadd.f32 %v6765_v31, %v6764_v37 }
 0x93b   :  { %3164 = vmatpush.msrb.mxu2 %v5658_v24  ;;  %3184 = vmatpush.msrb.mxu3 %v5661_v4 }
 0x93c   :  { %3125 = vmatpush.msrb.mxu0 %v5664_v18  ;;  %3145 = vmatpush.msrb.mxu1 %v5667_v8 }
 0x93d   :  { %3165 = vmatpush.msrb.mxu2 %v6736_v22  ;;  %3185 = vmatpush.msrb.mxu3 %v6737_v21 }
 0x93e   :  { %3126 = vmatpush.msrb.mxu0 %v6738_v57  ;;  %3146 = vmatpush.msrb.mxu1 %v6739_v25 }
 0x93f   :  { %3166 = vmatpush.msrb.mxu2 %v6740_v10  ;;  %3186 = vmatpush.msrb.mxu3 %v6741_v12 }
 0x940   :  { %3127 = vmatpush.msrb.mxu0 %v6742_v52  ;;  %3147 = vmatpush.msrb.mxu1 %v6743_v16 }
 0x941   :  { %3167 = vmatpush.msrb.mxu2 %v6744_v63  ;;  %3187 = vmatpush.msrb.mxu3 %v6745_v54 }
 0x942   :  { %3128 = vmatpush.msrb.mxu0 %v6746_v62  ;;  %3148 = vmatpush.msrb.mxu1 %v6747_v9 }
 0x943   :  { %3168 = vmatpush.msrb.mxu2 %v6748_v42  ;;  %3188 = vmatpush.msrb.mxu3 %v6749_v41 }
 0x944   :  { %3129 = vmatpush.msrb.mxu0 %v6750_v30  ;;  %3149 = vmatpush.msrb.mxu1 %v6751_v29 }
 0x945   :  { %3169 = vmatpush.msrb.mxu2 %v6752_v7  ;;  %3189 = vmatpush.msrb.mxu3 %v6753_v48 }
 0x946   :  { %3130 = vmatpush.msrb.mxu0 %v6754_v26  ;;  %3150 = vmatpush.msrb.mxu1 %v6755_v19 }
 0x947   :  { %3170 = vmatpush.msrb.mxu2 %v6756_v33  ;;  %3190 = vmatpush.msrb.mxu3 %v6757_v11 }
 0x948   :  { %3131 = vmatpush.msrb.mxu0 %v6758_v55  ;;  %3151 = vmatpush.msrb.mxu1 %v6759_v6 }
 0x949   :  { %3171 = vmatpush.msrb.mxu2 %v6760_v14  ;;  %3191 = vmatpush.msrb.mxu3 %v6761_v15 }
 0x9a5   :  { %v2831_v5 = vpop.f32.mrf.mxu0  ;;  %v2851_v3 = vpop.f32.mrf.mxu1 }
 0x9a6   :  { %v2894_v24 = vadd.f32 %v2831_v5, %v1828_v51  ;;  %v2895_v4 = vadd.f32 %v2851_v3, %v1869_v1  ;;  %v6771_v1 = vld [vmem:[#allocation82_spill] sm:$0xff] }
 0x9a7   :  { %v1872_v5 = vadd.f32 %v6771_v1, %v6764_v37 }
 0x9a8   :  { %v3353_v18 = vmul.f32 -1.442695, %v2894_v24  ;;  %v3354_v8 = vmul.f32 -1.442695, %v2895_v4 }
 0x9aa   :  { %3583 = vpow2.f32 %v3353_v18 }
 0x9ab   :  { %3585 = vpow2.f32 %v3354_v8 }
 0x9ac   :  { %v2891_v46 = vpop.f32.mrf.mxu3  ;;  %v2871_v0 = vpop.f32.mrf.mxu2 }
 0x9ad   :  { %v2897_v23 = vadd.f32 %v2891_v46, %v1951_v59  ;;  %v2896_v50 = vadd.f32 %v2871_v0, %v1910_v35  ;;  %v6772_v59 = vld [vmem:[#allocation30_spill] sm:$0xff]  ;;  %v6773_v35 = vld [vmem:[#allocation80_spill] sm:$0xff] }
 0x9ae   :  { %v1954_v46 = vadd.f32 %v6772_v59, %v6766_v2 }
 0x9af   :  { %v3355_v58 = vmul.f32 -1.442695, %v2897_v23 }
 0x9b0   :  { %v3584_v45 = vpop.eup %3583 }
 0x9b1   :  { %v3586_v43 = vpop.eup %3585  ;;  %v2901_v39 = vadd.f32 1.0, %v3584_v45  ;;  %3587 = vpow2.f32 %v3355_v58 }
 0x9b2   :  { %v2920_v17 = vadd.f32 1.0, %v3586_v43 }
 0x9b3   :  { %3589 = vrcp.f32 %v2901_v39  ;;  %v2913_v61 = vand.u32 2147483648, %v2901_v39  ;;  %v2911_v21 = vand.u32 2147483647, %v2901_v39  ;;  %vm2907_vm14 = vweird.f32 %v2901_v39 }
 0x9b4   :  { %3591 = vrcp.f32 %v2920_v17  ;;  %v2932_v60 = vand.u32 2147483648, %v2920_v17  ;;  %v2930_v25 = vand.u32 2147483647, %v2920_v17  ;;  %vm2926_vm15 = vweird.f32 %v2920_v17 }
 0x9b5   :  { %v2914_v52 = vor.u32 1.1754944e-38, %v2913_v61  ;;  %vm2912_vm2 = vcmp.eq.f32.partialorder %v2911_v21, 8.507059e+37 }
 0x9b6   :  { %v2933_v54 = vor.u32 1.1754944e-38, %v2932_v60  ;;  %vm2931_vm3 = vcmp.eq.f32.partialorder %v2930_v25, 8.507059e+37 }
 0x9b7   :  { %v3588_v34 = vpop.eup %3587 }
 0x9b8   :  { %v2940_v27 = vadd.f32 1.0, %v3588_v34 }
 0x9b9   :  { %v3590_v40 = vpop.eup %3589 }
 0x9ba   :  { %v3592_v47 = vpop.eup %3591  ;;  %v2903_v56 = vmul.f32 %v3590_v40, %v2901_v39  ;;  %3593 = vrcp.f32 %v2940_v27  ;;  %vm2908_vm12 = vweird.f32 %v3590_v40  ;;  %v2952_v11 = vand.u32 2147483648, %v2940_v27 }
 0x9bb   :  { %v2922_v13 = vmul.f32 %v3592_v47, %v2920_v17  ;;  %3595 = vtanh.f32 %v2896_v50  ;;  %vm2927_vm13 = vweird.f32 %v3592_v47  ;;  %vm2909_vm0 = vmor %vm2907_vm14, %vm2908_vm12  ;;  %vm2946_vm5 = vweird.f32 %v2940_v27 }
 0x9bc   :  { %v2904_v53 = vsub.f32 1.0, %v2903_v56  ;;  %vm2928_vm1 = vmor %vm2926_vm15, %vm2927_vm13  ;;  %v2950_v55 = vand.u32 2147483647, %v2940_v27  ;;  %v2953_v14 = vor.u32 1.1754944e-38, %v2952_v11 }
 0x9bd   :  { %v2923_v32 = vsub.f32 1.0, %v2922_v13 }
 0x9be   :  { %v2905_v22 = vmul.f32 %v3590_v40, %v2904_v53  ;;  %vm2951_vm7 = vcmp.eq.f32.partialorder %v2950_v55, 8.507059e+37 }
 0x9bf   :  { %v2924_v57 = vmul.f32 %v3592_v47, %v2923_v32 }
 0x9c0   :  { %v3594_v10 = vpop.eup %3593  ;;  %v2906_v12 = vadd.f32 %v3590_v40, %v2905_v22 }
 0x9c1   :  { %v2925_v16 = vadd.f32 %v3592_v47, %v2924_v57  ;;  %v2942_v63 = vmul.f32 %v3594_v10, %v2940_v27  ;;  %v3596_v9 = vpop.eup %3595  ;;  %vm2947_vm4 = vweird.f32 %v3594_v10  ;;  %v1913_v27 = vadd.f32 %v6773_v35, %v6768_v44 }
 0x9c2   :  { %v2910_v62 = vsel %vm2909_vm0, %v3590_v40, %v2906_v12  ;;  %vm2948_vm6 = vmor %vm2946_vm5, %vm2947_vm4 }
 0x9c3   :  { %v2915_v42 = vsel %vm2912_vm2, %v2914_v52, %v2910_v62  ;;  %v2929_v41 = vsel %vm2928_vm1, %v3592_v47, %v2925_v16  ;;  %v2943_v30 = vsub.f32 1.0, %v2942_v63 }
 0x9c4   :  { %v2934_v29 = vsel %vm2931_vm3, %v2933_v54, %v2929_v41  ;;  %v2957_v7 = vmul.f32 %v3596_v9, %v2915_v42 }
 0x9c5   :  { %v2956_v48 = vmul.f32 %v2934_v29, %v5909_v20  ;;  %v2944_v26 = vmul.f32 %v3594_v10, %v2943_v30  ;;  %v6770_v20 = vld [vmem:[#allocation77_spill] sm:$0xff] }
 0x9c6   :  { %v1831_v31 = vadd.f32 %v6770_v20, %v6762_v28 }
 0x9c7   :  { %v5985_v19 = vadd.f32 %v2957_v7, %v2956_v48  ;;  %v2945_v33 = vadd.f32 %v3594_v10, %v2944_v26 }
 0x9c9   :  { %3597 = vtanh.f32 %v5985_v19  ;;  %v2949_v6 = vsel %vm2948_vm6, %v3594_v10, %v2945_v33 }
 0x9ca   :  { %v2954_v36 = vsel %vm2951_vm7, %v2953_v14, %v2949_v6 }
 0x9cf   :  { %v3598_v15 = vpop.eup %3597 }
 0x9d0   :  { %v2960_v51 = vmul.f32 %v3598_v15, %v2954_v36 }
 0x9d2   :  { %2981 = vmatmul.f32.vlgmr.msra.gmra.mxu0 %v2960_v51  ;;  %3001 = vmatmul.f32.vlgmr.msra.gmra.mxu1 %v2960_v51 }
 0x9d3   :  { %3021 = vmatmul.f32.vlgmr.msra.gmra.mxu2 %v2960_v51  ;;  %3041 = vmatmul.f32.vlgmr.msra.gmra.mxu3 %v2960_v51 }
 0xa4f   :  { %v2982_v3 = vpop.f32.mrf.mxu0  ;;  %v3002_v24 = vpop.f32.mrf.mxu1 }
 0xa50   :  { %v3045_v4 = vadd.f32 %v2982_v3, %v1831_v31  ;;  %v3046_v18 = vadd.f32 %v3002_v24, %v1872_v5  ;;  %v6775_v5 = vld [vmem:[#allocation73_spill] sm:$0xff] }
 0xa51   :  { %v1875_v3 = vadd.f32 %v6775_v5, %v6764_v37 }
 0xa52   :  { %v3356_v8 = vmul.f32 -1.442695, %v3045_v4  ;;  %v3357_v49 = vmul.f32 -1.442695, %v3046_v18 }
 0xa54   :  { %3599 = vpow2.f32 %v3356_v8 }
 0xa55   :  { %3601 = vpow2.f32 %v3357_v49 }
 0xa56   :  { %v3042_v23 = vpop.f32.mrf.mxu3  ;;  %v3022_v34 = vpop.f32.mrf.mxu2 }
 0xa57   :  { %v3048_v58 = vadd.f32 %v3042_v23, %v1954_v46  ;;  %v3047_v47 = vadd.f32 %v3022_v34, %v1913_v27  ;;  %v6776_v46 = vld [vmem:[#allocation26_spill] sm:$0xff] }
 0xa58   :  { %v1957_v23 = vadd.f32 %v6776_v46, %v6766_v2 }
 0xa59   :  { %v3358_v45 = vmul.f32 -1.442695, %v3048_v58 }
 0xa5a   :  { %v3600_v43 = vpop.eup %3599 }
 0xa5b   :  { %v3602_v39 = vpop.eup %3601  ;;  %v3052_v17 = vadd.f32 1.0, %v3600_v43  ;;  %3603 = vpow2.f32 %v3358_v45 }
 0xa5c   :  { %v3071_v0 = vadd.f32 1.0, %v3602_v39 }
 0xa5d   :  { %3605 = vrcp.f32 %v3052_v17  ;;  %v3064_v60 = vand.u32 2147483648, %v3052_v17  ;;  %v3062_v57 = vand.u32 2147483647, %v3052_v17  ;;  %vm3058_vm10 = vweird.f32 %v3052_v17 }
 0xa5e   :  { %3607 = vrcp.f32 %v3071_v0  ;;  %v3083_v22 = vand.u32 2147483648, %v3071_v0  ;;  %v3081_v10 = vand.u32 2147483647, %v3071_v0  ;;  %vm3077_vm11 = vweird.f32 %v3071_v0 }
 0xa5f   :  { %v3065_v16 = vor.u32 1.1754944e-38, %v3064_v60  ;;  %vm3063_vm14 = vcmp.eq.f32.partialorder %v3062_v57, 8.507059e+37 }
 0xa60   :  { %v3084_v62 = vor.u32 1.1754944e-38, %v3083_v22  ;;  %vm3082_vm15 = vcmp.eq.f32.partialorder %v3081_v10, 8.507059e+37 }
 0xa61   :  { %v3604_v38 = vpop.eup %3603 }
 0xa62   :  { %v3091_v40 = vadd.f32 1.0, %v3604_v38  ;;  %v6777_v38 = vld [vmem:[#allocation27_spill] sm:$0xff] }
 0xa63   :  { %v3606_v50 = vpop.eup %3605  ;;  %v1916_v35 = vadd.f32 %v6777_v38, %v6768_v44 }
 0xa64   :  { %v3608_v56 = vpop.eup %3607  ;;  %v3054_v13 = vmul.f32 %v3606_v50, %v3052_v17  ;;  %3609 = vrcp.f32 %v3091_v40  ;;  %vm3059_vm8 = vweird.f32 %v3606_v50  ;;  %v3103_v6 = vand.u32 2147483648, %v3091_v40 }
 0xa65   :  { %v3073_v53 = vmul.f32 %v3608_v56, %v3071_v0  ;;  %3611 = vtanh.f32 %v3047_v47  ;;  %vm3078_vm9 = vweird.f32 %v3608_v56  ;;  %vm3060_vm12 = vmor %vm3058_vm10, %vm3059_vm8  ;;  %vm3097_vm1 = vweird.f32 %v3091_v40 }
 0xa66   :  { %v3055_v32 = vsub.f32 1.0, %v3054_v13  ;;  %vm3079_vm13 = vmor %vm3077_vm11, %vm3078_vm9  ;;  %v3101_v14 = vand.u32 2147483647, %v3091_v40  ;;  %v3104_v36 = vor.u32 1.1754944e-38, %v3103_v6 }
 0xa67   :  { %v3074_v61 = vsub.f32 1.0, %v3073_v53 }
 0xa68   :  { %v3056_v21 = vmul.f32 %v3606_v50, %v3055_v32  ;;  %vm3102_vm3 = vcmp.eq.f32.partialorder %v3101_v14, 8.507059e+37 }
 0xa69   :  { %v3075_v25 = vmul.f32 %v3608_v56, %v3074_v61 }
 0xa6a   :  { %v3610_v12 = vpop.eup %3609  ;;  %v3057_v52 = vadd.f32 %v3606_v50, %v3056_v21 }
 0xa6b   :  { %v3076_v63 = vadd.f32 %v3608_v56, %v3075_v25  ;;  %v3093_v54 = vmul.f32 %v3610_v12, %v3091_v40  ;;  %v3612_v42 = vpop.eup %3611  ;;  %vm3098_vm0 = vweird.f32 %v3610_v12 }
 0xa6c   :  { %v3061_v9 = vsel %vm3060_vm12, %v3606_v50, %v3057_v52  ;;  %vm3099_vm2 = vmor %vm3097_vm1, %vm3098_vm0 }
 0xa6d   :  { %v3066_v41 = vsel %vm3063_vm14, %v3065_v16, %v3061_v9  ;;  %v3080_v30 = vsel %vm3079_vm13, %v3608_v56, %v3076_v63  ;;  %v3094_v29 = vsub.f32 1.0, %v3093_v54 }
 0xa6e   :  { %v3085_v7 = vsel %vm3082_vm15, %v3084_v62, %v3080_v30  ;;  %v3108_v48 = vmul.f32 %v3612_v42, %v3066_v41 }
 0xa6f   :  { %v3107_v26 = vmul.f32 %v3085_v7, %v5985_v19  ;;  %v3095_v33 = vmul.f32 %v3610_v12, %v3094_v29  ;;  %v6774_v19 = vld [vmem:[#allocation56_spill] sm:$0xff] }
 0xa70   :  { %v1834_v1 = vadd.f32 %v6774_v19, %v6762_v28 }
 0xa71   :  { %v5997_v11 = vadd.f32 %v3108_v48, %v3107_v26  ;;  %v3096_v55 = vadd.f32 %v3610_v12, %v3095_v33 }
 0xa73   :  { %3613 = vtanh.f32 %v5997_v11  ;;  %v3100_v15 = vsel %vm3099_vm2, %v3610_v12, %v3096_v55 }
 0xa74   :  { %v3105_v20 = vsel %vm3102_vm3, %v3104_v36, %v3100_v15 }
 0xa79   :  { %v3614_v51 = vpop.eup %3613 }
 0xa7a   :  { %v3111_v31 = vmul.f32 %v3614_v51, %v3105_v20 }
 0xa7c   :  { %3132 = vmatmul.f32.vlgmr.msrb.gmra.mxu0 %v3111_v31  ;;  %3152 = vmatmul.f32.vlgmr.msrb.gmra.mxu1 %v3111_v31 }
 0xa7d   :  { %3172 = vmatmul.f32.vlgmr.msrb.gmra.mxu2 %v3111_v31  ;;  %3192 = vmatmul.f32.vlgmr.msrb.gmra.mxu3 %v3111_v31 }
 0xaf9   :  { %v3133_v24 = vpop.f32.mrf.mxu0  ;;  %v3153_v4 = vpop.f32.mrf.mxu1 }
 0xafa   :  { %v3196_v18 = vadd.f32 %v3133_v24, %v1834_v1  ;;  %v3197_v8 = vadd.f32 %v3153_v4, %v1875_v3 }
 0xafc   :  { %v3359_v49 = vmul.f32 -1.442695, %v3196_v18  ;;  %v3360_v59 = vmul.f32 -1.442695, %v3197_v8 }
 0xafe   :  { %3615 = vpow2.f32 %v3359_v49 }
 0xaff   :  { %3617 = vpow2.f32 %v3360_v59 }
 0xb00   :  { %v3193_v58 = vpop.f32.mrf.mxu3  ;;  %v3173_v37 = vpop.f32.mrf.mxu2 }
 0xb01   :  { %v3199_v45 = vadd.f32 %v3193_v58, %v1957_v23  ;;  %v3198_v50 = vadd.f32 %v3173_v37, %v1916_v35 }
 0xb03   :  { %v3361_v43 = vmul.f32 -1.442695, %v3199_v45 }
 0xb04   :  { %v3616_v39 = vpop.eup %3615 }
 0xb05   :  { %v3618_v17 = vpop.eup %3617  ;;  %v3203_v28 = vadd.f32 1.0, %v3616_v39  ;;  %3619 = vpow2.f32 %v3361_v43 }
 0xb06   :  { %v3222_v0 = vadd.f32 1.0, %v3618_v17 }
 0xb07   :  { %3621 = vrcp.f32 %v3203_v28  ;;  %v3215_v32 = vand.u32 2147483648, %v3203_v28  ;;  %v3213_v22 = vand.u32 2147483647, %v3203_v28  ;;  %vm3209_vm6 = vweird.f32 %v3203_v28 }
 0xb08   :  { %3623 = vrcp.f32 %v3222_v0  ;;  %v3234_v61 = vand.u32 2147483648, %v3222_v0  ;;  %v3232_v57 = vand.u32 2147483647, %v3222_v0  ;;  %vm3228_vm7 = vweird.f32 %v3222_v0 }
 0xb09   :  { %v3216_v10 = vor.u32 1.1754944e-38, %v3215_v32  ;;  %vm3214_vm10 = vcmp.eq.f32.partialorder %v3213_v22, 8.507059e+37 }
 0xb0a   :  { %v3235_v16 = vor.u32 1.1754944e-38, %v3234_v61  ;;  %vm3233_vm11 = vcmp.eq.f32.partialorder %v3232_v57, 8.507059e+37 }
 0xb0b   :  { %v3620_v34 = vpop.eup %3619 }
 0xb0c   :  { %v3242_v27 = vadd.f32 1.0, %v3620_v34 }
 0xb0d   :  { %v3622_v40 = vpop.eup %3621 }
 0xb0e   :  { %v3624_v2 = vpop.eup %3623  ;;  %v3205_v47 = vmul.f32 %v3622_v40, %v3203_v28  ;;  %3625 = vrcp.f32 %v3242_v27  ;;  %vm3210_vm4 = vweird.f32 %v3622_v40  ;;  %v3254_v33 = vand.u32 2147483648, %v3242_v27 }
 0xb0f   :  { %v3224_v56 = vmul.f32 %v3624_v2, %v3222_v0  ;;  %3627 = vtanh.f32 %v3198_v50  ;;  %vm3229_vm5 = vweird.f32 %v3624_v2  ;;  %vm3211_vm8 = vmor %vm3209_vm6, %vm3210_vm4  ;;  %vm3248_vm13 = vweird.f32 %v3242_v27 }
 0xb10   :  { %v3206_v13 = vsub.f32 1.0, %v3205_v47  ;;  %vm3230_vm9 = vmor %vm3228_vm7, %vm3229_vm5  ;;  %v3252_v55 = vand.u32 2147483647, %v3242_v27  ;;  %v3255_v14 = vor.u32 1.1754944e-38, %v3254_v33 }
 0xb11   :  { %v3225_v53 = vsub.f32 1.0, %v3224_v56 }
 0xb12   :  { %v3207_v60 = vmul.f32 %v3622_v40, %v3206_v13  ;;  %vm3253_vm15 = vcmp.eq.f32.partialorder %v3252_v55, 8.507059e+37 }
 0xb13   :  { %v3226_v21 = vmul.f32 %v3624_v2, %v3225_v53 }
 0xb14   :  { %v3626_v25 = vpop.eup %3625  ;;  %v3208_v44 = vadd.f32 %v3622_v40, %v3207_v60 }
 0xb15   :  { %v3227_v12 = vadd.f32 %v3624_v2, %v3226_v21  ;;  %v3244_v52 = vmul.f32 %v3626_v25, %v3242_v27  ;;  %v3628_v54 = vpop.eup %3627  ;;  %vm3249_vm12 = vweird.f32 %v3626_v25 }
 0xb16   :  { %v3212_v63 = vsel %vm3211_vm8, %v3622_v40, %v3208_v44  ;;  %vm3250_vm14 = vmor %vm3248_vm13, %vm3249_vm12 }
 0xb17   :  { %v3217_v62 = vsel %vm3214_vm10, %v3216_v10, %v3212_v63  ;;  %v3231_v9 = vsel %vm3230_vm9, %v3624_v2, %v3227_v12  ;;  %v3245_v42 = vsub.f32 1.0, %v3244_v52 }
 0xb18   :  { %v3236_v41 = vsel %vm3233_vm11, %v3235_v16, %v3231_v9  ;;  %v3259_v30 = vmul.f32 %v3628_v54, %v3217_v62 }
 0xb19   :  { %v3258_v29 = vmul.f32 %v3236_v41, %v5997_v11  ;;  %v3246_v7 = vmul.f32 %v3626_v25, %v3245_v42 }
 0xb1b   :  { %v3260_v48 = vadd.f32 %v3259_v30, %v3258_v29  ;;  %v3247_v26 = vadd.f32 %v3626_v25, %v3246_v7 }
 0xb1d   :  { %3629 = vtanh.f32 %v3260_v48  ;;  %3266 = vst [vmem:[#allocation16 + $0x8] sm:$0xff] %v3260_v48  ;;  %v3251_v6 = vsel %vm3250_vm14, %v3626_v25, %v3247_v26 }
 0xb1e   :  { %3292 = dma.vmem_to_hbm [thread:$0]  %s3285_s13, 256, %s3287_s16, [#allocation17], %s3968_s23, %s3968_s23, %s3969_s24   ;;  %v3256_v15 = vsel %vm3253_vm15, %v3255_v14, %v3251_v6 }
 0xb23   :  { %v3630_v11 = vpop.eup %3629 }
 0xb24   :  { %v3262_v36 = vmul.f32 %v3630_v11, %v3256_v15 }
 0xb26   :  { %3264 = vst [vmem:[#allocation15 + $0x8] sm:$0xff] %v3262_v36 }
 0xb27   :  { %3279 = dma.vmem_to_hbm [thread:$0]  %s3272_s17, 256, %s3274_s19, [#allocation6], %s3968_s23, %s3968_s23, %s3969_s24  }
 0xb28   :  { %3959 = dma.done.wait [#allocation6], 256  }
 0xb29   :  { %3960 = vsyncadd [#allocation6], 4294967040 }
 0xb2a   :  { %3961 = dma.done.wait [#allocation17], 256  }
 0xb2b   :  { %3962 = vsyncadd [#allocation17], 4294967040 }
 0xb2c   :  { %3301 = vsyncpa [#allocation5], 1 }
 0xb2d   :  { %3302 = vsyncpa [#allocation8], 1 }
 0xb2e   :  { %3303 = vsyncpa [#allocation11], 1 }
 0xb2f   :  { %3304 = vsyncpa [#allocation14], 1 }
 0xb30   :  { %3305 = vsyncpa [#allocation6], 1 }
 0xb31   :  { %3306 = vsyncpa [#allocation17], 1 }

</bundles_post_ra>
